<compile_context>
chip_gen: v5e
topology: v5e:2x2
jax: 0.10.0
libtpu: 0.0.40
codegen_flags: <defaults>
</compile_context>

<pallas_src>
import functools

import jax
import jax.numpy as jnp
import numpy as np
from jax import lax
from jax.experimental import pallas as pl
from jax.experimental.pallas import tpu as pltpu


# --------------------------- Phase 0: projections --------------------------------------
def proj_kernel(v_ref, wp_ref, wpp_ref, wpv_ref, wppv_ref):
    # (RT, D) @ (D, H) twice; bf16 operands, f32 accumulation, lane-dense outputs.
    x = v_ref[...]
    wpv_ref[...] = jnp.dot(x, wp_ref[...], preferred_element_type=jnp.float32)
    wppv_ref[...] = jnp.dot(x, wpp_ref[...], preferred_element_type=jnp.float32)


# ------------------ Phase 1: attention + input gates (online softmax) ------------------
def attn_kernel(wpv_ref, wppv_ref, v_ref, V_ref, wih_ref, bih_ref,     # inputs
                gi_ref,                                                # output
                m_sc, d_sc, acc_sc,                                    # VMEM scratch
                *, B, TQ, TK, H, D):
    k = pl.program_id(1)

    @pl.when(k == 0)
    def _init():
        m_sc[...] = jnp.full(m_sc.shape, -jnp.inf, m_sc.dtype)
        d_sc[...] = jnp.zeros(d_sc.shape, d_sc.dtype)
        acc_sc[...] = jnp.zeros(acc_sc.shape, acc_sc.dtype)

    wpv = wpv_ref[...]                                    # (B, TQ, H) f32
    wppv = wppv_ref[...]                                  # (B, TK, H) f32
    Vb = V_ref[...]                                       # (B, H)     f32

    # tanh(Wp(v_q) + Wp_(v_k)) for the whole (TQ, TK) tile at once (f32 EUP).
    x = jnp.tanh(wpv[:, :, None, :] + wppv[:, None, :, :])          # (B, TQ, TK, H)

    # Scores s[b,q,k] = <x[b,q,k,:], V[b,:]>; V broadcast emitted once per grid step.
    # TODO(synk): at production H move this contraction onto the MXU as a batched
    # (TQ*TK, H) @ (H, 1) matvec to free the VPU/XLU slots.
    s = jnp.sum(x * Vb[:, None, None, :], axis=-1)                   # (B, TQ, TK) f32

    # Online-softmax update across key chunks.
    m_prev = m_sc[...]                                               # (B, TQ, 1)
    m_new = jnp.maximum(m_prev, jnp.max(s, axis=-1, keepdims=True))
    alpha = jnp.exp(m_prev - m_new)
    p = jnp.exp(s - m_new)                                           # (B, TQ, TK)
    d_sc[...] = alpha * d_sc[...] + jnp.sum(p, axis=-1, keepdims=True)

    # Context on the MXU: batched (TQ, TK) @ (TK, D), bf16 operands / f32 accumulate.
    ctx = jnp.einsum('bqk,bkd->bqd', p.astype(jnp.bfloat16), v_ref[...],
                     preferred_element_type=jnp.float32)             # (B, TQ, D)
    acc_sc[...] = alpha * acc_sc[...] + ctx
    m_sc[...] = m_new

    @pl.when(k == pl.num_programs(1) - 1)
    def _finalize():
        # Exact softmax normalization (no approximate reciprocal).
        c = acc_sc[...] / d_sc[...]                                  # (B, TQ, D) f32
        # h-independent GRU input gates as ONE fat (B*TQ, D) @ (D, 3H) MXU matmul.
        c2d = c.reshape(B * TQ, D).astype(jnp.bfloat16)
        gi = jnp.dot(c2d, wih_ref[...], preferred_element_type=jnp.float32)
        gi_ref[...] = (gi + bih_ref[...]).reshape(B, TQ, 3 * H)


# ------------------ Phase 2: sequential GRU recurrence (chunked grid) ------------------
def gru_kernel(gi_ref, whh_ref, bhh_ref, h0_ref,          # inputs
               hs_ref,                                    # output chunk
               h_sc,                                      # running hidden state
               *, TC, H, unroll):
    @pl.when(pl.program_id(0) == 0)
    def _():
        h_sc[...] = h0_ref[...].astype(jnp.float32)

    whh = whh_ref[...]            # (H, 3H) bf16
    bhh = bhh_ref[...]            # (1, 3H) f32

    # TODO(synk): gate slices assume 3H contiguity; keep H a multiple of 128 in
    # production (or put the gate factor on a leading axis) for lane-aligned stores.
    def body(t, h):
        gi = gi_ref[t]                                                     # (B, 3H) f32
        gh = jnp.dot(h.astype(jnp.bfloat16), whh,
                     preferred_element_type=jnp.float32) + bhh             # (B, 3H)
        r = jax.nn.sigmoid(gi[:, 0:H] + gh[:, 0:H])
        z = jax.nn.sigmoid(gi[:, H:2 * H] + gh[:, H:2 * H])
        n = jnp.tanh(gi[:, 2 * H:3 * H] + r * gh[:, 2 * H:3 * H])
        h_new = (1.0 - z) * n + z * h
        hs_ref[t] = h_new.astype(hs_ref.dtype)
        return h_new

    h_final = lax.fori_loop(0, TC, body, h_sc[...], unroll=unroll)
    h_sc[...] = h_final


def _pick_chunk(n, target):
    """Largest multiple-of-8 divisor of n that is <= target (whole axis otherwise).

    Returning either n itself or a multiple of 8 keeps every block's second-to-last
    dim (8,128)-legal.  For v7x, production sizes should yield an even number of
    chunks so both TensorCores get balanced work.
    """
    if n <= target:
        return n
    best = None
    c = 8
    while c <= target:
        if n % c == 0:
            best = c
        c += 8
    return best if best is not None else n


def self_attn_forward(v, h0, Vvec, wp_w, wpp_w, w_ih, w_hh, b_ih, b_hh):
    """Pallas implementation of SelfAttn.forward.

    v:     (l, B, D)   input sequence
    h0:    (B, H)      the `torch.randn` initial hidden state (passed in)
    Vvec:  (B, H)      the `torch.randn` attention vector V (last dim squeezed)
    wp_w, wpp_w: (H, D)  Linear weights (no bias)
    w_ih: (3H, D), w_hh: (3H, H), b_ih/b_hh: (3H,)  GRUCell params (r, z, n order)
    """
    l, B, D = v.shape
    H = wp_w.shape[0]
    H3 = 3 * H
    Bl = B * l
    f32, bf16 = jnp.float32, jnp.bfloat16

    # One-time layout / dtype plumbing (plain XLA ops, outside the kernels):
    # batch-major activations for the batched attention matmuls, bf16 MXU operands.
    v_b = jnp.transpose(v, (1, 0, 2))                 # (B, l, D)
    v_b_bf = v_b.astype(bf16)
    v2d_bf = v_b_bf.reshape(Bl, D)
    wp_bf = jnp.asarray(wp_w).T.astype(bf16)          # (D, H)
    wpp_bf = jnp.asarray(wpp_w).T.astype(bf16)        # (D, H)
    wih_bf = jnp.asarray(w_ih).T.astype(bf16)         # (D, 3H)
    whh_bf = jnp.asarray(w_hh).T.astype(bf16)         # (H, 3H)
    bih2 = jnp.asarray(b_ih).reshape(1, H3).astype(f32)
    bhh2 = jnp.asarray(b_hh).reshape(1, H3).astype(f32)
    Vb = jnp.asarray(Vvec).astype(f32)                # (B, H)
    h0f = jnp.asarray(h0).astype(f32)

    vmem_limit = 64 * 1024 * 1024                     # explicit budget (v7x: 64 MiB phys)

    # ---- Phase 0: projections, row-tiled + parallel, two lane-dense outputs ----
    RT = _pick_chunk(Bl, 512)
    wpv2d, wppv2d = pl.pallas_call(
        proj_kernel,
        out_shape=(jax.ShapeDtypeStruct((Bl, H), f32),
                   jax.ShapeDtypeStruct((Bl, H), f32)),
        grid_spec=pltpu.PrefetchScalarGridSpec(
            num_scalar_prefetch=0,
            grid=(Bl // RT,),
            in_specs=[pl.BlockSpec((RT, D), lambda r: (r, 0)),
                      pl.BlockSpec((D, H), lambda r: (0, 0)),
                      pl.BlockSpec((D, H), lambda r: (0, 0))],
            out_specs=[pl.BlockSpec((RT, H), lambda r: (r, 0)),
                       pl.BlockSpec((RT, H), lambda r: (r, 0))],
        ),
        compiler_params=pltpu.CompilerParams(
            dimension_semantics=("parallel",), vmem_limit_bytes=vmem_limit),
    )(v2d_bf, wp_bf, wpp_bf)
    wpv_b = wpv2d.reshape(B, l, H)                    # Wp(v_q)   (B, l, H)
    wppv_b = wppv2d.reshape(B, l, H)                  # Wp_(v_k)  (B, l, H)

    # ---- Phase 1: attention + gi, (query parallel) x (key reduction) grid ----
    TQ = _pick_chunk(l, 16)
    TK = _pick_chunk(l, 128)
    attn = functools.partial(attn_kernel, B=B, TQ=TQ, TK=TK, H=H, D=D)
    gi_b = pl.pallas_call(
        attn,
        out_shape=jax.ShapeDtypeStruct((B, l, H3), f32),
        grid_spec=pltpu.PrefetchScalarGridSpec(
            num_scalar_prefetch=0,
            grid=(l // TQ, l // TK),
            in_specs=[
                pl.BlockSpec((B, TQ, H), lambda q, k: (0, q, 0)),   # Wp(v)   query chunk
                pl.BlockSpec((B, TK, H), lambda q, k: (0, k, 0)),   # Wp_(v)  key chunk
                pl.BlockSpec((B, TK, D), lambda q, k: (0, k, 0)),   # v       key chunk (bf16)
                pl.BlockSpec((B, H), lambda q, k: (0, 0)),          # V
                pl.BlockSpec((D, H3), lambda q, k: (0, 0)),         # W_ih^T (bf16)
                pl.BlockSpec((1, H3), lambda q, k: (0, 0)),         # b_ih
            ],
            out_specs=pl.BlockSpec((B, TQ, H3), lambda q, k: (0, q, 0)),
            scratch_shapes=[pltpu.VMEM((B, TQ, 1), f32),            # running max
                            pltpu.VMEM((B, TQ, 1), f32),            # running denom
                            pltpu.VMEM((B, TQ, D), f32)],           # running context
        ),
        compiler_params=pltpu.CompilerParams(
            dimension_semantics=("parallel", "arbitrary"),
            vmem_limit_bytes=vmem_limit),
    )(wpv_b, wppv_b, v_b_bf, Vb, wih_bf, bih2)

    # Time-major gi for the sequential recurrence (single XLA transpose).
    gi_t = jnp.transpose(gi_b, (1, 0, 2))             # (l, B, 3H)

    # ---- Phase 2: chunked GRU recurrence, hidden state in VMEM scratch ----
    TC = _pick_chunk(l, 32)
    unroll = min(TC, 8)                               # bounded unroll (vreg pressure)
    gru = functools.partial(gru_kernel, TC=TC, H=H, unroll=unroll)
    hs = pl.pallas_call(
        gru,
        out_shape=jax.ShapeDtypeStruct((l, B, H), f32),
        grid_spec=pltpu.PrefetchScalarGridSpec(
            num_scalar_prefetch=0,
            grid=(l // TC,),
            in_specs=[pl.BlockSpec((TC, B, H3), lambda c: (c, 0, 0)),  # gi chunk
                      pl.BlockSpec((H, H3), lambda c: (0, 0)),         # W_hh^T (bf16)
                      pl.BlockSpec((1, H3), lambda c: (0, 0)),         # b_hh
                      pl.BlockSpec((B, H), lambda c: (0, 0))],         # h0
            out_specs=pl.BlockSpec((TC, B, H), lambda c: (c, 0, 0)),
            scratch_shapes=[pltpu.VMEM((B, H), f32)],
        ),
        compiler_params=pltpu.CompilerParams(
            dimension_semantics=("arbitrary",), vmem_limit_bytes=vmem_limit),
    )(gi_t, whh_bf, bhh2, h0f)

    # nn.Dropout(p=0) is the identity.
    # TODO(synk): if drop_prob > 0 were needed, apply dropout with the pltpu PRNG here.
    return hs


def reference(v, h0, Vvec, wp_w, wpp_w, w_ih, w_hh, b_ih, b_hh,
              matmul_dtype=jnp.float32):
    """Pure-JAX reference mirroring the PyTorch forward pass.

    matmul_dtype=bf16 emulates the kernel's MXU operand precision (f32 accumulate).
    """
    l, B, D = v.shape
    H = h0.shape[1]

    def mm(a, b):
        return jnp.dot(a.astype(matmul_dtype), b.astype(matmul_dtype),
                       preferred_element_type=jnp.float32)

    wppv_all = jnp.einsum('lbd,hd->lbh', v.astype(matmul_dtype),
                          wpp_w.astype(matmul_dtype),
                          preferred_element_type=jnp.float32)
    h = h0.astype(jnp.float32)
    hs = []
    for i in range(l):
        wpv = mm(v[i], wp_w.T)                               # (B, H)
        x = jnp.tanh(wpv[None] + wppv_all)                   # (l, B, H)
        s = jnp.sum(x * Vvec[None, :, :], axis=2).T          # (B, l), f32 scores
        a = jax.nn.softmax(s, axis=1)                        # (B, l)
        c = jnp.einsum('bl,lbd->bd', a.astype(matmul_dtype), v.astype(matmul_dtype),
                       preferred_element_type=jnp.float32)   # (B, D)
        gi = mm(c, w_ih.T) + b_ih
        gh = mm(h, w_hh.T) + b_hh
        r = jax.nn.sigmoid(gi[:, :H] + gh[:, :H])
        z = jax.nn.sigmoid(gi[:, H:2 * H] + gh[:, H:2 * H])
        n = jnp.tanh(gi[:, 2 * H:] + r * gh[:, 2 * H:])
        h = (1 - z) * n + z * h
        hs.append(h)
    return jnp.stack(hs, axis=0)


if __name__ == "__main__":
    l, B = 8, 4
    D = 32           # in_size
    H = D            # hidden_size == in_size in the module

    key = jax.random.PRNGKey(0)
    keys = jax.random.split(key, 9)

    v = jax.random.normal(keys[0], (l, B, D), jnp.float32)
    # The module draws h and V with torch.randn inside forward; we generate
    # them deterministically here and feed them to the kernel.
    h0 = jax.random.normal(keys[1], (B, H), jnp.float32)
    Vvec = jax.random.normal(keys[2], (B, H), jnp.float32)    # torch V: (B, H, 1)

    lin_scale = 1.0 / (D ** 0.5)
    gru_scale = 1.0 / (H ** 0.5)
    wp_w = jax.random.uniform(keys[3], (H, D), jnp.float32, -lin_scale, lin_scale)
    wpp_w = jax.random.uniform(keys[4], (H, D), jnp.float32, -lin_scale, lin_scale)
    w_ih = jax.random.uniform(keys[5], (3 * H, D), jnp.float32, -gru_scale, gru_scale)
    w_hh = jax.random.uniform(keys[6], (3 * H, H), jnp.float32, -gru_scale, gru_scale)
    b_ih = jax.random.uniform(keys[7], (3 * H,), jnp.float32, -gru_scale, gru_scale)
    b_hh = jax.random.uniform(keys[8], (3 * H,), jnp.float32, -gru_scale, gru_scale)

    fwd = jax.jit(self_attn_forward)
    out = jax.block_until_ready(fwd(v, h0, Vvec, wp_w, wpp_w, w_ih, w_hh, b_ih, b_hh))
    assert out.shape == (l, B, H)

    # Tight check vs a reference that emulates the kernel's bf16 MXU operands.
    ref_bf = reference(v, h0, Vvec, wp_w, wpp_w, w_ih, w_hh, b_ih, b_hh,
                       matmul_dtype=jnp.bfloat16)
    assert np.allclose(np.asarray(out), np.asarray(ref_bf), atol=1e-2, rtol=1e-2), (
        "Pallas output does not match bf16-MXU reference")

    # Semantic sanity check vs the pure-f32 reference (bf16 operands bound the gap).
    ref_f32 = reference(v, h0, Vvec, wp_w, wpp_w, w_ih, w_hh, b_ih, b_hh,
                        matmul_dtype=jnp.float32)
    assert np.allclose(np.asarray(out), np.asarray(ref_f32), atol=5e-2, rtol=5e-2), (
        "Pallas output does not match pure-f32 reference")

    print("KERNEL_OK")
</pallas_src>

<mosaic_0001>
module attributes {stable_mosaic.version = 11 : i64} {
  func.func @proj_kernel(%arg0: i32, %arg1: memref<32x32xbf16, #tpu.memory_space<vmem>>, %arg2: memref<32x32xbf16, #tpu.memory_space<vmem>>, %arg3: memref<32x32xbf16, #tpu.memory_space<vmem>>, %arg4: memref<32x32xf32, #tpu.memory_space<vmem>>, %arg5: memref<32x32xf32, #tpu.memory_space<vmem>>) attributes {dimension_semantics = [#tpu.dimension_semantics<parallel>], iteration_bounds = array<i64: 1>, scalar_prefetch = 0 : i64, scratch_operands = 0 : i64, tpu.core_type = #tpu.core_type<tc>, window_params = [{transform_indices = @transform_0, window_bounds = array<i64: 32, 32>}, {pipeline_mode = #tpu.pipeline_mode<synchronous>, transform_indices = @transform_1, window_bounds = array<i64: 32, 32>}, {pipeline_mode = #tpu.pipeline_mode<synchronous>, transform_indices = @transform_2, window_bounds = array<i64: 32, 32>}, {transform_indices = @transform_3, window_bounds = array<i64: 32, 32>}, {transform_indices = @transform_4, window_bounds = array<i64: 32, 32>}]} {
    %c0 = arith.constant 0 : index
    %c0_0 = arith.constant 0 : index
    %0 = vector.load %arg1[%c0, %c0_0] : memref<32x32xbf16, #tpu.memory_space<vmem>>, vector<32x32xbf16>
    %c0_1 = arith.constant 0 : index
    %c0_2 = arith.constant 0 : index
    %1 = vector.load %arg2[%c0_1, %c0_2] : memref<32x32xbf16, #tpu.memory_space<vmem>>, vector<32x32xbf16>
    %cst = arith.constant dense<0.000000e+00> : vector<32x32xf32>
    %2 = tpu.matmul %0, %1, %cst {dimension_numbers = #tpu.dot_dimension_numbers<[1], [0], [0], [1], [0, 0, 1, 1], [], []>} : vector<32x32xbf16>, vector<32x32xbf16>, vector<32x32xf32> -> vector<32x32xf32>
    %c0_3 = arith.constant 0 : index
    %c0_4 = arith.constant 0 : index
    %3 = vector.load %arg4[%c0_3, %c0_4] : memref<32x32xf32, #tpu.memory_space<vmem>>, vector<32x32xf32>
    tpu.vector_store %arg4[%c0_3, %c0_4], %2 {strides = array<i32>} : memref<32x32xf32, #tpu.memory_space<vmem>>, vector<32x32xf32>,
    %c0_5 = arith.constant 0 : index
    %c0_6 = arith.constant 0 : index
    %4 = vector.load %arg3[%c0_5, %c0_6] : memref<32x32xbf16, #tpu.memory_space<vmem>>, vector<32x32xbf16>
    %cst_7 = arith.constant dense<0.000000e+00> : vector<32x32xf32>
    %5 = tpu.matmul %0, %4, %cst_7 {dimension_numbers = #tpu.dot_dimension_numbers<[1], [0], [0], [1], [0, 0, 1, 1], [], []>} : vector<32x32xbf16>, vector<32x32xbf16>, vector<32x32xf32> -> vector<32x32xf32>
    %c0_8 = arith.constant 0 : index
    %c0_9 = arith.constant 0 : index
    %6 = vector.load %arg5[%c0_8, %c0_9] : memref<32x32xf32, #tpu.memory_space<vmem>>, vector<32x32xf32>
    tpu.vector_store %arg5[%c0_8, %c0_9], %5 {strides = array<i32>} : memref<32x32xf32, #tpu.memory_space<vmem>>, vector<32x32xf32>,
    return
  }
  func.func @transform_0(%arg0: i32) -> (i32, i32) {
    %c0_i32 = arith.constant 0 : i32
    %c0_i32_0 = arith.constant 0 : i32
    return %arg0, %c0_i32 : i32, i32
  }
  func.func @transform_1(%arg0: i32) -> (i32, i32) {
    %c0_i32 = arith.constant 0 : i32
    %c0_i32_0 = arith.constant 0 : i32
    %c0_i32_1 = arith.constant 0 : i32
    return %c0_i32, %c0_i32_0 : i32, i32
  }
  func.func @transform_2(%arg0: i32) -> (i32, i32) {
    %c0_i32 = arith.constant 0 : i32
    %c0_i32_0 = arith.constant 0 : i32
    %c0_i32_1 = arith.constant 0 : i32
    return %c0_i32, %c0_i32_0 : i32, i32
  }
  func.func @transform_3(%arg0: i32) -> (i32, i32) {
    %c0_i32 = arith.constant 0 : i32
    %c0_i32_0 = arith.constant 0 : i32
    return %arg0, %c0_i32 : i32, i32
  }
  func.func @transform_4(%arg0: i32) -> (i32, i32) {
    %c0_i32 = arith.constant 0 : i32
    %c0_i32_0 = arith.constant 0 : i32
    return %arg0, %c0_i32 : i32, i32
  }
}

module attributes {stable_mosaic.version = 11 : i64} {
  func.func @attn_kernel(%arg0: i32, %arg1: i32, %arg2: memref<4x8x32xf32, #tpu.memory_space<vmem>>, %arg3: memref<4x8x32xf32, #tpu.memory_space<vmem>>, %arg4: memref<4x8x32xbf16, #tpu.memory_space<vmem>>, %arg5: memref<4x32xf32, #tpu.memory_space<vmem>>, %arg6: memref<32x96xbf16, #tpu.memory_space<vmem>>, %arg7: memref<1x96xf32, #tpu.memory_space<vmem>>, %arg8: memref<4x8x96xf32, #tpu.memory_space<vmem>>, %arg9: memref<4x8x1xf32, #tpu.memory_space<vmem>>, %arg10: memref<4x8x1xf32, #tpu.memory_space<vmem>>, %arg11: memref<4x8x32xf32, #tpu.memory_space<vmem>>) attributes {dimension_semantics = [#tpu.dimension_semantics<parallel>, #tpu.dimension_semantics<arbitrary>], iteration_bounds = array<i64: 1, 1>, scalar_prefetch = 0 : i64, scratch_operands = 3 : i64, tpu.core_type = #tpu.core_type<tc>, window_params = [{transform_indices = @transform_0, window_bounds = array<i64: 4, 8, 32>}, {transform_indices = @transform_1, window_bounds = array<i64: 4, 8, 32>}, {transform_indices = @transform_2, window_bounds = array<i64: 4, 8, 32>}, {pipeline_mode = #tpu.pipeline_mode<synchronous>, transform_indices = @transform_3, window_bounds = array<i64: 4, 32>}, {pipeline_mode = #tpu.pipeline_mode<synchronous>, transform_indices = @transform_4, window_bounds = array<i64: 32, 96>}, {pipeline_mode = #tpu.pipeline_mode<synchronous>, transform_indices = @transform_5, window_bounds = array<i64: 1, 96>}, {transform_indices = @transform_6, window_bounds = array<i64: 4, 8, 96>}]} {
    %c0_i32 = arith.constant 0 : i32
    %0 = arith.cmpi eq, %arg1, %c0_i32 : i32
    %1 = arith.extui %0 : i1 to i32
    %c0_i32_0 = arith.constant 0 : i32
    %2 = arith.cmpi ne, %1, %c0_i32_0 : i32
    scf.if %2 {
      %cst_34 = arith.constant 0xFF800000 : f32
      %43 = vector.broadcast %cst_34 : f32 to vector<4x8x1xf32>
      %c0_35 = arith.constant 0 : index
      %c0_36 = arith.constant 0 : index
      %c0_37 = arith.constant 0 : index
      %44 = vector.load %arg9[%c0_35, %c0_36, %c0_37] : memref<4x8x1xf32, #tpu.memory_space<vmem>>, vector<4x8x1xf32>
      tpu.vector_store %arg9[%c0_35, %c0_36, %c0_37], %43 {strides = array<i32>} : memref<4x8x1xf32, #tpu.memory_space<vmem>>, vector<4x8x1xf32>,
      %cst_38 = arith.constant 0.000000e+00 : f32
      %45 = vector.broadcast %cst_38 : f32 to vector<4x8x1xf32>
      %c0_39 = arith.constant 0 : index
      %c0_40 = arith.constant 0 : index
      %c0_41 = arith.constant 0 : index
      %46 = vector.load %arg10[%c0_39, %c0_40, %c0_41] : memref<4x8x1xf32, #tpu.memory_space<vmem>>, vector<4x8x1xf32>
      tpu.vector_store %arg10[%c0_39, %c0_40, %c0_41], %45 {strides = array<i32>} : memref<4x8x1xf32, #tpu.memory_space<vmem>>, vector<4x8x1xf32>,
      %cst_42 = arith.constant 0.000000e+00 : f32
      %47 = vector.broadcast %cst_42 : f32 to vector<4x8x32xf32>
      %c0_43 = arith.constant 0 : index
      %c0_44 = arith.constant 0 : index
      %c0_45 = arith.constant 0 : index
      %48 = vector.load %arg11[%c0_43, %c0_44, %c0_45] : memref<4x8x32xf32, #tpu.memory_space<vmem>>, vector<4x8x32xf32>
      tpu.vector_store %arg11[%c0_43, %c0_44, %c0_45], %47 {strides = array<i32>} : memref<4x8x32xf32, #tpu.memory_space<vmem>>, vector<4x8x32xf32>,
    } else {
    }
    %c0 = arith.constant 0 : index
    %c0_1 = arith.constant 0 : index
    %c0_2 = arith.constant 0 : index
    %3 = vector.load %arg2[%c0, %c0_1, %c0_2] : memref<4x8x32xf32, #tpu.memory_space<vmem>>, vector<4x8x32xf32>
    %c0_3 = arith.constant 0 : index
    %c0_4 = arith.constant 0 : index
    %c0_5 = arith.constant 0 : index
    %4 = vector.load %arg3[%c0_3, %c0_4, %c0_5] : memref<4x8x32xf32, #tpu.memory_space<vmem>>, vector<4x8x32xf32>
    %c0_6 = arith.constant 0 : index
    %c0_7 = arith.constant 0 : index
    %5 = vector.load %arg5[%c0_6, %c0_7] : memref<4x32xf32, #tpu.memory_space<vmem>>, vector<4x32xf32>
    %6 = vector.shape_cast %3 : vector<4x8x32xf32> to vector<4x8x1x32xf32>
    %7 = vector.shape_cast %4 : vector<4x8x32xf32> to vector<4x1x8x32xf32>
    %8 = vector.broadcast %6 : vector<4x8x1x32xf32> to vector<4x8x8x32xf32>
    %9 = vector.broadcast %7 : vector<4x1x8x32xf32> to vector<4x8x8x32xf32>
    %10 = arith.addf %8, %9 : vector<4x8x8x32xf32>
    %11 = math.tanh %10 : vector<4x8x8x32xf32>
    %12 = vector.shape_cast %5 : vector<4x32xf32> to vector<4x1x1x32xf32>
    %13 = vector.broadcast %12 : vector<4x1x1x32xf32> to vector<4x8x8x32xf32>
    %14 = arith.mulf %11, %13 : vector<4x8x8x32xf32>
    %cst = arith.constant dense<0.000000e+00> : vector<4x8x8xf32>
    %15 = vector.multi_reduction <add>, %14, %cst [3] : vector<4x8x8x32xf32> to vector<4x8x8xf32>
    %c0_8 = arith.constant 0 : index
    %c0_9 = arith.constant 0 : index
    %c0_10 = arith.constant 0 : index
    %16 = vector.load %arg9[%c0_8, %c0_9, %c0_10] : memref<4x8x1xf32, #tpu.memory_space<vmem>>, vector<4x8x1xf32>
    %cst_11 = arith.constant dense<0xFF800000> : vector<4x8xf32>
    %17 = vector.multi_reduction <maximumf>, %15, %cst_11 [2] : vector<4x8x8xf32> to vector<4x8xf32>
    %18 = vector.shape_cast %17 : vector<4x8xf32> to vector<4x8x1xf32>
    %19 = arith.maximumf %16, %18 : vector<4x8x1xf32>
    %20 = arith.subf %16, %19 : vector<4x8x1xf32>
    %21 = math.exp %20 : vector<4x8x1xf32>
    %22 = vector.broadcast %19 : vector<4x8x1xf32> to vector<4x8x8xf32>
    %23 = arith.subf %15, %22 : vector<4x8x8xf32>
    %24 = math.exp %23 : vector<4x8x8xf32>
    %c0_12 = arith.constant 0 : index
    %c0_13 = arith.constant 0 : index
    %c0_14 = arith.constant 0 : index
    %25 = vector.load %arg10[%c0_12, %c0_13, %c0_14] : memref<4x8x1xf32, #tpu.memory_space<vmem>>, vector<4x8x1xf32>
    %26 = arith.mulf %21, %25 : vector<4x8x1xf32>
    %cst_15 = arith.constant dense<0.000000e+00> : vector<4x8xf32>
    %27 = vector.multi_reduction <add>, %24, %cst_15 [2] : vector<4x8x8xf32> to vector<4x8xf32>
    %28 = vector.shape_cast %27 : vector<4x8xf32> to vector<4x8x1xf32>
    %29 = arith.addf %26, %28 : vector<4x8x1xf32>
    %c0_16 = arith.constant 0 : index
    %c0_17 = arith.constant 0 : index
    %c0_18 = arith.constant 0 : index
    %30 = vector.load %arg10[%c0_16, %c0_17, %c0_18] : memref<4x8x1xf32, #tpu.memory_space<vmem>>, vector<4x8x1xf32>
    tpu.vector_store %arg10[%c0_16, %c0_17, %c0_18], %29 {strides = array<i32>} : memref<4x8x1xf32, #tpu.memory_space<vmem>>, vector<4x8x1xf32>,
    %31 = arith.truncf %24 : vector<4x8x8xf32> to vector<4x8x8xbf16>
    %c0_19 = arith.constant 0 : index
    %c0_20 = arith.constant 0 : index
    %c0_21 = arith.constant 0 : index
    %32 = vector.load %arg4[%c0_19, %c0_20, %c0_21] : memref<4x8x32xbf16, #tpu.memory_space<vmem>>, vector<4x8x32xbf16>
    "tpu.trace_start"() <{level = 10 : i32, message = "bqk,bkd->bqd"}> : () -> ()
    %cst_22 = arith.constant dense<0.000000e+00> : vector<4x8x32xf32>
    %33 = tpu.matmul %31, %32, %cst_22 {dimension_numbers = #tpu.dot_dimension_numbers<[2], [1], [1], [2], [0, 0, 0, 1, 1, 2], [0], [0]>} : vector<4x8x8xbf16>, vector<4x8x32xbf16>, vector<4x8x32xf32> -> vector<4x8x32xf32>
    "tpu.trace_stop"() : () -> ()
    %c0_23 = arith.constant 0 : index
    %c0_24 = arith.constant 0 : index
    %c0_25 = arith.constant 0 : index
    %34 = vector.load %arg11[%c0_23, %c0_24, %c0_25] : memref<4x8x32xf32, #tpu.memory_space<vmem>>, vector<4x8x32xf32>
    %35 = vector.broadcast %21 : vector<4x8x1xf32> to vector<4x8x32xf32>
    %36 = arith.mulf %35, %34 : vector<4x8x32xf32>
    %37 = arith.addf %36, %33 : vector<4x8x32xf32>
    %c0_26 = arith.constant 0 : index
    %c0_27 = arith.constant 0 : index
    %c0_28 = arith.constant 0 : index
    %38 = vector.load %arg11[%c0_26, %c0_27, %c0_28] : memref<4x8x32xf32, #tpu.memory_space<vmem>>, vector<4x8x32xf32>
    tpu.vector_store %arg11[%c0_26, %c0_27, %c0_28], %37 {strides = array<i32>} : memref<4x8x32xf32, #tpu.memory_space<vmem>>, vector<4x8x32xf32>,
    %c0_29 = arith.constant 0 : index
    %c0_30 = arith.constant 0 : index
    %c0_31 = arith.constant 0 : index
    %39 = vector.load %arg9[%c0_29, %c0_30, %c0_31] : memref<4x8x1xf32, #tpu.memory_space<vmem>>, vector<4x8x1xf32>
    tpu.vector_store %arg9[%c0_29, %c0_30, %c0_31], %19 {strides = array<i32>} : memref<4x8x1xf32, #tpu.memory_space<vmem>>, vector<4x8x1xf32>,
    %c0_i32_32 = arith.constant 0 : i32
    %40 = arith.cmpi eq, %arg1, %c0_i32_32 : i32
    %41 = arith.extui %40 : i1 to i32
    %c0_i32_33 = arith.constant 0 : i32
    %42 = arith.cmpi ne, %41, %c0_i32_33 : i32
    scf.if %42 {
      %c0_34 = arith.constant 0 : index
      %c0_35 = arith.constant 0 : index
      %c0_36 = arith.constant 0 : index
      %43 = vector.load %arg11[%c0_34, %c0_35, %c0_36] : memref<4x8x32xf32, #tpu.memory_space<vmem>>, vector<4x8x32xf32>
      %c0_37 = arith.constant 0 : index
      %c0_38 = arith.constant 0 : index
      %c0_39 = arith.constant 0 : index
      %44 = vector.load %arg10[%c0_37, %c0_38, %c0_39] : memref<4x8x1xf32, #tpu.memory_space<vmem>>, vector<4x8x1xf32>
      %45 = vector.broadcast %44 : vector<4x8x1xf32> to vector<4x8x32xf32>
      %46 = arith.divf %43, %45 : vector<4x8x32xf32>
      %47 = vector.shape_cast %46 : vector<4x8x32xf32> to vector<32x32xf32>
      %48 = arith.truncf %47 : vector<32x32xf32> to vector<32x32xbf16>
      %c0_40 = arith.constant 0 : index
      %c0_41 = arith.constant 0 : index
      %49 = vector.load %arg6[%c0_40, %c0_41] : memref<32x96xbf16, #tpu.memory_space<vmem>>, vector<32x96xbf16>
      %cst_42 = arith.constant dense<0.000000e+00> : vector<32x96xf32>
      %50 = tpu.matmul %48, %49, %cst_42 {dimension_numbers = #tpu.dot_dimension_numbers<[1], [0], [0], [1], [0, 0, 1, 1], [], []>} : vector<32x32xbf16>, vector<32x96xbf16>, vector<32x96xf32> -> vector<32x96xf32>
      %c0_43 = arith.constant 0 : index
      %c0_44 = arith.constant 0 : index
      %51 = vector.load %arg7[%c0_43, %c0_44] : memref<1x96xf32, #tpu.memory_space<vmem>>, vector<1x96xf32>
      %52 = vector.broadcast %51 : vector<1x96xf32> to vector<32x96xf32>
      %53 = arith.addf %50, %52 : vector<32x96xf32>
      %54 = vector.shape_cast %53 : vector<32x96xf32> to vector<4x8x96xf32>
      %c0_45 = arith.constant 0 : index
      %c0_46 = arith.constant 0 : index
      %c0_47 = arith.constant 0 : index
      %55 = vector.load %arg8[%c0_45, %c0_46, %c0_47] : memref<4x8x96xf32, #tpu.memory_space<vmem>>, vector<4x8x96xf32>
      tpu.vector_store %arg8[%c0_45, %c0_46, %c0_47], %54 {strides = array<i32>} : memref<4x8x96xf32, #tpu.memory_space<vmem>>, vector<4x8x96xf32>,
    } else {
    }
    return
  }
  func.func @transform_0(%arg0: i32, %arg1: i32) -> (i32, i32, i32) {
    %c0_i32 = arith.constant 0 : i32
    %c0_i32_0 = arith.constant 0 : i32
    %c0_i32_1 = arith.constant 0 : i32
    return %c0_i32, %arg0, %c0_i32_0 : i32, i32, i32
  }
  func.func @transform_1(%arg0: i32, %arg1: i32) -> (i32, i32, i32) {
    %c0_i32 = arith.constant 0 : i32
    %c0_i32_0 = arith.constant 0 : i32
    %c0_i32_1 = arith.constant 0 : i32
    return %c0_i32, %arg1, %c0_i32_0 : i32, i32, i32
  }
  func.func @transform_2(%arg0: i32, %arg1: i32) -> (i32, i32, i32) {
    %c0_i32 = arith.constant 0 : i32
    %c0_i32_0 = arith.constant 0 : i32
    %c0_i32_1 = arith.constant 0 : i32
    return %c0_i32, %arg1, %c0_i32_0 : i32, i32, i32
  }
  func.func @transform_3(%arg0: i32, %arg1: i32) -> (i32, i32) {
    %c0_i32 = arith.constant 0 : i32
    %c0_i32_0 = arith.constant 0 : i32
    %c0_i32_1 = arith.constant 0 : i32
    return %c0_i32, %c0_i32_0 : i32, i32
  }
  func.func @transform_4(%arg0: i32, %arg1: i32) -> (i32, i32) {
    %c0_i32 = arith.constant 0 : i32
    %c0_i32_0 = arith.constant 0 : i32
    %c0_i32_1 = arith.constant 0 : i32
    return %c0_i32, %c0_i32_0 : i32, i32
  }
  func.func @transform_5(%arg0: i32, %arg1: i32) -> (i32, i32) {
    %c0_i32 = arith.constant 0 : i32
    %c0_i32_0 = arith.constant 0 : i32
    %c0_i32_1 = arith.constant 0 : i32
    return %c0_i32, %c0_i32_0 : i32, i32
  }
  func.func @transform_6(%arg0: i32, %arg1: i32) -> (i32, i32, i32) {
    %c0_i32 = arith.constant 0 : i32
    %c0_i32_0 = arith.constant 0 : i32
    %c0_i32_1 = arith.constant 0 : i32
    return %c0_i32, %arg0, %c0_i32_0 : i32, i32, i32
  }
}

module attributes {stable_mosaic.version = 11 : i64} {
  func.func @gru_kernel(%arg0: i32, %arg1: memref<8x4x96xf32, #tpu.memory_space<vmem>>, %arg2: memref<32x96xbf16, #tpu.memory_space<vmem>>, %arg3: memref<1x96xf32, #tpu.memory_space<vmem>>, %arg4: memref<4x32xf32, #tpu.memory_space<vmem>>, %arg5: memref<8x4x32xf32, #tpu.memory_space<vmem>>, %arg6: memref<4x32xf32, #tpu.memory_space<vmem>>) attributes {dimension_semantics = [#tpu.dimension_semantics<arbitrary>], iteration_bounds = array<i64: 1>, scalar_prefetch = 0 : i64, scratch_operands = 1 : i64, tpu.core_type = #tpu.core_type<tc>, window_params = [{transform_indices = @transform_0, window_bounds = array<i64: 8, 4, 96>}, {pipeline_mode = #tpu.pipeline_mode<synchronous>, transform_indices = @transform_1, window_bounds = array<i64: 32, 96>}, {pipeline_mode = #tpu.pipeline_mode<synchronous>, transform_indices = @transform_2, window_bounds = array<i64: 1, 96>}, {pipeline_mode = #tpu.pipeline_mode<synchronous>, transform_indices = @transform_3, window_bounds = array<i64: 4, 32>}, {transform_indices = @transform_4, window_bounds = array<i64: 8, 4, 32>}]} {
    %c0_i32 = arith.constant 0 : i32
    %0 = arith.cmpi eq, %arg0, %c0_i32 : i32
    %1 = arith.extui %0 : i1 to i32
    %c0_i32_0 = arith.constant 0 : i32
    %2 = arith.cmpi ne, %1, %c0_i32_0 : i32
    scf.if %2 {
      %c0_72 = arith.constant 0 : index
      %c0_73 = arith.constant 0 : index
      %303 = vector.load %arg4[%c0_72, %c0_73] : memref<4x32xf32, #tpu.memory_space<vmem>>, vector<4x32xf32>
      %c0_74 = arith.constant 0 : index
      %c0_75 = arith.constant 0 : index
      %304 = vector.load %arg6[%c0_74, %c0_75] : memref<4x32xf32, #tpu.memory_space<vmem>>, vector<4x32xf32>
      tpu.vector_store %arg6[%c0_74, %c0_75], %303 {strides = array<i32>} : memref<4x32xf32, #tpu.memory_space<vmem>>, vector<4x32xf32>,
    } else {
    }
    %c0 = arith.constant 0 : index
    %c0_1 = arith.constant 0 : index
    %3 = vector.load %arg2[%c0, %c0_1] : memref<32x96xbf16, #tpu.memory_space<vmem>>, vector<32x96xbf16>
    %c0_2 = arith.constant 0 : index
    %c0_3 = arith.constant 0 : index
    %4 = vector.load %arg3[%c0_2, %c0_3] : memref<1x96xf32, #tpu.memory_space<vmem>>, vector<1x96xf32>
    %c0_4 = arith.constant 0 : index
    %c0_5 = arith.constant 0 : index
    %5 = vector.load %arg6[%c0_4, %c0_5] : memref<4x32xf32, #tpu.memory_space<vmem>>, vector<4x32xf32>
    %c0_i32_6 = arith.constant 0 : i32
    %6 = arith.index_cast %c0_i32_6 : i32 to index
    %c0_7 = arith.constant 0 : index
    %c0_8 = arith.constant 0 : index
    %7 = vector.load %arg1[%6, %c0_7, %c0_8] : memref<8x4x96xf32, #tpu.memory_space<vmem>>, vector<1x4x96xf32>
    %8 = vector.shape_cast %7 : vector<1x4x96xf32> to vector<4x96xf32>
    %9 = arith.truncf %5 : vector<4x32xf32> to vector<4x32xbf16>
    %cst = arith.constant dense<0.000000e+00> : vector<4x96xf32>
    %10 = tpu.matmul %9, %3, %cst {dimension_numbers = #tpu.dot_dimension_numbers<[1], [0], [0], [1], [0, 0, 1, 1], [], []>} : vector<4x32xbf16>, vector<32x96xbf16>, vector<4x96xf32> -> vector<4x96xf32>
    %11 = vector.broadcast %4 : vector<1x96xf32> to vector<4x96xf32>
    %12 = arith.addf %10, %11 : vector<4x96xf32>
    %13 = vector.extract_strided_slice %8 {offsets = [0, 0], sizes = [4, 32], strides = [1, 1]} : vector<4x96xf32> to vector<4x32xf32>
    %14 = vector.extract_strided_slice %12 {offsets = [0, 0], sizes = [4, 32], strides = [1, 1]} : vector<4x96xf32> to vector<4x32xf32>
    %15 = arith.addf %13, %14 : vector<4x32xf32>
    %16 = arith.negf %15 : vector<4x32xf32>
    %17 = math.exp %16 : vector<4x32xf32>
    %cst_9 = arith.constant 1.000000e+00 : f32
    %18 = vector.broadcast %cst_9 : f32 to vector<4x32xf32>
    %19 = arith.addf %18, %17 : vector<4x32xf32>
    %20 = arith.divf %18, %19 : vector<4x32xf32>
    %21 = vector.extract_strided_slice %8 {offsets = [0, 32], sizes = [4, 32], strides = [1, 1]} : vector<4x96xf32> to vector<4x32xf32>
    %22 = vector.extract_strided_slice %12 {offsets = [0, 32], sizes = [4, 32], strides = [1, 1]} : vector<4x96xf32> to vector<4x32xf32>
    %23 = arith.addf %21, %22 : vector<4x32xf32>
    %24 = arith.negf %23 : vector<4x32xf32>
    %25 = math.exp %24 : vector<4x32xf32>
    %cst_10 = arith.constant 1.000000e+00 : f32
    %26 = vector.broadcast %cst_10 : f32 to vector<4x32xf32>
    %27 = arith.addf %26, %25 : vector<4x32xf32>
    %28 = arith.divf %26, %27 : vector<4x32xf32>
    %29 = vector.extract_strided_slice %8 {offsets = [0, 64], sizes = [4, 32], strides = [1, 1]} : vector<4x96xf32> to vector<4x32xf32>
    %30 = vector.extract_strided_slice %12 {offsets = [0, 64], sizes = [4, 32], strides = [1, 1]} : vector<4x96xf32> to vector<4x32xf32>
    %31 = arith.mulf %20, %30 : vector<4x32xf32>
    %32 = arith.addf %29, %31 : vector<4x32xf32>
    %33 = math.tanh %32 : vector<4x32xf32>
    %cst_11 = arith.constant 1.000000e+00 : f32
    %34 = vector.broadcast %cst_11 : f32 to vector<4x32xf32>
    %35 = arith.subf %34, %28 : vector<4x32xf32>
    %36 = arith.mulf %35, %33 : vector<4x32xf32>
    %37 = arith.mulf %28, %5 : vector<4x32xf32>
    %38 = arith.addf %36, %37 : vector<4x32xf32>
    %39 = arith.index_cast %c0_i32_6 : i32 to index
    %c0_12 = arith.constant 0 : index
    %c0_13 = arith.constant 0 : index
    %40 = vector.load %arg5[%39, %c0_12, %c0_13] : memref<8x4x32xf32, #tpu.memory_space<vmem>>, vector<1x4x32xf32>
    %41 = vector.shape_cast %40 : vector<1x4x32xf32> to vector<4x32xf32>
    %42 = vector.shape_cast %38 : vector<4x32xf32> to vector<1x4x32xf32>
    tpu.vector_store %arg5[%39, %c0_12, %c0_13], %42 {strides = array<i32>} : memref<8x4x32xf32, #tpu.memory_space<vmem>>, vector<1x4x32xf32>,
    %c1_i32 = arith.constant 1 : i32
    %43 = arith.index_cast %c1_i32 : i32 to index
    %c0_14 = arith.constant 0 : index
    %c0_15 = arith.constant 0 : index
    %44 = vector.load %arg1[%43, %c0_14, %c0_15] : memref<8x4x96xf32, #tpu.memory_space<vmem>>, vector<1x4x96xf32>
    %45 = vector.shape_cast %44 : vector<1x4x96xf32> to vector<4x96xf32>
    %46 = arith.truncf %38 : vector<4x32xf32> to vector<4x32xbf16>
    %cst_16 = arith.constant dense<0.000000e+00> : vector<4x96xf32>
    %47 = tpu.matmul %46, %3, %cst_16 {dimension_numbers = #tpu.dot_dimension_numbers<[1], [0], [0], [1], [0, 0, 1, 1], [], []>} : vector<4x32xbf16>, vector<32x96xbf16>, vector<4x96xf32> -> vector<4x96xf32>
    %48 = vector.broadcast %4 : vector<1x96xf32> to vector<4x96xf32>
    %49 = arith.addf %47, %48 : vector<4x96xf32>
    %50 = vector.extract_strided_slice %45 {offsets = [0, 0], sizes = [4, 32], strides = [1, 1]} : vector<4x96xf32> to vector<4x32xf32>
    %51 = vector.extract_strided_slice %49 {offsets = [0, 0], sizes = [4, 32], strides = [1, 1]} : vector<4x96xf32> to vector<4x32xf32>
    %52 = arith.addf %50, %51 : vector<4x32xf32>
    %53 = arith.negf %52 : vector<4x32xf32>
    %54 = math.exp %53 : vector<4x32xf32>
    %cst_17 = arith.constant 1.000000e+00 : f32
    %55 = vector.broadcast %cst_17 : f32 to vector<4x32xf32>
    %56 = arith.addf %55, %54 : vector<4x32xf32>
    %57 = arith.divf %55, %56 : vector<4x32xf32>
    %58 = vector.extract_strided_slice %45 {offsets = [0, 32], sizes = [4, 32], strides = [1, 1]} : vector<4x96xf32> to vector<4x32xf32>
    %59 = vector.extract_strided_slice %49 {offsets = [0, 32], sizes = [4, 32], strides = [1, 1]} : vector<4x96xf32> to vector<4x32xf32>
    %60 = arith.addf %58, %59 : vector<4x32xf32>
    %61 = arith.negf %60 : vector<4x32xf32>
    %62 = math.exp %61 : vector<4x32xf32>
    %cst_18 = arith.constant 1.000000e+00 : f32
    %63 = vector.broadcast %cst_18 : f32 to vector<4x32xf32>
    %64 = arith.addf %63, %62 : vector<4x32xf32>
    %65 = arith.divf %63, %64 : vector<4x32xf32>
    %66 = vector.extract_strided_slice %45 {offsets = [0, 64], sizes = [4, 32], strides = [1, 1]} : vector<4x96xf32> to vector<4x32xf32>
    %67 = vector.extract_strided_slice %49 {offsets = [0, 64], sizes = [4, 32], strides = [1, 1]} : vector<4x96xf32> to vector<4x32xf32>
    %68 = arith.mulf %57, %67 : vector<4x32xf32>
    %69 = arith.addf %66, %68 : vector<4x32xf32>
    %70 = math.tanh %69 : vector<4x32xf32>
    %cst_19 = arith.constant 1.000000e+00 : f32
    %71 = vector.broadcast %cst_19 : f32 to vector<4x32xf32>
    %72 = arith.subf %71, %65 : vector<4x32xf32>
    %73 = arith.mulf %72, %70 : vector<4x32xf32>
    %74 = arith.mulf %65, %38 : vector<4x32xf32>
    %75 = arith.addf %73, %74 : vector<4x32xf32>
    %76 = arith.index_cast %c1_i32 : i32 to index
    %c0_20 = arith.constant 0 : index
    %c0_21 = arith.constant 0 : index
    %77 = vector.load %arg5[%76, %c0_20, %c0_21] : memref<8x4x32xf32, #tpu.memory_space<vmem>>, vector<1x4x32xf32>
    %78 = vector.shape_cast %77 : vector<1x4x32xf32> to vector<4x32xf32>
    %79 = vector.shape_cast %75 : vector<4x32xf32> to vector<1x4x32xf32>
    tpu.vector_store %arg5[%76, %c0_20, %c0_21], %79 {strides = array<i32>} : memref<8x4x32xf32, #tpu.memory_space<vmem>>, vector<1x4x32xf32>,
    %c2_i32 = arith.constant 2 : i32
    %80 = arith.index_cast %c2_i32 : i32 to index
    %c0_22 = arith.constant 0 : index
    %c0_23 = arith.constant 0 : index
    %81 = vector.load %arg1[%80, %c0_22, %c0_23] : memref<8x4x96xf32, #tpu.memory_space<vmem>>, vector<1x4x96xf32>
    %82 = vector.shape_cast %81 : vector<1x4x96xf32> to vector<4x96xf32>
    %83 = arith.truncf %75 : vector<4x32xf32> to vector<4x32xbf16>
    %cst_24 = arith.constant dense<0.000000e+00> : vector<4x96xf32>
    %84 = tpu.matmul %83, %3, %cst_24 {dimension_numbers = #tpu.dot_dimension_numbers<[1], [0], [0], [1], [0, 0, 1, 1], [], []>} : vector<4x32xbf16>, vector<32x96xbf16>, vector<4x96xf32> -> vector<4x96xf32>
    %85 = vector.broadcast %4 : vector<1x96xf32> to vector<4x96xf32>
    %86 = arith.addf %84, %85 : vector<4x96xf32>
    %87 = vector.extract_strided_slice %82 {offsets = [0, 0], sizes = [4, 32], strides = [1, 1]} : vector<4x96xf32> to vector<4x32xf32>
    %88 = vector.extract_strided_slice %86 {offsets = [0, 0], sizes = [4, 32], strides = [1, 1]} : vector<4x96xf32> to vector<4x32xf32>
    %89 = arith.addf %87, %88 : vector<4x32xf32>
    %90 = arith.negf %89 : vector<4x32xf32>
    %91 = math.exp %90 : vector<4x32xf32>
    %cst_25 = arith.constant 1.000000e+00 : f32
    %92 = vector.broadcast %cst_25 : f32 to vector<4x32xf32>
    %93 = arith.addf %92, %91 : vector<4x32xf32>
    %94 = arith.divf %92, %93 : vector<4x32xf32>
    %95 = vector.extract_strided_slice %82 {offsets = [0, 32], sizes = [4, 32], strides = [1, 1]} : vector<4x96xf32> to vector<4x32xf32>
    %96 = vector.extract_strided_slice %86 {offsets = [0, 32], sizes = [4, 32], strides = [1, 1]} : vector<4x96xf32> to vector<4x32xf32>
    %97 = arith.addf %95, %96 : vector<4x32xf32>
    %98 = arith.negf %97 : vector<4x32xf32>
    %99 = math.exp %98 : vector<4x32xf32>
    %cst_26 = arith.constant 1.000000e+00 : f32
    %100 = vector.broadcast %cst_26 : f32 to vector<4x32xf32>
    %101 = arith.addf %100, %99 : vector<4x32xf32>
    %102 = arith.divf %100, %101 : vector<4x32xf32>
    %103 = vector.extract_strided_slice %82 {offsets = [0, 64], sizes = [4, 32], strides = [1, 1]} : vector<4x96xf32> to vector<4x32xf32>
    %104 = vector.extract_strided_slice %86 {offsets = [0, 64], sizes = [4, 32], strides = [1, 1]} : vector<4x96xf32> to vector<4x32xf32>
    %105 = arith.mulf %94, %104 : vector<4x32xf32>
    %106 = arith.addf %103, %105 : vector<4x32xf32>
    %107 = math.tanh %106 : vector<4x32xf32>
    %cst_27 = arith.constant 1.000000e+00 : f32
    %108 = vector.broadcast %cst_27 : f32 to vector<4x32xf32>
    %109 = arith.subf %108, %102 : vector<4x32xf32>
    %110 = arith.mulf %109, %107 : vector<4x32xf32>
    %111 = arith.mulf %102, %75 : vector<4x32xf32>
    %112 = arith.addf %110, %111 : vector<4x32xf32>
    %113 = arith.index_cast %c2_i32 : i32 to index
    %c0_28 = arith.constant 0 : index
    %c0_29 = arith.constant 0 : index
    %114 = vector.load %arg5[%113, %c0_28, %c0_29] : memref<8x4x32xf32, #tpu.memory_space<vmem>>, vector<1x4x32xf32>
    %115 = vector.shape_cast %114 : vector<1x4x32xf32> to vector<4x32xf32>
    %116 = vector.shape_cast %112 : vector<4x32xf32> to vector<1x4x32xf32>
    tpu.vector_store %arg5[%113, %c0_28, %c0_29], %116 {strides = array<i32>} : memref<8x4x32xf32, #tpu.memory_space<vmem>>, vector<1x4x32xf32>,
    %c3_i32 = arith.constant 3 : i32
    %117 = arith.index_cast %c3_i32 : i32 to index
    %c0_30 = arith.constant 0 : index
    %c0_31 = arith.constant 0 : index
    %118 = vector.load %arg1[%117, %c0_30, %c0_31] : memref<8x4x96xf32, #tpu.memory_space<vmem>>, vector<1x4x96xf32>
    %119 = vector.shape_cast %118 : vector<1x4x96xf32> to vector<4x96xf32>
    %120 = arith.truncf %112 : vector<4x32xf32> to vector<4x32xbf16>
    %cst_32 = arith.constant dense<0.000000e+00> : vector<4x96xf32>
    %121 = tpu.matmul %120, %3, %cst_32 {dimension_numbers = #tpu.dot_dimension_numbers<[1], [0], [0], [1], [0, 0, 1, 1], [], []>} : vector<4x32xbf16>, vector<32x96xbf16>, vector<4x96xf32> -> vector<4x96xf32>
    %122 = vector.broadcast %4 : vector<1x96xf32> to vector<4x96xf32>
    %123 = arith.addf %121, %122 : vector<4x96xf32>
    %124 = vector.extract_strided_slice %119 {offsets = [0, 0], sizes = [4, 32], strides = [1, 1]} : vector<4x96xf32> to vector<4x32xf32>
    %125 = vector.extract_strided_slice %123 {offsets = [0, 0], sizes = [4, 32], strides = [1, 1]} : vector<4x96xf32> to vector<4x32xf32>
    %126 = arith.addf %124, %125 : vector<4x32xf32>
    %127 = arith.negf %126 : vector<4x32xf32>
    %128 = math.exp %127 : vector<4x32xf32>
    %cst_33 = arith.constant 1.000000e+00 : f32
    %129 = vector.broadcast %cst_33 : f32 to vector<4x32xf32>
    %130 = arith.addf %129, %128 : vector<4x32xf32>
    %131 = arith.divf %129, %130 : vector<4x32xf32>
    %132 = vector.extract_strided_slice %119 {offsets = [0, 32], sizes = [4, 32], strides = [1, 1]} : vector<4x96xf32> to vector<4x32xf32>
    %133 = vector.extract_strided_slice %123 {offsets = [0, 32], sizes = [4, 32], strides = [1, 1]} : vector<4x96xf32> to vector<4x32xf32>
    %134 = arith.addf %132, %133 : vector<4x32xf32>
    %135 = arith.negf %134 : vector<4x32xf32>
    %136 = math.exp %135 : vector<4x32xf32>
    %cst_34 = arith.constant 1.000000e+00 : f32
    %137 = vector.broadcast %cst_34 : f32 to vector<4x32xf32>
    %138 = arith.addf %137, %136 : vector<4x32xf32>
    %139 = arith.divf %137, %138 : vector<4x32xf32>
    %140 = vector.extract_strided_slice %119 {offsets = [0, 64], sizes = [4, 32], strides = [1, 1]} : vector<4x96xf32> to vector<4x32xf32>
    %141 = vector.extract_strided_slice %123 {offsets = [0, 64], sizes = [4, 32], strides = [1, 1]} : vector<4x96xf32> to vector<4x32xf32>
    %142 = arith.mulf %131, %141 : vector<4x32xf32>
    %143 = arith.addf %140, %142 : vector<4x32xf32>
    %144 = math.tanh %143 : vector<4x32xf32>
    %cst_35 = arith.constant 1.000000e+00 : f32
    %145 = vector.broadcast %cst_35 : f32 to vector<4x32xf32>
    %146 = arith.subf %145, %139 : vector<4x32xf32>
    %147 = arith.mulf %146, %144 : vector<4x32xf32>
    %148 = arith.mulf %139, %112 : vector<4x32xf32>
    %149 = arith.addf %147, %148 : vector<4x32xf32>
    %150 = arith.index_cast %c3_i32 : i32 to index
    %c0_36 = arith.constant 0 : index
    %c0_37 = arith.constant 0 : index
    %151 = vector.load %arg5[%150, %c0_36, %c0_37] : memref<8x4x32xf32, #tpu.memory_space<vmem>>, vector<1x4x32xf32>
    %152 = vector.shape_cast %151 : vector<1x4x32xf32> to vector<4x32xf32>
    %153 = vector.shape_cast %149 : vector<4x32xf32> to vector<1x4x32xf32>
    tpu.vector_store %arg5[%150, %c0_36, %c0_37], %153 {strides = array<i32>} : memref<8x4x32xf32, #tpu.memory_space<vmem>>, vector<1x4x32xf32>,
    %c4_i32 = arith.constant 4 : i32
    %154 = arith.index_cast %c4_i32 : i32 to index
    %c0_38 = arith.constant 0 : index
    %c0_39 = arith.constant 0 : index
    %155 = vector.load %arg1[%154, %c0_38, %c0_39] : memref<8x4x96xf32, #tpu.memory_space<vmem>>, vector<1x4x96xf32>
    %156 = vector.shape_cast %155 : vector<1x4x96xf32> to vector<4x96xf32>
    %157 = arith.truncf %149 : vector<4x32xf32> to vector<4x32xbf16>
    %cst_40 = arith.constant dense<0.000000e+00> : vector<4x96xf32>
    %158 = tpu.matmul %157, %3, %cst_40 {dimension_numbers = #tpu.dot_dimension_numbers<[1], [0], [0], [1], [0, 0, 1, 1], [], []>} : vector<4x32xbf16>, vector<32x96xbf16>, vector<4x96xf32> -> vector<4x96xf32>
    %159 = vector.broadcast %4 : vector<1x96xf32> to vector<4x96xf32>
    %160 = arith.addf %158, %159 : vector<4x96xf32>
    %161 = vector.extract_strided_slice %156 {offsets = [0, 0], sizes = [4, 32], strides = [1, 1]} : vector<4x96xf32> to vector<4x32xf32>
    %162 = vector.extract_strided_slice %160 {offsets = [0, 0], sizes = [4, 32], strides = [1, 1]} : vector<4x96xf32> to vector<4x32xf32>
    %163 = arith.addf %161, %162 : vector<4x32xf32>
    %164 = arith.negf %163 : vector<4x32xf32>
    %165 = math.exp %164 : vector<4x32xf32>
    %cst_41 = arith.constant 1.000000e+00 : f32
    %166 = vector.broadcast %cst_41 : f32 to vector<4x32xf32>
    %167 = arith.addf %166, %165 : vector<4x32xf32>
    %168 = arith.divf %166, %167 : vector<4x32xf32>
    %169 = vector.extract_strided_slice %156 {offsets = [0, 32], sizes = [4, 32], strides = [1, 1]} : vector<4x96xf32> to vector<4x32xf32>
    %170 = vector.extract_strided_slice %160 {offsets = [0, 32], sizes = [4, 32], strides = [1, 1]} : vector<4x96xf32> to vector<4x32xf32>
    %171 = arith.addf %169, %170 : vector<4x32xf32>
    %172 = arith.negf %171 : vector<4x32xf32>
    %173 = math.exp %172 : vector<4x32xf32>
    %cst_42 = arith.constant 1.000000e+00 : f32
    %174 = vector.broadcast %cst_42 : f32 to vector<4x32xf32>
    %175 = arith.addf %174, %173 : vector<4x32xf32>
    %176 = arith.divf %174, %175 : vector<4x32xf32>
    %177 = vector.extract_strided_slice %156 {offsets = [0, 64], sizes = [4, 32], strides = [1, 1]} : vector<4x96xf32> to vector<4x32xf32>
    %178 = vector.extract_strided_slice %160 {offsets = [0, 64], sizes = [4, 32], strides = [1, 1]} : vector<4x96xf32> to vector<4x32xf32>
    %179 = arith.mulf %168, %178 : vector<4x32xf32>
    %180 = arith.addf %177, %179 : vector<4x32xf32>
    %181 = math.tanh %180 : vector<4x32xf32>
    %cst_43 = arith.constant 1.000000e+00 : f32
    %182 = vector.broadcast %cst_43 : f32 to vector<4x32xf32>
    %183 = arith.subf %182, %176 : vector<4x32xf32>
    %184 = arith.mulf %183, %181 : vector<4x32xf32>
    %185 = arith.mulf %176, %149 : vector<4x32xf32>
    %186 = arith.addf %184, %185 : vector<4x32xf32>
    %187 = arith.index_cast %c4_i32 : i32 to index
    %c0_44 = arith.constant 0 : index
    %c0_45 = arith.constant 0 : index
    %188 = vector.load %arg5[%187, %c0_44, %c0_45] : memref<8x4x32xf32, #tpu.memory_space<vmem>>, vector<1x4x32xf32>
    %189 = vector.shape_cast %188 : vector<1x4x32xf32> to vector<4x32xf32>
    %190 = vector.shape_cast %186 : vector<4x32xf32> to vector<1x4x32xf32>
    tpu.vector_store %arg5[%187, %c0_44, %c0_45], %190 {strides = array<i32>} : memref<8x4x32xf32, #tpu.memory_space<vmem>>, vector<1x4x32xf32>,
    %c5_i32 = arith.constant 5 : i32
    %191 = arith.index_cast %c5_i32 : i32 to index
    %c0_46 = arith.constant 0 : index
    %c0_47 = arith.constant 0 : index
    %192 = vector.load %arg1[%191, %c0_46, %c0_47] : memref<8x4x96xf32, #tpu.memory_space<vmem>>, vector<1x4x96xf32>
    %193 = vector.shape_cast %192 : vector<1x4x96xf32> to vector<4x96xf32>
    %194 = arith.truncf %186 : vector<4x32xf32> to vector<4x32xbf16>
    %cst_48 = arith.constant dense<0.000000e+00> : vector<4x96xf32>
    %195 = tpu.matmul %194, %3, %cst_48 {dimension_numbers = #tpu.dot_dimension_numbers<[1], [0], [0], [1], [0, 0, 1, 1], [], []>} : vector<4x32xbf16>, vector<32x96xbf16>, vector<4x96xf32> -> vector<4x96xf32>
    %196 = vector.broadcast %4 : vector<1x96xf32> to vector<4x96xf32>
    %197 = arith.addf %195, %196 : vector<4x96xf32>
    %198 = vector.extract_strided_slice %193 {offsets = [0, 0], sizes = [4, 32], strides = [1, 1]} : vector<4x96xf32> to vector<4x32xf32>
    %199 = vector.extract_strided_slice %197 {offsets = [0, 0], sizes = [4, 32], strides = [1, 1]} : vector<4x96xf32> to vector<4x32xf32>
    %200 = arith.addf %198, %199 : vector<4x32xf32>
    %201 = arith.negf %200 : vector<4x32xf32>
    %202 = math.exp %201 : vector<4x32xf32>
    %cst_49 = arith.constant 1.000000e+00 : f32
    %203 = vector.broadcast %cst_49 : f32 to vector<4x32xf32>
    %204 = arith.addf %203, %202 : vector<4x32xf32>
    %205 = arith.divf %203, %204 : vector<4x32xf32>
    %206 = vector.extract_strided_slice %193 {offsets = [0, 32], sizes = [4, 32], strides = [1, 1]} : vector<4x96xf32> to vector<4x32xf32>
    %207 = vector.extract_strided_slice %197 {offsets = [0, 32], sizes = [4, 32], strides = [1, 1]} : vector<4x96xf32> to vector<4x32xf32>
    %208 = arith.addf %206, %207 : vector<4x32xf32>
    %209 = arith.negf %208 : vector<4x32xf32>
    %210 = math.exp %209 : vector<4x32xf32>
    %cst_50 = arith.constant 1.000000e+00 : f32
    %211 = vector.broadcast %cst_50 : f32 to vector<4x32xf32>
    %212 = arith.addf %211, %210 : vector<4x32xf32>
    %213 = arith.divf %211, %212 : vector<4x32xf32>
    %214 = vector.extract_strided_slice %193 {offsets = [0, 64], sizes = [4, 32], strides = [1, 1]} : vector<4x96xf32> to vector<4x32xf32>
    %215 = vector.extract_strided_slice %197 {offsets = [0, 64], sizes = [4, 32], strides = [1, 1]} : vector<4x96xf32> to vector<4x32xf32>
    %216 = arith.mulf %205, %215 : vector<4x32xf32>
    %217 = arith.addf %214, %216 : vector<4x32xf32>
    %218 = math.tanh %217 : vector<4x32xf32>
    %cst_51 = arith.constant 1.000000e+00 : f32
    %219 = vector.broadcast %cst_51 : f32 to vector<4x32xf32>
    %220 = arith.subf %219, %213 : vector<4x32xf32>
    %221 = arith.mulf %220, %218 : vector<4x32xf32>
    %222 = arith.mulf %213, %186 : vector<4x32xf32>
    %223 = arith.addf %221, %222 : vector<4x32xf32>
    %224 = arith.index_cast %c5_i32 : i32 to index
    %c0_52 = arith.constant 0 : index
    %c0_53 = arith.constant 0 : index
    %225 = vector.load %arg5[%224, %c0_52, %c0_53] : memref<8x4x32xf32, #tpu.memory_space<vmem>>, vector<1x4x32xf32>
    %226 = vector.shape_cast %225 : vector<1x4x32xf32> to vector<4x32xf32>
    %227 = vector.shape_cast %223 : vector<4x32xf32> to vector<1x4x32xf32>
    tpu.vector_store %arg5[%224, %c0_52, %c0_53], %227 {strides = array<i32>} : memref<8x4x32xf32, #tpu.memory_space<vmem>>, vector<1x4x32xf32>,
    %c6_i32 = arith.constant 6 : i32
    %228 = arith.index_cast %c6_i32 : i32 to index
    %c0_54 = arith.constant 0 : index
    %c0_55 = arith.constant 0 : index
    %229 = vector.load %arg1[%228, %c0_54, %c0_55] : memref<8x4x96xf32, #tpu.memory_space<vmem>>, vector<1x4x96xf32>
    %230 = vector.shape_cast %229 : vector<1x4x96xf32> to vector<4x96xf32>
    %231 = arith.truncf %223 : vector<4x32xf32> to vector<4x32xbf16>
    %cst_56 = arith.constant dense<0.000000e+00> : vector<4x96xf32>
    %232 = tpu.matmul %231, %3, %cst_56 {dimension_numbers = #tpu.dot_dimension_numbers<[1], [0], [0], [1], [0, 0, 1, 1], [], []>} : vector<4x32xbf16>, vector<32x96xbf16>, vector<4x96xf32> -> vector<4x96xf32>
    %233 = vector.broadcast %4 : vector<1x96xf32> to vector<4x96xf32>
    %234 = arith.addf %232, %233 : vector<4x96xf32>
    %235 = vector.extract_strided_slice %230 {offsets = [0, 0], sizes = [4, 32], strides = [1, 1]} : vector<4x96xf32> to vector<4x32xf32>
    %236 = vector.extract_strided_slice %234 {offsets = [0, 0], sizes = [4, 32], strides = [1, 1]} : vector<4x96xf32> to vector<4x32xf32>
    %237 = arith.addf %235, %236 : vector<4x32xf32>
    %238 = arith.negf %237 : vector<4x32xf32>
    %239 = math.exp %238 : vector<4x32xf32>
    %cst_57 = arith.constant 1.000000e+00 : f32
    %240 = vector.broadcast %cst_57 : f32 to vector<4x32xf32>
    %241 = arith.addf %240, %239 : vector<4x32xf32>
    %242 = arith.divf %240, %241 : vector<4x32xf32>
    %243 = vector.extract_strided_slice %230 {offsets = [0, 32], sizes = [4, 32], strides = [1, 1]} : vector<4x96xf32> to vector<4x32xf32>
    %244 = vector.extract_strided_slice %234 {offsets = [0, 32], sizes = [4, 32], strides = [1, 1]} : vector<4x96xf32> to vector<4x32xf32>
    %245 = arith.addf %243, %244 : vector<4x32xf32>
    %246 = arith.negf %245 : vector<4x32xf32>
    %247 = math.exp %246 : vector<4x32xf32>
    %cst_58 = arith.constant 1.000000e+00 : f32
    %248 = vector.broadcast %cst_58 : f32 to vector<4x32xf32>
    %249 = arith.addf %248, %247 : vector<4x32xf32>
    %250 = arith.divf %248, %249 : vector<4x32xf32>
    %251 = vector.extract_strided_slice %230 {offsets = [0, 64], sizes = [4, 32], strides = [1, 1]} : vector<4x96xf32> to vector<4x32xf32>
    %252 = vector.extract_strided_slice %234 {offsets = [0, 64], sizes = [4, 32], strides = [1, 1]} : vector<4x96xf32> to vector<4x32xf32>
    %253 = arith.mulf %242, %252 : vector<4x32xf32>
    %254 = arith.addf %251, %253 : vector<4x32xf32>
    %255 = math.tanh %254 : vector<4x32xf32>
    %cst_59 = arith.constant 1.000000e+00 : f32
    %256 = vector.broadcast %cst_59 : f32 to vector<4x32xf32>
    %257 = arith.subf %256, %250 : vector<4x32xf32>
    %258 = arith.mulf %257, %255 : vector<4x32xf32>
    %259 = arith.mulf %250, %223 : vector<4x32xf32>
    %260 = arith.addf %258, %259 : vector<4x32xf32>
    %261 = arith.index_cast %c6_i32 : i32 to index
    %c0_60 = arith.constant 0 : index
    %c0_61 = arith.constant 0 : index
    %262 = vector.load %arg5[%261, %c0_60, %c0_61] : memref<8x4x32xf32, #tpu.memory_space<vmem>>, vector<1x4x32xf32>
    %263 = vector.shape_cast %262 : vector<1x4x32xf32> to vector<4x32xf32>
    %264 = vector.shape_cast %260 : vector<4x32xf32> to vector<1x4x32xf32>
    tpu.vector_store %arg5[%261, %c0_60, %c0_61], %264 {strides = array<i32>} : memref<8x4x32xf32, #tpu.memory_space<vmem>>, vector<1x4x32xf32>,
    %c7_i32 = arith.constant 7 : i32
    %265 = arith.index_cast %c7_i32 : i32 to index
    %c0_62 = arith.constant 0 : index
    %c0_63 = arith.constant 0 : index
    %266 = vector.load %arg1[%265, %c0_62, %c0_63] : memref<8x4x96xf32, #tpu.memory_space<vmem>>, vector<1x4x96xf32>
    %267 = vector.shape_cast %266 : vector<1x4x96xf32> to vector<4x96xf32>
    %268 = arith.truncf %260 : vector<4x32xf32> to vector<4x32xbf16>
    %cst_64 = arith.constant dense<0.000000e+00> : vector<4x96xf32>
    %269 = tpu.matmul %268, %3, %cst_64 {dimension_numbers = #tpu.dot_dimension_numbers<[1], [0], [0], [1], [0, 0, 1, 1], [], []>} : vector<4x32xbf16>, vector<32x96xbf16>, vector<4x96xf32> -> vector<4x96xf32>
    %270 = vector.broadcast %4 : vector<1x96xf32> to vector<4x96xf32>
    %271 = arith.addf %269, %270 : vector<4x96xf32>
    %272 = vector.extract_strided_slice %267 {offsets = [0, 0], sizes = [4, 32], strides = [1, 1]} : vector<4x96xf32> to vector<4x32xf32>
    %273 = vector.extract_strided_slice %271 {offsets = [0, 0], sizes = [4, 32], strides = [1, 1]} : vector<4x96xf32> to vector<4x32xf32>
    %274 = arith.addf %272, %273 : vector<4x32xf32>
    %275 = arith.negf %274 : vector<4x32xf32>
    %276 = math.exp %275 : vector<4x32xf32>
    %cst_65 = arith.constant 1.000000e+00 : f32
    %277 = vector.broadcast %cst_65 : f32 to vector<4x32xf32>
    %278 = arith.addf %277, %276 : vector<4x32xf32>
    %279 = arith.divf %277, %278 : vector<4x32xf32>
    %280 = vector.extract_strided_slice %267 {offsets = [0, 32], sizes = [4, 32], strides = [1, 1]} : vector<4x96xf32> to vector<4x32xf32>
    %281 = vector.extract_strided_slice %271 {offsets = [0, 32], sizes = [4, 32], strides = [1, 1]} : vector<4x96xf32> to vector<4x32xf32>
    %282 = arith.addf %280, %281 : vector<4x32xf32>
    %283 = arith.negf %282 : vector<4x32xf32>
    %284 = math.exp %283 : vector<4x32xf32>
    %cst_66 = arith.constant 1.000000e+00 : f32
    %285 = vector.broadcast %cst_66 : f32 to vector<4x32xf32>
    %286 = arith.addf %285, %284 : vector<4x32xf32>
    %287 = arith.divf %285, %286 : vector<4x32xf32>
    %288 = vector.extract_strided_slice %267 {offsets = [0, 64], sizes = [4, 32], strides = [1, 1]} : vector<4x96xf32> to vector<4x32xf32>
    %289 = vector.extract_strided_slice %271 {offsets = [0, 64], sizes = [4, 32], strides = [1, 1]} : vector<4x96xf32> to vector<4x32xf32>
    %290 = arith.mulf %279, %289 : vector<4x32xf32>
    %291 = arith.addf %288, %290 : vector<4x32xf32>
    %292 = math.tanh %291 : vector<4x32xf32>
    %cst_67 = arith.constant 1.000000e+00 : f32
    %293 = vector.broadcast %cst_67 : f32 to vector<4x32xf32>
    %294 = arith.subf %293, %287 : vector<4x32xf32>
    %295 = arith.mulf %294, %292 : vector<4x32xf32>
    %296 = arith.mulf %287, %260 : vector<4x32xf32>
    %297 = arith.addf %295, %296 : vector<4x32xf32>
    %298 = arith.index_cast %c7_i32 : i32 to index
    %c0_68 = arith.constant 0 : index
    %c0_69 = arith.constant 0 : index
    %299 = vector.load %arg5[%298, %c0_68, %c0_69] : memref<8x4x32xf32, #tpu.memory_space<vmem>>, vector<1x4x32xf32>
    %300 = vector.shape_cast %299 : vector<1x4x32xf32> to vector<4x32xf32>
    %301 = vector.shape_cast %297 : vector<4x32xf32> to vector<1x4x32xf32>
    tpu.vector_store %arg5[%298, %c0_68, %c0_69], %301 {strides = array<i32>} : memref<8x4x32xf32, #tpu.memory_space<vmem>>, vector<1x4x32xf32>,
    %c8_i32 = arith.constant 8 : i32
    %c0_70 = arith.constant 0 : index
    %c0_71 = arith.constant 0 : index
    %302 = vector.load %arg6[%c0_70, %c0_71] : memref<4x32xf32, #tpu.memory_space<vmem>>, vector<4x32xf32>
    tpu.vector_store %arg6[%c0_70, %c0_71], %297 {strides = array<i32>} : memref<4x32xf32, #tpu.memory_space<vmem>>, vector<4x32xf32>,
    return
  }
  func.func @transform_0(%arg0: i32) -> (i32, i32, i32) {
    %c0_i32 = arith.constant 0 : i32
    %c0_i32_0 = arith.constant 0 : i32
    %c0_i32_1 = arith.constant 0 : i32
    return %arg0, %c0_i32, %c0_i32_0 : i32, i32, i32
  }
  func.func @transform_1(%arg0: i32) -> (i32, i32) {
    %c0_i32 = arith.constant 0 : i32
    %c0_i32_0 = arith.constant 0 : i32
    %c0_i32_1 = arith.constant 0 : i32
    return %c0_i32, %c0_i32_0 : i32, i32
  }
  func.func @transform_2(%arg0: i32) -> (i32, i32) {
    %c0_i32 = arith.constant 0 : i32
    %c0_i32_0 = arith.constant 0 : i32
    %c0_i32_1 = arith.constant 0 : i32
    return %c0_i32, %c0_i32_0 : i32, i32
  }
  func.func @transform_3(%arg0: i32) -> (i32, i32) {
    %c0_i32 = arith.constant 0 : i32
    %c0_i32_0 = arith.constant 0 : i32
    %c0_i32_1 = arith.constant 0 : i32
    return %c0_i32, %c0_i32_0 : i32, i32
  }
  func.func @transform_4(%arg0: i32) -> (i32, i32, i32) {
    %c0_i32 = arith.constant 0 : i32
    %c0_i32_0 = arith.constant 0 : i32
    %c0_i32_1 = arith.constant 0 : i32
    return %arg0, %c0_i32, %c0_i32_0 : i32, i32, i32
  }
}

</mosaic_0001>

<bundles_post_ra>
// kernel: self_attn_forward.3
= control target key start
LH: loop header
LB: loop body
LE: loop exit
PB: predicated region body
PF: predicated region fallthrough
CT: control target
= control target key end

     0   :  { %vm47_vm0 = vcmask 261120   ;;  %s241_s1 = inlined_call_operand.vmem [shape: bf16[32,32], index: 1, kind: input, shape index: {}]   ;;  %s242_s2 = inlined_call_operand.vmem [shape: bf16[32,32], index: 2, kind: input, shape index: {}]   ;;  %s243_s0 = inlined_call_operand.vmem [shape: bf16[32,32], index: 0, kind: input, shape index: {}]   ;;  %s244_s3 = inlined_call_operand.vmem [shape: f32[32,32], index: 3, kind: output, shape index: {0}]   ;;  %s245_s4 = inlined_call_operand.vmem [shape: f32[32,32], index: 4, kind: output, shape index: {1}]  }
   0x1   :  { %v155_v0 = vld [vmem:[%s241_s1 + $0x8] sm:$0xff]  ;;  %v154_v2 = vld [vmem:[%s241_s1] sm:$0xff] }
   0x2   :  { %v157_v1 = vld [vmem:[%s242_s2 + $0x8] sm:$0xff]  ;;  %60 = vmatpush.bf16.msra.mxu0 %v155_v0  ;;  %158 = vmatpush.bf16.msra.mxu2 %v155_v0  ;;  %v156_v3 = vld [vmem:[%s242_s2] sm:$0xff] }
   0x3   :  { %99 = vmatpush.bf16.msra.mxu1 %v157_v1  ;;  %160 = vmatpush.bf16.msra.mxu3 %v157_v1  ;;  %v152_v4 = vld [vmem:[%s243_s0] sm:$0xff]  ;;  %v153_v5 = vld [vmem:[%s243_s0 + $0x8] sm:$0xff] }
   0x6   :  { %61 = vmatpush.bf16.msra.mxu0 %v154_v2  ;;  %159 = vmatpush.bf16.msra.mxu2 %v154_v2 }
   0x7   :  { %100 = vmatpush.bf16.msra.mxu1 %v156_v3  ;;  %161 = vmatpush.bf16.msra.mxu3 %v156_v3 }
   0x9   :  { %140 = vmatmul.msk.bf16.vlgmr.msra.gmra.mxu0 %vm47_vm0, %v152_v4  ;;  %141 = vmatmul.msk.bf16.vlgmr.msra.gmra.mxu2 %vm47_vm0, %v153_v5 }
   0xa   :  { %150 = vmatmul.msk.bf16.vlgmr.msra.gmra.mxu1 %vm47_vm0, %v152_v4  ;;  %151 = vmatmul.msk.bf16.vlgmr.msra.gmra.mxu3 %vm47_vm0, %v153_v5 }
  0x86   :  { %v63_v6 = vpop.f32.mrf.mxu0 }
  0x87   :  { %73 = vst.msk [vmem:[%s244_s3] sm:$0xff] %vm47_vm0, %v63_v6  ;;  %v102_v7 = vpop.f32.mrf.mxu1 }
  0x88   :  { %112 = vst.msk [vmem:[%s245_s4] sm:$0xff] %vm47_vm0, %v102_v7 }
  0x8c   :  { %v68_v8 = vpop.f32.mrf.mxu2 }
  0x8d   :  { %75 = vst.msk [vmem:[%s244_s3 + $0x10] sm:$0xff] %vm47_vm0, %v68_v8  ;;  %v107_v9 = vpop.f32.mrf.mxu3 }
  0x8e   :  { %114 = vst.msk [vmem:[%s245_s4 + $0x10] sm:$0xff] %vm47_vm0, %v107_v9  ;;  %v65_v10 = vpop.f32.mrf.mxu0 }
  0x8f   :  { %74 = vst.msk [vmem:[%s244_s3 + $0x8] sm:$0xff] %vm47_vm0, %v65_v10  ;;  %v104_v11 = vpop.f32.mrf.mxu1 }
  0x90   :  { %113 = vst.msk [vmem:[%s245_s4 + $0x8] sm:$0xff] %vm47_vm0, %v104_v11 }
  0x94   :  { %v70_v12 = vpop.f32.mrf.mxu2 }
  0x95   :  { %76 = vst.msk [vmem:[%s244_s3 + $0x18] sm:$0xff] %vm47_vm0, %v70_v12  ;;  %v109_v13 = vpop.f32.mrf.mxu3 }
  0x96   :  { %115 = vst.msk [vmem:[%s245_s4 + $0x18] sm:$0xff] %vm47_vm0, %v109_v13 }

// kernel: self_attn_forward.5
= control target key start
LH: loop header
LB: loop body
LE: loop exit
PB: predicated region body
PF: predicated region fallthrough
CT: control target
= control target key end

     0   :  { %vm24_vm0 = vcmask 257024   ;;  %s890_s0 = inlined_call_operand.vmem [shape: f32[8,4,96], index: 0, kind: input, shape index: {}]   ;;  %s891_s1 = inlined_call_operand.vmem [shape: bf16[32,96], index: 1, kind: input, shape index: {}]   ;;  %s892_s2 = inlined_call_operand.vmem [shape: f32[1,96], index: 2, kind: input, shape index: {}]   ;;  %s893_s3 = inlined_call_operand.vmem [shape: f32[4,32], index: 3, kind: input, shape index: {}]   ;;  %s894_s4 = inlined_call_operand.hbm [shape: f32[8,4,32], index: 4, kind: output, shape index: {}]  }
   0x1   :  { %v635_v0 = vld [vmem:[%s891_s1 + $0x8] sm:$0xff]  ;;  %v23_v1 = vld [vmem:[%s893_s3] sm:$0xf] }
   0x2   :  { %25 = vst.msk [vmem:[#allocation2] sm:$0xf] %vm24_vm0, %v23_v1  ;;  %59 = vmatpush.bf16.msra.mxu0 %v635_v0  ;;  %v634_v2 = vld [vmem:[%s891_s1] sm:$0xff]  ;;  %130 = vmatpush.bf16.msra.mxu1 %v635_v0 }
   0x3   :  { %9 = vsyncpa [#allocation4], 0  ;;  %197 = vmatpush.bf16.msra.mxu2 %v635_v0  ;;  %264 = vmatpush.bf16.msra.mxu3 %v635_v0  ;;  %vm49_vm1 = vcmask 261120   ;;  %v760_v5 = vld [vmem:[%s892_s2] ss:$0 sm:$0xff]  ;;  %s716_s21 = smov 64  }
   0x4   :  { %v32_v9 = vld [vmem:[%s890_s0] sm:$0xf]  ;;  %s717_s2 = smov 96   ;;  %s718_s24 = smov 32   ;;  %v613_v40 = vld [vmem:[%s890_s0 + $0x4] sm:$0xf] }
   0x5   :  { %s591_s16 = sshll.u32 %s894_s4, 4  ;;  %s720_s17 = smov 4   ;;  %s592_s16 = int_to_ptr.hbm [resolvable:$true] %s591_s16 }
   0x6   :  { %60 = vmatpush.bf16.msra.mxu0 %v634_v2  ;;  %131 = vmatpush.bf16.msra.mxu1 %v634_v2 }
   0x7   :  { %198 = vmatpush.bf16.msra.mxu2 %v634_v2  ;;  %265 = vmatpush.bf16.msra.mxu3 %v634_v2 }
   0x9   :  { %v31_v3 = vld [vmem:[#allocation2] sm:$0xf] }
   0xa   :  { %331 = vmatpush.bf16.msrb.mxu0 %v635_v0  ;;  %398 = vmatpush.bf16.msrb.mxu1 %v635_v0  ;;  %v33_v4 = vpack.c.bf16 %v31_v3, %v31_v3 }
   0xb   :  { %465 = vmatpush.bf16.msrb.mxu2 %v635_v0  ;;  %532 = vmatpush.bf16.msrb.mxu3 %v635_v0 }
   0xc   :  { %611 = vmatmul.msk.bf16.vlgmr.msra.gmra.mxu0 %vm49_vm1, %v33_v4 }
   0xe   :  { %332 = vmatpush.bf16.msrb.mxu0 %v634_v2  ;;  %399 = vmatpush.bf16.msrb.mxu1 %v634_v2 }
   0xf   :  { %466 = vmatpush.bf16.msrb.mxu2 %v634_v2  ;;  %533 = vmatpush.bf16.msrb.mxu3 %v634_v2 }
  0x89   :  { %v62_v6 = vpop.f32.mrf.mxu0 }
  0x8a   :  { %v63_v7 = vadd.f32 %v760_v5, %v62_v6 }
  0x8c   :  { %87 = vrot.lane.b32.xlu0 %v63_v7, %s716_s21  ;;  %v66_v10 = vadd.f32 %v63_v7, %v32_v9  ;;  %v616_v7 = vld [vmem:[%s890_s0 + $0x8] sm:$0xf] }
  0x8e   :  { %v612_v11 = vmul.f32 -1.442695, %v66_v10 }
  0x90   :  { %642 = vpow2.f32 %v612_v11 }
  0x91   :  { %v64_v8 = vpop.f32.mrf.mxu0 }
  0x96   :  { %v643_v12 = vpop.eup %642 }
  0x97   :  { %v70_v13 = vadd.f32 1.0, %v643_v12 }
  0x99   :  { %644 = vrcp.f32 %v70_v13  ;;  %v82_v19 = vand.u32 2147483648, %v70_v13  ;;  %vm76_vm3 = vweird.f32 %v70_v13  ;;  %v80_v20 = vand.u32 2147483647, %v70_v13 }
  0x9b   :  { %v83_v22 = vor.u32 1.1754944e-38, %v82_v19  ;;  %vm81_vm5 = vcmp.eq.f32.partialorder %v80_v20, 8.507059e+37 }
  0x9f   :  { %v645_v14 = vpop.eup %644 }
  0xa0   :  { %v72_v15 = vmul.f32 %v645_v14, %v70_v13  ;;  %vm77_vm2 = vweird.f32 %v645_v14 }
  0xa1   :  { %vm78_vm4 = vmor %vm76_vm3, %vm77_vm2 }
  0xa2   :  { %v73_v16 = vsub.f32 1.0, %v72_v15 }
  0xa4   :  { %v74_v17 = vmul.f32 %v645_v14, %v73_v16 }
  0xa6   :  { %v75_v18 = vadd.f32 %v645_v14, %v74_v17 }
  0xa8   :  { %v79_v21 = vsel %vm78_vm4, %v645_v14, %v75_v18 }
  0xa9   :  { %v84_v24 = vsel %vm81_vm5, %v83_v22, %v79_v21 }
  0xaa   :  { %v97_v30 = vsub.f32 1.0, %v84_v24 }
  0xfe   :  { %v88_v23 = vpop.permute.xlu0 %87 }
  0xff   :  { %v90_v25 = vmul.f32 %v88_v23, %v84_v24 }
 0x101   :  { %92 = vrot.lane.b32.xlu0 %v90_v25, %s716_s21 }
 0x173   :  { %v93_v26 = vpop.permute.xlu0 %92 }
 0x174   :  { %v95_v27 = vadd.f32 %v93_v26, %v32_v9 }
 0x176   :  { %646 = vtanh.f32 %v95_v27 }
 0x17c   :  { %v647_v28 = vpop.eup %646 }
 0x17d   :  { %99 = vrot.lane.b32.xlu1 %v647_v28, %s717_s2 }
 0x185   :  { %104 = vrot.lane.b32.xlu1 %v31_v3, %s718_s24 }
 0x1ef   :  { %v100_v29 = vpop.permute.xlu1 %99 }
 0x1f0   :  { %v102_v32 = vmul.f32 %v100_v29, %v97_v30 }
 0x1f7   :  { %v105_v31 = vpop.permute.xlu1 %104 }
 0x1f8   :  { %v107_v33 = vmul.f32 %v105_v31, %v84_v24 }
 0x1fa   :  { %v769_v34 = vadd.f32 %v107_v33, %v102_v32 }
 0x1fc   :  { %v117_v35 = vpack.c.bf16 %v769_v34, %v769_v34 }
 0x1fe   :  { %119 = vrot.lane.b32.xlu2 %v117_v35, %s717_s2 }
 0x258   :  { %v120_v36 = vpop.permute.xlu2 %119 }
 0x259   :  { %614 = vmatmul.msk.bf16.vlgmr.msra.gmra.mxu1 %vm49_vm1, %v120_v36 }
 0x2d6   :  { %v133_v37 = vpop.f32.mrf.mxu1 }
 0x2d7   :  { %v134_v38 = vadd.f32 %v760_v5, %v133_v37 }
 0x2d9   :  { %158 = vrot.lane.b32.xlu2 %v134_v38, %s716_s21  ;;  %v137_v41 = vadd.f32 %v613_v40, %v134_v38  ;;  %v619_v38 = vld [vmem:[%s890_s0 + $0xc] sm:$0xf] }
 0x2db   :  { %v615_v42 = vmul.f32 -1.442695, %v137_v41 }
 0x2dd   :  { %648 = vpow2.f32 %v615_v42 }
 0x2de   :  { %v135_v39 = vpop.f32.mrf.mxu1 }
 0x2e3   :  { %v649_v43 = vpop.eup %648 }
 0x2e4   :  { %v141_v44 = vadd.f32 1.0, %v649_v43 }
 0x2e6   :  { %650 = vrcp.f32 %v141_v44  ;;  %v153_v50 = vand.u32 2147483648, %v141_v44  ;;  %vm147_vm7 = vweird.f32 %v141_v44  ;;  %v151_v51 = vand.u32 2147483647, %v141_v44 }
 0x2e8   :  { %v154_v53 = vor.u32 1.1754944e-38, %v153_v50  ;;  %vm152_vm9 = vcmp.eq.f32.partialorder %v151_v51, 8.507059e+37 }
 0x2ec   :  { %v651_v45 = vpop.eup %650 }
 0x2ed   :  { %v143_v46 = vmul.f32 %v651_v45, %v141_v44  ;;  %vm148_vm6 = vweird.f32 %v651_v45 }
 0x2ee   :  { %vm149_vm8 = vmor %vm147_vm7, %vm148_vm6 }
 0x2ef   :  { %v144_v47 = vsub.f32 1.0, %v143_v46 }
 0x2f1   :  { %v145_v48 = vmul.f32 %v651_v45, %v144_v47 }
 0x2f3   :  { %v146_v49 = vadd.f32 %v651_v45, %v145_v48 }
 0x2f5   :  { %v150_v52 = vsel %vm149_vm8, %v651_v45, %v146_v49 }
 0x2f6   :  { %v155_v55 = vsel %vm152_vm9, %v154_v53, %v150_v52 }
 0x2f7   :  { %v168_v60 = vsub.f32 1.0, %v155_v55  ;;  %v174_v62 = vmul.f32 %v155_v55, %v769_v34 }
 0x333   :  { %v159_v54 = vpop.permute.xlu2 %158 }
 0x334   :  { %v161_v56 = vmul.f32 %v159_v54, %v155_v55 }
 0x336   :  { %163 = vrot.lane.b32.xlu0 %v161_v56, %s716_s21 }
 0x3a8   :  { %v164_v57 = vpop.permute.xlu0 %163 }
 0x3a9   :  { %v166_v58 = vadd.f32 %v613_v40, %v164_v57 }
 0x3ab   :  { %652 = vtanh.f32 %v166_v58 }
 0x3b1   :  { %v653_v59 = vpop.eup %652 }
 0x3b2   :  { %170 = vrot.lane.b32.xlu1 %v653_v59, %s717_s2 }
 0x424   :  { %v171_v61 = vpop.permute.xlu1 %170 }
 0x425   :  { %v173_v63 = vmul.f32 %v171_v61, %v168_v60 }
 0x427   :  { %v783_v0 = vadd.f32 %v174_v62, %v173_v63 }
 0x429   :  { %v184_v1 = vpack.c.bf16 %v783_v0, %v783_v0 }
 0x42b   :  { %186 = vrot.lane.b32.xlu2 %v184_v1, %s717_s2 }
 0x485   :  { %v187_v2 = vpop.permute.xlu2 %186 }
 0x486   :  { %617 = vmatmul.msk.bf16.vlgmr.msra.gmra.mxu2 %vm49_vm1, %v187_v2 }
 0x509   :  { %v200_v3 = vpop.f32.mrf.mxu2 }
 0x50a   :  { %v201_v4 = vadd.f32 %v760_v5, %v200_v3 }
 0x50c   :  { %225 = vrot.lane.b32.xlu0 %v201_v4, %s716_s21  ;;  %v204_v8 = vadd.f32 %v616_v7, %v201_v4 }
 0x50e   :  { %v618_v9 = vmul.f32 -1.442695, %v204_v8 }
 0x510   :  { %654 = vpow2.f32 %v618_v9 }
 0x511   :  { %v202_v6 = vpop.f32.mrf.mxu2 }
 0x512   :  { %v622_v6 = vld [vmem:[%s890_s0 + $0x10] sm:$0xf] }
 0x516   :  { %v655_v10 = vpop.eup %654 }
 0x517   :  { %v208_v11 = vadd.f32 1.0, %v655_v10 }
 0x519   :  { %656 = vrcp.f32 %v208_v11  ;;  %v220_v17 = vand.u32 2147483648, %v208_v11  ;;  %vm214_vm11 = vweird.f32 %v208_v11  ;;  %v218_v18 = vand.u32 2147483647, %v208_v11 }
 0x51b   :  { %v221_v20 = vor.u32 1.1754944e-38, %v220_v17  ;;  %vm219_vm13 = vcmp.eq.f32.partialorder %v218_v18, 8.507059e+37 }
 0x51f   :  { %v657_v12 = vpop.eup %656 }
 0x520   :  { %v210_v13 = vmul.f32 %v657_v12, %v208_v11  ;;  %vm215_vm10 = vweird.f32 %v657_v12 }
 0x521   :  { %vm216_vm12 = vmor %vm214_vm11, %vm215_vm10 }
 0x522   :  { %v211_v14 = vsub.f32 1.0, %v210_v13 }
 0x524   :  { %v212_v15 = vmul.f32 %v657_v12, %v211_v14 }
 0x526   :  { %v213_v16 = vadd.f32 %v657_v12, %v212_v15 }
 0x528   :  { %v217_v19 = vsel %vm216_vm12, %v657_v12, %v213_v16 }
 0x529   :  { %v222_v22 = vsel %vm219_vm13, %v221_v20, %v217_v19 }
 0x52a   :  { %v235_v27 = vsub.f32 1.0, %v222_v22  ;;  %v241_v29 = vmul.f32 %v222_v22, %v783_v0 }
 0x57e   :  { %v226_v21 = vpop.permute.xlu0 %225 }
 0x57f   :  { %v228_v23 = vmul.f32 %v226_v21, %v222_v22 }
 0x581   :  { %230 = vrot.lane.b32.xlu1 %v228_v23, %s716_s21 }
 0x5f3   :  { %v231_v24 = vpop.permute.xlu1 %230 }
 0x5f4   :  { %v233_v25 = vadd.f32 %v616_v7, %v231_v24 }
 0x5f6   :  { %658 = vtanh.f32 %v233_v25 }
 0x5fc   :  { %v659_v26 = vpop.eup %658 }
 0x5fd   :  { %237 = vrot.lane.b32.xlu2 %v659_v26, %s717_s2 }
 0x657   :  { %v238_v28 = vpop.permute.xlu2 %237 }
 0x658   :  { %v240_v30 = vmul.f32 %v238_v28, %v235_v27 }
 0x65a   :  { %v797_v31 = vadd.f32 %v241_v29, %v240_v30 }
 0x65c   :  { %v251_v32 = vpack.c.bf16 %v797_v31, %v797_v31 }
 0x65e   :  { %253 = vrot.lane.b32.xlu0 %v251_v32, %s717_s2 }
 0x6d0   :  { %v254_v33 = vpop.permute.xlu0 %253 }
 0x6d1   :  { %620 = vmatmul.msk.bf16.vlgmr.msra.gmra.mxu3 %vm49_vm1, %v254_v33 }
 0x754   :  { %v267_v35 = vpop.f32.mrf.mxu3 }
 0x755   :  { %v268_v36 = vadd.f32 %v760_v5, %v267_v35 }
 0x757   :  { %292 = vrot.lane.b32.xlu1 %v268_v36, %s716_s21  ;;  %v271_v39 = vadd.f32 %v619_v38, %v268_v36 }
 0x759   :  { %v621_v40 = vmul.f32 -1.442695, %v271_v39 }
 0x75b   :  { %660 = vpow2.f32 %v621_v40 }
 0x75c   :  { %v269_v37 = vpop.f32.mrf.mxu3 }
 0x761   :  { %v661_v41 = vpop.eup %660 }
 0x762   :  { %v275_v42 = vadd.f32 1.0, %v661_v41 }
 0x764   :  { %662 = vrcp.f32 %v275_v42  ;;  %v287_v48 = vand.u32 2147483648, %v275_v42  ;;  %vm281_vm15 = vweird.f32 %v275_v42  ;;  %v285_v49 = vand.u32 2147483647, %v275_v42 }
 0x766   :  { %v288_v51 = vor.u32 1.1754944e-38, %v287_v48  ;;  %vm286_vm3 = vcmp.eq.f32.partialorder %v285_v49, 8.507059e+37 }
 0x76a   :  { %v663_v43 = vpop.eup %662 }
 0x76b   :  { %v277_v44 = vmul.f32 %v663_v43, %v275_v42  ;;  %vm282_vm14 = vweird.f32 %v663_v43 }
 0x76c   :  { %vm283_vm2 = vmor %vm281_vm15, %vm282_vm14 }
 0x76d   :  { %v278_v45 = vsub.f32 1.0, %v277_v44 }
 0x76f   :  { %v279_v46 = vmul.f32 %v663_v43, %v278_v45 }
 0x771   :  { %v280_v47 = vadd.f32 %v663_v43, %v279_v46 }
 0x773   :  { %v284_v50 = vsel %vm283_vm2, %v663_v43, %v280_v47 }
 0x774   :  { %v289_v53 = vsel %vm286_vm3, %v288_v51, %v284_v50 }
 0x775   :  { %v302_v58 = vsub.f32 1.0, %v289_v53  ;;  %v308_v60 = vmul.f32 %v289_v53, %v797_v31 }
 0x7c9   :  { %v293_v52 = vpop.permute.xlu1 %292 }
 0x7ca   :  { %v295_v54 = vmul.f32 %v293_v52, %v289_v53 }
 0x7cc   :  { %297 = vrot.lane.b32.xlu2 %v295_v54, %s716_s21 }
 0x826   :  { %v298_v55 = vpop.permute.xlu2 %297 }
 0x827   :  { %v300_v56 = vadd.f32 %v619_v38, %v298_v55  ;;  %v625_v38 = vld [vmem:[%s890_s0 + $0x14] sm:$0xf] }
 0x829   :  { %664 = vtanh.f32 %v300_v56 }
 0x82f   :  { %v665_v57 = vpop.eup %664 }
 0x830   :  { %304 = vrot.lane.b32.xlu0 %v665_v57, %s717_s2 }
 0x8a2   :  { %v305_v59 = vpop.permute.xlu0 %304 }
 0x8a3   :  { %v307_v61 = vmul.f32 %v305_v59, %v302_v58 }
 0x8a5   :  { %v811_v62 = vadd.f32 %v308_v60, %v307_v61 }
 0x8a7   :  { %v318_v63 = vpack.c.bf16 %v811_v62, %v811_v62 }
 0x8a9   :  { %320 = vrot.lane.b32.xlu1 %v318_v63, %s717_s2 }
 0x91b   :  { %v321_v1 = vpop.permute.xlu1 %320 }
 0x91c   :  { %623 = vmatmul.msk.bf16.vlgmr.msrb.gmra.mxu0 %vm49_vm1, %v321_v1 }
 0x999   :  { %v334_v2 = vpop.f32.mrf.mxu0 }
 0x99a   :  { %v335_v3 = vadd.f32 %v760_v5, %v334_v2 }
 0x99c   :  { %359 = vrot.lane.b32.xlu2 %v335_v3, %s716_s21  ;;  %v338_v7 = vadd.f32 %v622_v6, %v335_v3 }
 0x99e   :  { %v624_v8 = vmul.f32 -1.442695, %v338_v7  ;;  %v628_v7 = vld [vmem:[%s890_s0 + $0x18] sm:$0xf] }
 0x9a0   :  { %666 = vpow2.f32 %v624_v8 }
 0x9a1   :  { %v336_v4 = vpop.f32.mrf.mxu0 }
 0x9a6   :  { %v667_v9 = vpop.eup %666 }
 0x9a7   :  { %v342_v10 = vadd.f32 1.0, %v667_v9 }
 0x9a9   :  { %668 = vrcp.f32 %v342_v10  ;;  %v354_v16 = vand.u32 2147483648, %v342_v10  ;;  %vm348_vm5 = vweird.f32 %v342_v10  ;;  %v352_v17 = vand.u32 2147483647, %v342_v10 }
 0x9ab   :  { %v355_v19 = vor.u32 1.1754944e-38, %v354_v16  ;;  %vm353_vm7 = vcmp.eq.f32.partialorder %v352_v17, 8.507059e+37 }
 0x9af   :  { %v669_v11 = vpop.eup %668 }
 0x9b0   :  { %v344_v12 = vmul.f32 %v669_v11, %v342_v10  ;;  %vm349_vm4 = vweird.f32 %v669_v11 }
 0x9b1   :  { %vm350_vm6 = vmor %vm348_vm5, %vm349_vm4 }
 0x9b2   :  { %v345_v13 = vsub.f32 1.0, %v344_v12 }
 0x9b4   :  { %v346_v14 = vmul.f32 %v669_v11, %v345_v13 }
 0x9b6   :  { %v347_v15 = vadd.f32 %v669_v11, %v346_v14 }
 0x9b8   :  { %v351_v18 = vsel %vm350_vm6, %v669_v11, %v347_v15 }
 0x9b9   :  { %v356_v21 = vsel %vm353_vm7, %v355_v19, %v351_v18 }
 0x9ba   :  { %v369_v26 = vsub.f32 1.0, %v356_v21  ;;  %v375_v28 = vmul.f32 %v356_v21, %v811_v62 }
 0x9f6   :  { %v360_v20 = vpop.permute.xlu2 %359 }
 0x9f7   :  { %v362_v22 = vmul.f32 %v360_v20, %v356_v21 }
 0x9f9   :  { %364 = vrot.lane.b32.xlu0 %v362_v22, %s716_s21 }
 0xa6b   :  { %v365_v23 = vpop.permute.xlu0 %364 }
 0xa6c   :  { %v367_v24 = vadd.f32 %v622_v6, %v365_v23 }
 0xa6e   :  { %670 = vtanh.f32 %v367_v24 }
 0xa74   :  { %v671_v25 = vpop.eup %670 }
 0xa75   :  { %371 = vrot.lane.b32.xlu1 %v671_v25, %s717_s2 }
 0xae7   :  { %v372_v27 = vpop.permute.xlu1 %371 }
 0xae8   :  { %v374_v29 = vmul.f32 %v372_v27, %v369_v26 }
 0xaea   :  { %v825_v30 = vadd.f32 %v375_v28, %v374_v29 }
 0xaec   :  { %v385_v32 = vpack.c.bf16 %v825_v30, %v825_v30 }
 0xaee   :  { %387 = vrot.lane.b32.xlu2 %v385_v32, %s717_s2 }
 0xb48   :  { %v388_v33 = vpop.permute.xlu2 %387 }
 0xb49   :  { %626 = vmatmul.msk.bf16.vlgmr.msrb.gmra.mxu1 %vm49_vm1, %v388_v33 }
 0xbc6   :  { %v401_v35 = vpop.f32.mrf.mxu1 }
 0xbc7   :  { %v402_v36 = vadd.f32 %v760_v5, %v401_v35 }
 0xbc9   :  { %426 = vrot.lane.b32.xlu0 %v402_v36, %s716_s21  ;;  %v405_v39 = vadd.f32 %v625_v38, %v402_v36 }
 0xbcb   :  { %v627_v40 = vmul.f32 -1.442695, %v405_v39 }
 0xbcd   :  { %672 = vpow2.f32 %v627_v40  ;;  %v631_v40 = vld [vmem:[%s890_s0 + $0x1c] sm:$0xf]  ;;  %s719_s0 = smov [#allocation3]  }
 0xbce   :  { %v403_v37 = vpop.f32.mrf.mxu1  ;;  %s589_s13 = sshll.u32 %s719_s0, 4  ;;  %s590_s13 = int_to_ptr.vmem [resolvable:$true] %s589_s13 }
 0xbd3   :  { %v673_v41 = vpop.eup %672 }
 0xbd4   :  { %v409_v42 = vadd.f32 1.0, %v673_v41 }
 0xbd6   :  { %674 = vrcp.f32 %v409_v42  ;;  %v421_v48 = vand.u32 2147483648, %v409_v42  ;;  %vm415_vm9 = vweird.f32 %v409_v42  ;;  %v419_v49 = vand.u32 2147483647, %v409_v42 }
 0xbd8   :  { %v422_v51 = vor.u32 1.1754944e-38, %v421_v48  ;;  %vm420_vm11 = vcmp.eq.f32.partialorder %v419_v49, 8.507059e+37 }
 0xbdc   :  { %v675_v43 = vpop.eup %674 }
 0xbdd   :  { %v411_v44 = vmul.f32 %v675_v43, %v409_v42  ;;  %vm416_vm8 = vweird.f32 %v675_v43 }
 0xbde   :  { %vm417_vm10 = vmor %vm415_vm9, %vm416_vm8 }
 0xbdf   :  { %v412_v45 = vsub.f32 1.0, %v411_v44 }
 0xbe1   :  { %v413_v46 = vmul.f32 %v675_v43, %v412_v45 }
 0xbe3   :  { %v414_v47 = vadd.f32 %v675_v43, %v413_v46 }
 0xbe5   :  { %v418_v50 = vsel %vm417_vm10, %v675_v43, %v414_v47 }
 0xbe6   :  { %v423_v53 = vsel %vm420_vm11, %v422_v51, %v418_v50 }
 0xbe7   :  { %v436_v58 = vsub.f32 1.0, %v423_v53  ;;  %v442_v60 = vmul.f32 %v423_v53, %v825_v30 }
 0xc3b   :  { %v427_v52 = vpop.permute.xlu0 %426 }
 0xc3c   :  { %v429_v54 = vmul.f32 %v427_v52, %v423_v53 }
 0xc3e   :  { %431 = vrot.lane.b32.xlu1 %v429_v54, %s716_s21 }
 0xcb0   :  { %v432_v55 = vpop.permute.xlu1 %431 }
 0xcb1   :  { %v434_v56 = vadd.f32 %v625_v38, %v432_v55 }
 0xcb3   :  { %676 = vtanh.f32 %v434_v56 }
 0xcb9   :  { %v677_v57 = vpop.eup %676 }
 0xcba   :  { %438 = vrot.lane.b32.xlu2 %v677_v57, %s717_s2 }
 0xd14   :  { %v439_v59 = vpop.permute.xlu2 %438 }
 0xd15   :  { %v441_v61 = vmul.f32 %v439_v59, %v436_v58 }
 0xd17   :  { %v839_v63 = vadd.f32 %v442_v60, %v441_v61 }
 0xd19   :  { %v452_v1 = vpack.c.bf16 %v839_v63, %v839_v63 }
 0xd1b   :  { %454 = vrot.lane.b32.xlu0 %v452_v1, %s717_s2 }
 0xd8d   :  { %v455_v2 = vpop.permute.xlu0 %454 }
 0xd8e   :  { %629 = vmatmul.msk.bf16.vlgmr.msrb.gmra.mxu2 %vm49_vm1, %v455_v2 }
 0xe11   :  { %v468_v3 = vpop.f32.mrf.mxu2 }
 0xe12   :  { %v469_v4 = vadd.f32 %v760_v5, %v468_v3 }
 0xe14   :  { %493 = vrot.lane.b32.xlu1 %v469_v4, %s716_s21  ;;  %v472_v8 = vadd.f32 %v628_v7, %v469_v4 }
 0xe16   :  { %v630_v9 = vmul.f32 -1.442695, %v472_v8 }
 0xe18   :  { %678 = vpow2.f32 %v630_v9 }
 0xe19   :  { %v470_v6 = vpop.f32.mrf.mxu2 }
 0xe1e   :  { %v679_v10 = vpop.eup %678 }
 0xe1f   :  { %v476_v11 = vadd.f32 1.0, %v679_v10 }
 0xe21   :  { %680 = vrcp.f32 %v476_v11  ;;  %v488_v17 = vand.u32 2147483648, %v476_v11  ;;  %vm482_vm13 = vweird.f32 %v476_v11  ;;  %v486_v18 = vand.u32 2147483647, %v476_v11 }
 0xe23   :  { %v489_v20 = vor.u32 1.1754944e-38, %v488_v17  ;;  %vm487_vm15 = vcmp.eq.f32.partialorder %v486_v18, 8.507059e+37 }
 0xe27   :  { %v681_v12 = vpop.eup %680 }
 0xe28   :  { %v478_v13 = vmul.f32 %v681_v12, %v476_v11  ;;  %vm483_vm12 = vweird.f32 %v681_v12 }
 0xe29   :  { %vm484_vm14 = vmor %vm482_vm13, %vm483_vm12 }
 0xe2a   :  { %v479_v14 = vsub.f32 1.0, %v478_v13 }
 0xe2c   :  { %v480_v15 = vmul.f32 %v681_v12, %v479_v14 }
 0xe2e   :  { %v481_v16 = vadd.f32 %v681_v12, %v480_v15 }
 0xe30   :  { %v485_v19 = vsel %vm484_vm14, %v681_v12, %v481_v16 }
 0xe31   :  { %v490_v22 = vsel %vm487_vm15, %v489_v20, %v485_v19 }
 0xe32   :  { %v503_v27 = vsub.f32 1.0, %v490_v22  ;;  %v509_v29 = vmul.f32 %v490_v22, %v839_v63 }
 0xe86   :  { %v494_v21 = vpop.permute.xlu1 %493 }
 0xe87   :  { %v496_v23 = vmul.f32 %v494_v21, %v490_v22 }
 0xe89   :  { %498 = vrot.lane.b32.xlu2 %v496_v23, %s716_s21 }
 0xee3   :  { %v499_v24 = vpop.permute.xlu2 %498 }
 0xee4   :  { %v501_v25 = vadd.f32 %v628_v7, %v499_v24 }
 0xee6   :  { %682 = vtanh.f32 %v501_v25 }
 0xeec   :  { %v683_v26 = vpop.eup %682 }
 0xeed   :  { %505 = vrot.lane.b32.xlu0 %v683_v26, %s717_s2 }
 0xf5f   :  { %v506_v28 = vpop.permute.xlu0 %505 }
 0xf60   :  { %v508_v32 = vmul.f32 %v506_v28, %v503_v27 }
 0xf62   :  { %v510_v33 = vadd.f32 %v509_v29, %v508_v32 }
 0xf64   :  { %v519_v35 = vpack.c.bf16 %v510_v33, %v510_v33 }
 0xf66   :  { %521 = vrot.lane.b32.xlu1 %v519_v35, %s717_s2 }
 0xfd8   :  { %v522_v36 = vpop.permute.xlu1 %521 }
 0xfd9   :  { %632 = vmatmul.msk.bf16.vlgmr.msrb.gmra.mxu3 %vm49_vm1, %v522_v36 }
0x105c   :  { %v535_v37 = vpop.f32.mrf.mxu3 }
0x105d   :  { %v536_v38 = vadd.f32 %v760_v5, %v535_v37 }
0x105f   :  { %560 = vrot.lane.b32.xlu2 %v536_v38, %s716_s21  ;;  %v539_v41 = vadd.f32 %v631_v40, %v536_v38 }
0x1061   :  { %v633_v42 = vmul.f32 -1.442695, %v539_v41 }
0x1063   :  { %684 = vpow2.f32 %v633_v42 }
0x1064   :  { %v537_v39 = vpop.f32.mrf.mxu3 }
0x1067   :  { %110 = vrot.lane.b32.xlu2 %v769_v34, %s717_s2 }
0x1069   :  { %v685_v43 = vpop.eup %684 }
0x106a   :  { %v543_v5 = vadd.f32 1.0, %v685_v43 }
0x106c   :  { %686 = vrcp.f32 %v543_v5  ;;  %v555_v48 = vand.u32 2147483648, %v543_v5  ;;  %vm549_vm2 = vweird.f32 %v543_v5 }
0x106e   :  { %v556_v50 = vor.u32 1.1754944e-38, %v555_v48 }
0x106f   :  { %311 = vrot.lane.b32.xlu2 %v811_v62, %s717_s2  ;;  %v553_v62 = vand.u32 2147483647, %v543_v5 }
0x1071   :  { %vm554_vm4 = vcmp.eq.f32.partialorder %v553_v62, 8.507059e+37 }
0x1072   :  { %v687_v44 = vpop.eup %686 }
0x1073   :  { %v545_v45 = vmul.f32 %v687_v44, %v543_v5  ;;  %vm550_vm1 = vweird.f32 %v687_v44 }
0x1074   :  { %vm551_vm3 = vmor %vm549_vm2, %vm550_vm1 }
0x1075   :  { %v546_v46 = vsub.f32 1.0, %v545_v45 }
0x1077   :  { %512 = vrot.lane.b32.xlu2 %v510_v33, %s717_s2  ;;  %v547_v47 = vmul.f32 %v687_v44, %v546_v46 }
0x1079   :  { %v548_v34 = vadd.f32 %v687_v44, %v547_v47 }
0x107b   :  { %v552_v49 = vsel %vm551_vm3, %v687_v44, %v548_v34 }
0x107c   :  { %v557_v52 = vsel %vm554_vm4, %v556_v50, %v552_v49 }
0x107d   :  { %v576_v1 = vmul.f32 %v557_v52, %v510_v33 }
0x10b9   :  { %v561_v51 = vpop.permute.xlu2 %560 }
0x10ba   :  { %v563_v53 = vmul.f32 %v561_v51, %v557_v52 }
0x10bc   :  { %565 = vrot.lane.b32.xlu0 %v563_v53, %s716_s21 }
0x10c1   :  { %v111_v54 = vpop.permute.xlu2 %110 }
0x10c2   :  { %114 = vst.msk [vmem:[#allocation3] sm:$0xf] %vm24_vm0, %v111_v54 }
0x10c4   :  { %177 = vrot.lane.b32.xlu0 %v783_v0, %s717_s2  ;;  %v570_v0 = vsub.f32 1.0, %v557_v52 }
0x10c9   :  { %v312_v55 = vpop.permute.xlu2 %311 }
0x10ca   :  { %315 = vst.msk [vmem:[#allocation3 + $0xc] sm:$0xf] %vm24_vm0, %v312_v55 }
0x10cc   :  { %378 = vrot.lane.b32.xlu0 %v825_v30, %s717_s2 }
0x10d1   :  { %v513_v56 = vpop.permute.xlu2 %512 }
0x10d2   :  { %516 = vst.msk [vmem:[#allocation3 + $0x18] sm:$0xf] %vm24_vm0, %v513_v56 }
0x112e   :  { %v566_v57 = vpop.permute.xlu0 %565 }
0x112f   :  { %v568_v58 = vadd.f32 %v631_v40, %v566_v57 }
0x1131   :  { %688 = vtanh.f32 %v568_v58 }
0x1136   :  { %v178_v59 = vpop.permute.xlu0 %177 }
0x1137   :  { %v689_v60 = vpop.eup %688  ;;  %181 = vst.msk [vmem:[#allocation3 + $0x4] sm:$0xf] %vm24_vm0, %v178_v59 }
0x1138   :  { %572 = vrot.lane.b32.xlu1 %v689_v60, %s717_s2 }
0x113e   :  { %v379_v61 = vpop.permute.xlu0 %378 }
0x113f   :  { %382 = vst.msk [vmem:[#allocation3 + $0x10] sm:$0xf] %vm24_vm0, %v379_v61 }
0x1140   :  { %244 = vrot.lane.b32.xlu1 %v797_v31, %s717_s2 }
0x1148   :  { %445 = vrot.lane.b32.xlu1 %v839_v63, %s717_s2 }
0x11aa   :  { %v573_v30 = vpop.permute.xlu1 %572 }
0x11ab   :  { %v575_v2 = vmul.f32 %v573_v30, %v570_v0 }
0x11ad   :  { %v577_v3 = vadd.f32 %v576_v1, %v575_v2 }
0x11af   :  { %579 = vrot.lane.b32.xlu0 %v577_v3, %s717_s2 }
0x11b2   :  { %v245_v4 = vpop.permute.xlu1 %244 }
0x11b3   :  { %248 = vst.msk [vmem:[#allocation3 + $0x8] sm:$0xf] %vm24_vm0, %v245_v4 }
0x11ba   :  { %v446_v6 = vpop.permute.xlu1 %445 }
0x11bb   :  { %449 = vst.msk [vmem:[#allocation3 + $0x14] sm:$0xf] %vm24_vm0, %v446_v6 }
0x1221   :  { %v580_v31 = vpop.permute.xlu0 %579 }
0x1222   :  { %583 = vst.msk [vmem:[#allocation3 + $0x1c] sm:$0xf] %vm24_vm0, %v580_v31 }
0x1223   :  { %584 = vst.msk [vmem:[#allocation2] sm:$0xf] %vm24_vm0, %v580_v31  ;;  %597 = dma.vmem_to_hbm [thread:$0]  %s590_s13, 512, %s592_s16, [#allocation4], %s716_s21, %s716_s21, %s720_s17  }
0x1224   :  { %714 = dma.done.wait [#allocation4], 512  }
0x1225   :  { %715 = vsyncadd [#allocation4], 4294966784 }
0x1226   :  { %602 = vsyncpa [#allocation4], 1 }

// kernel: self_attn_forward.4
= control target key start
LH: loop header
LB: loop body
LE: loop exit
PB: predicated region body
PF: predicated region fallthrough
CT: control target
= control target key end

     0   :  { %vm37_vm0 = vcmask 261120   ;;  %vm422_vm1 = vcmask 1041409   ;;  %vm424_vm2 = vcmask 1042434   ;;  %vm426_vm3 = vcmask 1043459   ;;  %s2506_s0 = inlined_call_operand.vmem [shape: f32[4,8,32], index: 0, kind: input, shape index: {}]   ;;  %s2507_s1 = inlined_call_operand.vmem [shape: f32[4,8,32], index: 1, kind: input, shape index: {}]   ;;  %s2508_s3 = inlined_call_operand.vmem [shape: f32[4,32], index: 3, kind: input, shape index: {}]   ;;  %s2509_s2 = inlined_call_operand.vmem [shape: bf16[4,8,32], index: 2, kind: input, shape index: {}]   ;;  %s2510_s4 = inlined_call_operand.vmem [shape: bf16[32,96], index: 4, kind: input, shape index: {}]   ;;  %s2511_s5 = inlined_call_operand.vmem [shape: f32[1,96], index: 5, kind: input, shape index: {}]   ;;  %s2512_s6 = inlined_call_operand.vmem [shape: f32[4,8,96], index: 6, kind: output, shape index: {}]  }
   0x1   :  { %v1717_v0 = vld [vmem:[%s2506_s0 + $0x8] sm:$0xff]  ;;  %v1727_v2 = vld [vmem:[%s2508_s3] sm:$0xf]  ;;  %vm428_vm4 = vcmask 1044484   ;;  %vm430_vm5 = vcmask 1045509   ;;  %vm432_vm6 = vcmask 1046534  }
   0x2   :  { %v1722_v1 = vld [vmem:[%s2507_s1 + $0x8] sm:$0xff]  ;;  %v91_v3 = vperm.slane %v1717_v0, 0  ;;  %v42_v4 = vld [vmem:[%s2506_s0] sm:$0xff]  ;;  %v212_v11 = vrot.slane %v1727_v2, 1  ;;  %v1741_v28 = vperm.slane %v1727_v2, 0  ;;  %v64_v32 = vrot.slane %v1717_v0, 3 }
   0x3   :  { %v46_v5 = vld [vmem:[%s2507_s1] sm:$0xff]  ;;  %v83_v6 = vperm.slane %v42_v4, 0  ;;  %v56_v7 = vrot.slane %v42_v4, 2  ;;  %v58_v8 = vrot.slane %v42_v4, 4  ;;  %v55_v9 = vrot.slane %v42_v4, 1 }
   0x4   :  { %v155_v10 = vadd.f32 %v91_v3, %v1722_v1  ;;  %v57_v12 = vrot.slane %v42_v4, 3  ;;  %v59_v13 = vrot.slane %v42_v4, 5  ;;  %v60_v19 = vrot.slane %v42_v4, 6 }
   0x5   :  { %v147_v14 = vadd.f32 %v83_v6, %v46_v5  ;;  %v85_v15 = vperm.slane %v56_v7, 0  ;;  %v87_v16 = vperm.slane %v58_v8, 0  ;;  %v84_v17 = vperm.slane %v55_v9, 0  ;;  %v1768_v7 = vld [vmem:[%s2506_s0 + $0x10] sm:$0xff] }
   0x6   :  { %1532 = vtanh.f32 %v155_v10  ;;  %v86_v18 = vperm.slane %v57_v12, 0  ;;  %v88_v24 = vperm.slane %v59_v13, 0  ;;  %v61_v25 = vrot.slane %v42_v4, 7 }
   0x7   :  { %1534 = vtanh.f32 %v147_v14  ;;  %v149_v20 = vadd.f32 %v85_v15, %v46_v5  ;;  %v151_v21 = vadd.f32 %v87_v16, %v46_v5  ;;  %v148_v22 = vadd.f32 %v84_v17, %v46_v5 }
   0x8   :  { %v150_v23 = vadd.f32 %v86_v18, %v46_v5  ;;  %v1738_v26 = vperm.slane %v212_v11, 0  ;;  %v89_v27 = vperm.slane %v60_v19, 0  ;;  %v90_v29 = vperm.slane %v61_v25, 0 }
   0x9   :  { %1536 = vtanh.f32 %v149_v20  ;;  %v152_v31 = vadd.f32 %v88_v24, %v46_v5  ;;  %v62_v36 = vrot.slane %v1717_v0, 1  ;;  %v63_v38 = vrot.slane %v1717_v0, 2 }
   0xa   :  { %1538 = vtanh.f32 %v151_v21  ;;  %v153_v35 = vadd.f32 %v89_v27, %v46_v5  ;;  %v154_v41 = vadd.f32 %v90_v29, %v46_v5  ;;  %v94_v45 = vperm.slane %v64_v32, 0  ;;  %v1783_v21 = vld [vmem:[%s2507_s1 + $0x10] sm:$0xff] }
   0xb   :  { %1540 = vtanh.f32 %v148_v22  ;;  %v92_v48 = vperm.slane %v62_v36, 0  ;;  %v93_v52 = vperm.slane %v63_v38, 0  ;;  %v65_v53 = vrot.slane %v1717_v0, 4 }
   0xc   :  { %v1533_v30 = vpop.eup %1532  ;;  %1542 = vtanh.f32 %v150_v23  ;;  %v67_v54 = vrot.slane %v1717_v0, 6  ;;  %v158_v56 = vadd.f32 %v94_v45, %v1722_v1  ;;  %v66_v63 = vrot.slane %v1717_v0, 5 }
   0xd   :  { %v1535_v33 = vpop.eup %1534  ;;  %v231_v34 = vmul.f32 %v1533_v30, %v1738_v26  ;;  %1544 = vtanh.f32 %v152_v31  ;;  %v156_v58 = vadd.f32 %v92_v48, %v1722_v1  ;;  %v157_v61 = vadd.f32 %v93_v52, %v1722_v1 }
   0xe   :  { %v223_v37 = vmul.f32 %v1535_v33, %v1741_v28  ;;  %1546 = vtanh.f32 %v153_v35  ;;  %v95_v62 = vperm.slane %v65_v53, 0  ;;  %v97_v4 = vperm.slane %v67_v54, 0  ;;  %v1795_v33 = vld [vmem:[%s2506_s0 + $0x18] sm:$0xff] }
   0xf   :  { %v1537_v39 = vpop.eup %1536  ;;  %v280_v40 = vsel %vm37_vm0, %v231_v34, 0.0  ;;  %1548 = vtanh.f32 %v154_v41  ;;  %v68_v6 = vrot.slane %v1717_v0, 7  ;;  %v96_v12 = vperm.slane %v66_v63, 0 }
  0x10   :  { %v1539_v42 = vpop.eup %1538  ;;  %281 = vadd.xlane.f32.xlu2 %v280_v40  ;;  %v256_v43 = vsel %vm37_vm0, %v223_v37, 0.0  ;;  %v225_v44 = vmul.f32 %v1537_v39, %v1741_v28  ;;  %1550 = vtanh.f32 %v158_v56  ;;  %v159_v11 = vadd.f32 %v95_v62, %v1722_v1 }
  0x11   :  { %v1541_v46 = vpop.eup %1540  ;;  %257 = vadd.xlane.f32.xlu0 %v256_v43  ;;  %v227_v47 = vmul.f32 %v1539_v42, %v1741_v28  ;;  %1552 = vtanh.f32 %v156_v58  ;;  %v161_v13 = vadd.f32 %v97_v4, %v1722_v1  ;;  %v69_v0 = vrot.slane %v1768_v7, 1  ;;  %v1806_v42 = vld [vmem:[%s2507_s1 + $0x18] sm:$0xff] }
  0x12   :  { %v1543_v49 = vpop.eup %1542  ;;  %v262_v50 = vsel %vm37_vm0, %v225_v44, 0.0  ;;  %v224_v51 = vmul.f32 %v1541_v46, %v1741_v28  ;;  %1554 = vtanh.f32 %v157_v61  ;;  %v98_v15 = vperm.slane %v68_v6, 0 }
  0x13   :  { %263 = vadd.xlane.f32.xlu1 %v262_v50  ;;  %v226_v55 = vmul.f32 %v1543_v49, %v1741_v28  ;;  %v268_v57 = vsel %vm37_vm0, %v227_v47, 0.0  ;;  %v1545_v59 = vpop.eup %1544  ;;  %v99_v17 = vperm.slane %v1768_v7, 0  ;;  %1556 = vtanh.f32 %v159_v11 }
  0x14   :  { %v259_v60 = vsel %vm37_vm0, %v224_v51, 0.0  ;;  %v1547_v3 = vpop.eup %1546  ;;  %v228_v9 = vmul.f32 %v1545_v59, %v1741_v28  ;;  %v160_v20 = vadd.f32 %v96_v12, %v1722_v1  ;;  %1558 = vtanh.f32 %v161_v13 }
  0x15   :  { %v265_v5 = vsel %vm37_vm0, %v226_v55, 0.0  ;;  %v1549_v8 = vpop.eup %1548  ;;  %v229_v10 = vmul.f32 %v1547_v3, %v1741_v28  ;;  %v100_v23 = vperm.slane %v69_v0, 0  ;;  %v162_v27 = vadd.f32 %v98_v15, %v1722_v1 }
  0x16   :  { %v230_v14 = vmul.f32 %v1549_v8, %v1741_v28  ;;  %v271_v16 = vsel %vm37_vm0, %v228_v9, 0.0  ;;  %v1551_v18 = vpop.eup %1550  ;;  %v70_v28 = vrot.slane %v1768_v7, 2  ;;  %v163_v30 = vadd.f32 %v99_v17, %v1783_v21 }
  0x17   :  { %v274_v19 = vsel %vm37_vm0, %v229_v10, 0.0  ;;  %v1553_v22 = vpop.eup %1552  ;;  %v234_v29 = vmul.f32 %v1551_v18, %v1738_v26  ;;  %1560 = vtanh.f32 %v160_v20  ;;  %v72_v32 = vrot.slane %v1768_v7, 4 }
  0x18   :  { %269 = vadd.xlane.f32.xlu2 %v268_v57  ;;  %v1555_v24 = vpop.eup %1554  ;;  %v277_v25 = vsel %vm37_vm0, %v230_v14, 0.0  ;;  %v232_v31 = vmul.f32 %v1553_v22, %v1738_v26  ;;  %v164_v34 = vadd.f32 %v100_v23, %v1783_v21  ;;  %v76_v35 = vrot.slane %v1795_v33, 1 }
  0x19   :  { %260 = vadd.xlane.f32.xlu0 %v259_v60  ;;  %v233_v1 = vmul.f32 %v1555_v24, %v1738_v26  ;;  %v1557_v36 = vpop.eup %1556  ;;  %1562 = vtanh.f32 %v162_v27  ;;  %v101_v37 = vperm.slane %v70_v28, 0  ;;  %v107_v38 = vperm.slane %v1795_v33, 0 }
  0x1a   :  { %v1559_v39 = vpop.eup %1558  ;;  %v289_v40 = vsel %vm37_vm0, %v234_v29, 0.0  ;;  %1564 = vtanh.f32 %v163_v30  ;;  %v213_v41 = vrot.slane %v1727_v2, 2  ;;  %v108_v43 = vperm.slane %v76_v35, 0 }
  0x1b   :  { %266 = vadd.xlane.f32.xlu1 %v265_v5  ;;  %v283_v44 = vsel %vm37_vm0, %v232_v31, 0.0  ;;  %v71_v45 = vrot.slane %v1768_v7, 3  ;;  %v103_v46 = vperm.slane %v72_v32, 0  ;;  %v171_v47 = vadd.f32 %v107_v38, %v1806_v42 }
  0x1c   :  { %v286_v48 = vsel %vm37_vm0, %v233_v1, 0.0  ;;  %1566 = vtanh.f32 %v164_v34  ;;  %v172_v49 = vadd.f32 %v108_v43, %v1806_v42  ;;  %v235_v51 = vmul.f32 %v1557_v36, %v1738_v26 }
  0x1d   :  { %v1561_v50 = vpop.eup %1560  ;;  %v237_v52 = vmul.f32 %v1559_v39, %v1738_v26  ;;  %v165_v53 = vadd.f32 %v101_v37, %v1783_v21  ;;  %1568 = vtanh.f32 %v171_v47  ;;  %v1816_v54 = vperm.slane %v213_v41, 0 }
  0x1e   :  { %v73_v55 = vrot.slane %v1768_v7, 5  ;;  %1570 = vtanh.f32 %v172_v49  ;;  %v77_v56 = vrot.slane %v1795_v33, 2  ;;  %v102_v58 = vperm.slane %v71_v45, 0 }
  0x1f   :  { %v1563_v57 = vpop.eup %1562  ;;  %v167_v59 = vadd.f32 %v103_v46, %v1783_v21  ;;  %v75_v60 = vrot.slane %v1768_v7, 7  ;;  %v78_v61 = vrot.slane %v1795_v33, 3  ;;  %v236_v63 = vmul.f32 %v1561_v50, %v1738_v26 }
  0x20   :  { %272 = vadd.xlane.f32.xlu2 %v271_v16  ;;  %v1565_v62 = vpop.eup %1564  ;;  %v214_v3 = vrot.slane %v1727_v2, 3  ;;  %v109_v4 = vperm.slane %v77_v56, 0  ;;  %v79_v5 = vrot.slane %v1795_v33, 4  ;;  %v292_v6 = vsel %vm37_vm0, %v235_v51, 0.0 }
  0x21   :  { %275 = vadd.xlane.f32.xlu0 %v274_v19  ;;  %v298_v8 = vsel %vm37_vm0, %v237_v52, 0.0  ;;  %1572 = vtanh.f32 %v165_v53  ;;  %v110_v9 = vperm.slane %v78_v61, 0  ;;  %v104_v11 = vperm.slane %v73_v55, 0 }
  0x22   :  { %v1567_v10 = vpop.eup %1566  ;;  %v1828_v12 = vperm.slane %v214_v3, 0  ;;  %v173_v13 = vadd.f32 %v109_v4, %v1806_v42  ;;  %v111_v0 = vperm.slane %v79_v5, 0  ;;  %v166_v15 = vadd.f32 %v102_v58, %v1783_v21 }
  0x23   :  { %278 = vadd.xlane.f32.xlu1 %v277_v25  ;;  %v1569_v14 = vpop.eup %1568  ;;  %1574 = vtanh.f32 %v167_v59  ;;  %v106_v2 = vperm.slane %v75_v60, 0  ;;  %v174_v16 = vadd.f32 %v110_v9, %v1806_v42  ;;  %v74_v18 = vrot.slane %v1768_v7, 6 }
  0x24   :  { %v1571_v17 = vpop.eup %1570  ;;  %v1835_v19 = vmul.f32 %v1569_v14, %v1828_v12  ;;  %1576 = vtanh.f32 %v173_v13  ;;  %v175_v20 = vadd.f32 %v111_v0, %v1806_v42  ;;  %v295_v22 = vsel %vm37_vm0, %v236_v63, 0.0 }
  0x25   :  { %v1840_v23 = vmul.f32 %v1571_v17, %v1828_v12  ;;  %1578 = vtanh.f32 %v174_v16  ;;  %v240_v24 = vmul.f32 %v1567_v10, %v1816_v54  ;;  %v168_v25 = vadd.f32 %v104_v11, %v1783_v21 }
  0x26   :  { %1580 = vtanh.f32 %v175_v20  ;;  %v80_v7 = vrot.slane %v1795_v33, 5  ;;  %v238_v28 = vmul.f32 %v1563_v57, %v1738_v26  ;;  %v170_v29 = vadd.f32 %v106_v2, %v1783_v21 }
  0x27   :  { %v1573_v27 = vpop.eup %1572  ;;  %v81_v30 = vrot.slane %v1795_v33, 6  ;;  %1582 = vtanh.f32 %v166_v15  ;;  %v105_v31 = vperm.slane %v74_v18, 0  ;;  %v82_v1 = vrot.slane %v1795_v33, 7 }
  0x28   :  { %290 = vadd.xlane.f32.xlu2 %v289_v40  ;;  %v112_v32 = vperm.slane %v80_v7, 0  ;;  %v239_v35 = vmul.f32 %v1565_v62, %v1816_v54  ;;  %v307_v38 = vsel %vm37_vm0, %v240_v24, 0.0  ;;  %1584 = vtanh.f32 %v168_v25 }
  0x29   :  { %284 = vadd.xlane.f32.xlu0 %v283_v44  ;;  %v1575_v34 = vpop.eup %1574  ;;  %v113_v36 = vperm.slane %v81_v30, 0  ;;  %v114_v39 = vperm.slane %v82_v1, 0  ;;  %v301_v41 = vsel %vm37_vm0, %v238_v28, 0.0  ;;  %1586 = vtanh.f32 %v170_v29 }
  0x2a   :  { %v1577_v37 = vpop.eup %1576  ;;  %v176_v26 = vadd.f32 %v112_v32, %v1806_v42  ;;  %v169_v45 = vadd.f32 %v105_v31, %v1783_v21  ;;  %v243_v51 = vmul.f32 %v1575_v34, %v1816_v54  ;;  %v241_v52 = vmul.f32 %v1573_v27, %v1816_v54 }
  0x2b   :  { %287 = vadd.xlane.f32.xlu1 %v286_v48  ;;  %v1579_v40 = vpop.eup %1578  ;;  %v249_v43 = vmul.f32 %v1577_v37, %v1828_v12  ;;  %v177_v44 = vadd.f32 %v113_v36, %v1806_v42  ;;  %v178_v47 = vadd.f32 %v114_v39, %v1806_v42  ;;  %v304_v48 = vsel %vm37_vm0, %v239_v35, 0.0 }
  0x2c   :  { %v1581_v33 = vpop.eup %1580  ;;  %v250_v46 = vmul.f32 %v1579_v40, %v1828_v12  ;;  %1588 = vtanh.f32 %v176_v26  ;;  %v316_v56 = vsel %vm37_vm0, %v243_v51, 0.0  ;;  %v310_v58 = vsel %vm37_vm0, %v241_v52, 0.0 }
  0x2d   :  { %v251_v49 = vmul.f32 %v1581_v33, %v1828_v12  ;;  %1590 = vtanh.f32 %v177_v44  ;;  %v1583_v50 = vpop.eup %1582  ;;  %v334_v11 = vsel %vm37_vm0, %v249_v43, 0.0  ;;  %v331_v13 = vsel %vm37_vm0, %v1840_v23, 0.0 }
  0x2e   :  { %1592 = vtanh.f32 %v178_v47  ;;  %v1585_v53 = vpop.eup %1584  ;;  %v242_v55 = vmul.f32 %v1583_v50, %v1816_v54  ;;  %v337_v0 = vsel %vm37_vm0, %v250_v46, 0.0  ;;  %v388_v18 = vlaneseq }
  0x2f   :  { %1594 = vtanh.f32 %v169_v45  ;;  %v1587_v21 = vpop.eup %1586  ;;  %v244_v5 = vmul.f32 %v1585_v53, %v1816_v54  ;;  %v340_v14 = vsel %vm37_vm0, %v251_v49, 0.0  ;;  %vm434_vm7 = vcmask 1047559  }
  0x30   :  { %299 = vadd.xlane.f32.xlu2 %v298_v8  ;;  %v313_v62 = vsel %vm37_vm0, %v242_v55, 0.0  ;;  %v246_v4 = vmul.f32 %v1587_v21, %v1816_v54  ;;  %v1891_v20 = vand.u32 127, %v388_v18  ;;  %vm461_vm8 = vcmask 64512  }
  0x31   :  { %293 = vadd.xlane.f32.xlu0 %v292_v6  ;;  %v319_v9 = vsel %vm37_vm0, %v244_v5, 0.0  ;;  %vm28_vm9 = vcmask 7168   ;;  %vm998_vm10 = vcmask 1043456  }
  0x32   :  { %v1589_v42 = vpop.eup %1588  ;;  %v325_v8 = vsel %vm37_vm0, %v246_v4, 0.0 }
  0x33   :  { %296 = vadd.xlane.f32.xlu1 %v295_v22  ;;  %v1591_v57 = vpop.eup %1590  ;;  %v252_v59 = vmul.f32 %v1589_v42, %v1828_v12 }
  0x34   :  { %v1593_v60 = vpop.eup %1592  ;;  %v253_v61 = vmul.f32 %v1591_v57, %v1828_v12 }
  0x35   :  { %v254_v63 = vmul.f32 %v1593_v60, %v1828_v12  ;;  %v1595_v3 = vpop.eup %1594  ;;  %v328_v12 = vsel %vm37_vm0, %v1835_v19, 0.0 }
  0x36   :  { %v245_v6 = vmul.f32 %v1595_v3, %v1816_v54  ;;  %v343_v54 = vsel %vm37_vm0, %v252_v59, 0.0  ;;  %v346_v15 = vsel %vm37_vm0, %v253_v61, 0.0 }
  0x37   :  { %v349_v2 = vsel %vm37_vm0, %v254_v63, 0.0 }
  0x38   :  { %308 = vadd.xlane.f32.xlu2 %v307_v38  ;;  %v322_v10 = vsel %vm37_vm0, %v245_v6, 0.0 }
  0x39   :  { %302 = vadd.xlane.f32.xlu0 %v301_v41 }
  0x3b   :  { %305 = vadd.xlane.f32.xlu1 %v304_v48 }
  0x40   :  { %317 = vadd.xlane.f32.xlu2 %v316_v56 }
  0x41   :  { %311 = vadd.xlane.f32.xlu0 %v310_v58 }
  0x43   :  { %314 = vadd.xlane.f32.xlu1 %v313_v62 }
  0x48   :  { %326 = vadd.xlane.f32.xlu2 %v325_v8 }
  0x49   :  { %320 = vadd.xlane.f32.xlu0 %v319_v9 }
  0x4b   :  { %323 = vadd.xlane.f32.xlu1 %v322_v10 }
  0x50   :  { %335 = vadd.xlane.f32.xlu2 %v334_v11 }
  0x51   :  { %329 = vadd.xlane.f32.xlu0 %v328_v12 }
  0x53   :  { %332 = vadd.xlane.f32.xlu1 %v331_v13 }
  0x58   :  { %344 = vadd.xlane.f32.xlu2 %v343_v54 }
  0x59   :  { %338 = vadd.xlane.f32.xlu0 %v337_v0 }
  0x5b   :  { %341 = vadd.xlane.f32.xlu1 %v340_v14 }
  0x61   :  { %347 = vadd.xlane.f32.xlu0 %v346_v15 }
  0x63   :  { %350 = vadd.xlane.f32.xlu1 %v349_v2 }
  0x83   :  { %v1885_v16 = vpop.xlane.xlu2 %281 }
  0x84   :  { %v1887_v17 = vpop.xlane.xlu0 %257  ;;  %v398_v47 = vperm.slane %v1885_v16, %v1891_v20 }
  0x85   :  { %v390_v24 = vperm.slane %v1887_v17, %v1891_v20 }
  0x86   :  { %v1889_v19 = vpop.xlane.xlu1 %263 }
  0x87   :  { %v392_v7 = vperm.slane %v1889_v19, %v1891_v20 }
  0x8b   :  { %v1893_v22 = vpop.xlane.xlu2 %269 }
  0x8c   :  { %v1895_v23 = vpop.xlane.xlu0 %260  ;;  %v394_v32 = vperm.slane %v1893_v22, %v1891_v20 }
  0x8d   :  { %v391_v25 = vperm.slane %v1895_v23, %v1891_v20 }
  0x8e   :  { %v1903_v27 = vpop.xlane.xlu1 %266 }
  0x8f   :  { %v423_v28 = vsel %vm422_vm1, %v391_v25, %v390_v24  ;;  %v393_v29 = vperm.slane %v1903_v27, %v1891_v20  ;;  %v1676_v25 = vmov -inf  }
  0x90   :  { %v425_v30 = vsel %vm424_vm2, %v392_v7, %v423_v28  ;;  %29 = vst.msk [vmem:[#allocation2] sm:$0xff] %vm28_vm9, %v1676_v25 }
  0x91   :  { %v427_v31 = vsel %vm426_vm3, %v393_v29, %v425_v30  ;;  %30 = vst.msk [vmem:[#allocation2 + $0x8] sm:$0xff] %vm28_vm9, %v1676_v25 }
  0x92   :  { %v429_v37 = vsel %vm428_vm4, %v394_v32, %v427_v31  ;;  %31 = vst.msk [vmem:[#allocation2 + $0x10] sm:$0xff] %vm28_vm9, %v1676_v25 }
  0x93   :  { %v1912_v1 = vpop.xlane.xlu2 %272  ;;  %32 = vst.msk [vmem:[#allocation2 + $0x18] sm:$0xff] %vm28_vm9, %v1676_v25 }
  0x94   :  { %v395_v34 = vperm.slane %v1912_v1, %v1891_v20  ;;  %v1916_v35 = vpop.xlane.xlu0 %275 }
  0x95   :  { %v396_v36 = vperm.slane %v1916_v35, %v1891_v20 }
  0x96   :  { %v1921_v38 = vpop.xlane.xlu1 %278  ;;  %v431_v26 = vsel %vm430_vm5, %v395_v34, %v429_v37 }
  0x97   :  { %v397_v39 = vperm.slane %v1921_v38, %v1891_v20  ;;  %v433_v40 = vsel %vm432_vm6, %v396_v36, %v431_v26 }
  0x99   :  { %v435_v41 = vsel %vm434_vm7, %v397_v39, %v433_v40 }
  0x9a   :  { %v462_v43 = vsel %vm461_vm8, %v435_v41, -inf }
  0x9b   :  { %463 = vmax.xlane.f32.xlu2 %v462_v43  ;;  %v1929_v44 = vpop.xlane.xlu2 %290 }
  0x9c   :  { %v1931_v33 = vpop.xlane.xlu0 %284  ;;  %v401_v50 = vperm.slane %v1929_v44, %v1891_v20 }
  0x9d   :  { %v399_v45 = vperm.slane %v1931_v33, %v1891_v20 }
  0x9e   :  { %v1935_v46 = vpop.xlane.xlu1 %287 }
  0x9f   :  { %v400_v48 = vperm.slane %v1935_v46, %v1891_v20  ;;  %v436_v49 = vsel %vm422_vm1, %v399_v45, %v398_v47 }
  0xa1   :  { %v437_v52 = vsel %vm424_vm2, %v400_v48, %v436_v49 }
  0xa2   :  { %v438_v42 = vsel %vm426_vm3, %v401_v50, %v437_v52 }
  0xa3   :  { %v1944_v51 = vpop.xlane.xlu2 %299 }
  0xa4   :  { %v1947_v53 = vpop.xlane.xlu0 %293  ;;  %v404_v58 = vperm.slane %v1944_v51, %v1891_v20 }
  0xa5   :  { %v402_v21 = vperm.slane %v1947_v53, %v1891_v20 }
  0xa6   :  { %v1951_v55 = vpop.xlane.xlu1 %296 }
  0xa7   :  { %v403_v56 = vperm.slane %v1951_v55, %v1891_v20  ;;  %v439_v57 = vsel %vm428_vm4, %v402_v21, %v438_v42 }
  0xa9   :  { %v440_v60 = vsel %vm430_vm5, %v403_v56, %v439_v57 }
  0xaa   :  { %v441_v3 = vsel %vm432_vm6, %v404_v58, %v440_v60 }
  0xab   :  { %v1959_v59 = vpop.xlane.xlu2 %308 }
  0xac   :  { %v1962_v61 = vpop.xlane.xlu0 %302  ;;  %v407_v6 = vperm.slane %v1959_v59, %v1891_v20 }
  0xad   :  { %v405_v62 = vperm.slane %v1962_v61, %v1891_v20 }
  0xae   :  { %v1966_v63 = vpop.xlane.xlu1 %305 }
  0xaf   :  { %v442_v4 = vsel %vm434_vm7, %v405_v62, %v441_v3  ;;  %v406_v5 = vperm.slane %v1966_v63, %v1891_v20 }
  0xb0   :  { %v465_v8 = vsel %vm461_vm8, %v442_v4, -inf }
  0xb1   :  { %466 = vmax.xlane.f32.xlu0 %v465_v8  ;;  %v443_v10 = vsel %vm422_vm1, %v407_v6, %v406_v5 }
  0xb3   :  { %v1975_v9 = vpop.xlane.xlu2 %317 }
  0xb4   :  { %v1978_v11 = vpop.xlane.xlu0 %311  ;;  %v410_v14 = vperm.slane %v1975_v9, %v1891_v20 }
  0xb5   :  { %v408_v12 = vperm.slane %v1978_v11, %v1891_v20 }
  0xb6   :  { %v1982_v13 = vpop.xlane.xlu1 %314 }
  0xb7   :  { %v444_v54 = vsel %vm424_vm2, %v408_v12, %v443_v10  ;;  %v409_v0 = vperm.slane %v1982_v13, %v1891_v20  ;;  %v1677_v10 = vmov 0   ;;  %v2051_v12 = vld [vmem:[#allocation2] sm:$0xff] }
  0xb8   :  { %1528 = vset.pattern.permute.xlu0 %v1677_v10  ;;  %1529 = vset.pattern.permute.xlu1 %v1677_v10 }
  0xb9   :  { %v445_v15 = vsel %vm426_vm3, %v409_v0, %v444_v54  ;;  %1530 = vset.pattern.permute.xlu2 %v1677_v10 }
  0xba   :  { %v446_v18 = vsel %vm428_vm4, %v410_v14, %v445_v15  ;;  %v1678_v15 = vmov 0.0  }
  0xbb   :  { %v1990_v2 = vpop.xlane.xlu2 %326  ;;  %33 = vst.msk [vmem:[#allocation3] sm:$0xff] %vm28_vm9, %v1678_v15 }
  0xbc   :  { %v1993_v24 = vpop.xlane.xlu0 %320  ;;  %v413_v29 = vperm.slane %v1990_v2, %v1891_v20  ;;  %34 = vst.msk [vmem:[#allocation3 + $0x8] sm:$0xff] %vm28_vm9, %v1678_v15 }
  0xbd   :  { %v411_v7 = vperm.slane %v1993_v24, %v1891_v20  ;;  %35 = vst.msk [vmem:[#allocation3 + $0x10] sm:$0xff] %vm28_vm9, %v1678_v15 }
  0xbe   :  { %v1999_v28 = vpop.xlane.xlu1 %323  ;;  %36 = vst.msk [vmem:[#allocation3 + $0x18] sm:$0xff] %vm28_vm9, %v1678_v15 }
  0xbf   :  { %v412_v30 = vperm.slane %v1999_v28, %v1891_v20  ;;  %v447_v31 = vsel %vm430_vm5, %v411_v7, %v446_v18  ;;  %v2063_v18 = vld [vmem:[#allocation2 + $0x8] sm:$0xff]  ;;  %38 = vst.msk [vmem:[#allocation4] sm:$0xff] %vm37_vm0, %v1678_v15 }
  0xc0   :  { %39 = vst.msk [vmem:[#allocation4 + $0x8] sm:$0xff] %vm37_vm0, %v1678_v15 }
  0xc1   :  { %v448_v32 = vsel %vm432_vm6, %v412_v30, %v447_v31  ;;  %40 = vst.msk [vmem:[#allocation4 + $0x10] sm:$0xff] %vm37_vm0, %v1678_v15  ;;  %v2079_v30 = vld [vmem:[#allocation2 + $0x10] sm:$0xff] }
  0xc2   :  { %v449_v34 = vsel %vm434_vm7, %v413_v29, %v448_v32  ;;  %41 = vst.msk [vmem:[#allocation4 + $0x18] sm:$0xff] %vm37_vm0, %v1678_v15 }
  0xc3   :  { %v468_v36 = vsel %vm461_vm8, %v449_v34, -inf  ;;  %v2011_v37 = vpop.xlane.xlu2 %335 }
  0xc4   :  { %469 = vmax.xlane.f32.xlu1 %v468_v36  ;;  %v2013_v26 = vpop.xlane.xlu0 %329  ;;  %v416_v43 = vperm.slane %v2011_v37, %v1891_v20  ;;  %v2089_v36 = vld [vmem:[#allocation2 + $0x18] sm:$0xff] }
  0xc5   :  { %v414_v39 = vperm.slane %v2013_v26, %v1891_v20 }
  0xc6   :  { %v2017_v40 = vpop.xlane.xlu1 %332 }
  0xc7   :  { %v415_v41 = vperm.slane %v2017_v40, %v1891_v20 }
  0xc9   :  { %v450_v45 = vsel %vm422_vm1, %v415_v41, %v414_v39 }
  0xca   :  { %v451_v47 = vsel %vm424_vm2, %v416_v43, %v450_v45 }
  0xcb   :  { %v2029_v50 = vpop.xlane.xlu2 %344 }
  0xcc   :  { %v2025_v48 = vpop.xlane.xlu0 %338  ;;  %v419_v56 = vperm.slane %v2029_v50, %v1891_v20 }
  0xcd   :  { %v417_v49 = vperm.slane %v2025_v48, %v1891_v20 }
  0xce   :  { %v2031_v52 = vpop.xlane.xlu1 %341 }
  0xcf   :  { %v452_v21 = vsel %vm426_vm3, %v417_v49, %v451_v47  ;;  %v418_v42 = vperm.slane %v2031_v52, %v1891_v20 }
  0xd1   :  { %v453_v57 = vsel %vm428_vm4, %v418_v42, %v452_v21 }
  0xd2   :  { %v454_v60 = vsel %vm430_vm5, %v419_v56, %v453_v57 }
  0xd4   :  { %v2039_v58 = vpop.xlane.xlu0 %347 }
  0xd5   :  { %v420_v62 = vperm.slane %v2039_v58, %v1891_v20 }
  0xd6   :  { %v2044_v3 = vpop.xlane.xlu1 %350 }
  0xd7   :  { %v421_v4 = vperm.slane %v2044_v3, %v1891_v20  ;;  %v455_v5 = vsel %vm432_vm6, %v420_v62, %v454_v60 }
  0xd9   :  { %v456_v6 = vsel %vm434_vm7, %v421_v4, %v455_v5 }
  0xda   :  { %v471_v8 = vsel %vm461_vm8, %v456_v6, -inf }
  0xdb   :  { %472 = vmax.xlane.f32.xlu2 %v471_v8 }
 0x10e   :  { %v464_v54 = vpop.xlane.xlu2 %463 }
 0x10f   :  { %v2054_v0 = vmax.f32 %v2051_v12, %v464_v54 }
 0x111   :  { %v478_v14 = vsub.f32 %v2051_v12, %v2054_v0  ;;  %1324 = vst.msk [vmem:[#allocation2] sm:$0xff] %vm28_vm9, %v2054_v0  ;;  %492 = vperm.xlu0 %1528, %v2054_v0  }
 0x124   :  { %v467_v25 = vpop.xlane.xlu0 %466 }
 0x125   :  { %v2069_v7 = vmax.f32 %v2063_v18, %v467_v25 }
 0x127   :  { %v479_v29 = vsub.f32 %v2063_v18, %v2069_v7  ;;  %1325 = vst.msk [vmem:[#allocation2 + $0x8] sm:$0xff] %vm28_vm9, %v2069_v7  ;;  %496 = vperm.xlu1 %1529, %v2069_v7  }
 0x137   :  { %v470_v31 = vpop.xlane.xlu1 %469 }
 0x138   :  { %v2082_v32 = vmax.f32 %v2079_v30, %v470_v31 }
 0x13a   :  { %v480_v34 = vsub.f32 %v2079_v30, %v2082_v32  ;;  %1326 = vst.msk [vmem:[#allocation2 + $0x10] sm:$0xff] %vm28_vm9, %v2082_v32  ;;  %500 = vperm.xlu2 %1530, %v2082_v32  }
 0x14e   :  { %v473_v39 = vpop.xlane.xlu2 %472 }
 0x14f   :  { %v2092_v41 = vmax.f32 %v2089_v36, %v473_v39 }
 0x151   :  { %v481_v43 = vsub.f32 %v2089_v36, %v2092_v41  ;;  %1327 = vst.msk [vmem:[#allocation2 + $0x18] sm:$0xff] %vm28_vm9, %v2092_v41  ;;  %504 = vperm.xlu2 %1530, %v2092_v41  }
 0x183   :  { %v493_v45 = vpop.permute.xlu0 %492 }
 0x184   :  { %v509_v47 = vperm.slane %v493_v45, 3  ;;  %v507_v49 = vperm.slane %v493_v45, 1  ;;  %v506_v21 = vperm.slane %v493_v45, 0  ;;  %v512_v60 = vperm.slane %v493_v45, 6 }
 0x185   :  { %v510_v62 = vperm.slane %v493_v45, 4  ;;  %v508_v4 = vperm.slane %v493_v45, 2  ;;  %v513_v25 = vperm.slane %v493_v45, 7  ;;  %v511_v31 = vperm.slane %v493_v45, 5 }
 0x186   :  { %v573_v42 = vsub.f32 %v1903_v27, %v509_v47  ;;  %v571_v56 = vsub.f32 %v1895_v23, %v507_v49  ;;  %v570_v57 = vsub.f32 %v1887_v17, %v506_v21  ;;  %v576_v10 = vsub.f32 %v1916_v35, %v512_v60 }
 0x187   :  { %v574_v54 = vsub.f32 %v1893_v22, %v510_v62  ;;  %v572_v15 = vsub.f32 %v1889_v19, %v508_v4  ;;  %v577_v22 = vsub.f32 %v1921_v38, %v513_v25  ;;  %v575_v19 = vsub.f32 %v1912_v1, %v511_v31 }
 0x188   :  { %v608_v5 = vmul.f32 1.442695, %v573_v42  ;;  %v604_v6 = vmul.f32 1.442695, %v571_v56  ;;  %v602_v8 = vmul.f32 1.442695, %v570_v57 }
 0x189   :  { %v614_v27 = vmul.f32 1.442695, %v576_v10  ;;  %v610_v23 = vmul.f32 1.442695, %v574_v54  ;;  %v606_v39 = vmul.f32 1.442695, %v572_v15 }
 0x18a   :  { %1596 = vpow2.f32 %v608_v5  ;;  %v616_v35 = vmul.f32 1.442695, %v577_v22  ;;  %v612_v45 = vmul.f32 1.442695, %v575_v19 }
 0x18b   :  { %1598 = vpow2.f32 %v604_v6 }
 0x18c   :  { %1600 = vpow2.f32 %v602_v8 }
 0x18d   :  { %1602 = vpow2.f32 %v614_v27 }
 0x18e   :  { %1604 = vpow2.f32 %v610_v23 }
 0x18f   :  { %1606 = vpow2.f32 %v606_v39 }
 0x190   :  { %v2105_v17 = vpop.eup %1596  ;;  %1608 = vpow2.f32 %v616_v35 }
 0x191   :  { %v2107_v47 = vpop.eup %1598  ;;  %716 = vperm.xlu0 %1528, %v2105_v17   ;;  %1610 = vpow2.f32 %v612_v45 }
 0x192   :  { %v2110_v49 = vpop.eup %1600  ;;  %710 = vperm.xlu2 %1530, %v2107_v47  }
 0x193   :  { %707 = vperm.xlu1 %1529, %v2110_v49   ;;  %v2116_v21 = vpop.eup %1602 }
 0x194   :  { %v2118_v42 = vpop.eup %1604 }
 0x195   :  { %v2121_v57 = vpop.eup %1606 }
 0x196   :  { %v2128_v15 = vpop.eup %1608 }
 0x197   :  { %v2131_v31 = vpop.eup %1610 }
 0x199   :  { %v497_v56 = vpop.permute.xlu1 %496  ;;  %725 = vperm.xlu0 %1528, %v2116_v21  }
 0x19a   :  { %719 = vperm.xlu2 %1530, %v2118_v42   ;;  %v515_v38 = vperm.slane %v497_v56, 1  ;;  %v516_v60 = vperm.slane %v497_v56, 2  ;;  %v514_v62 = vperm.slane %v497_v56, 0  ;;  %v518_v6 = vperm.slane %v497_v56, 4 }
 0x19b   :  { %713 = vperm.xlu1 %1529, %v2121_v57   ;;  %v519_v54 = vperm.slane %v497_v56, 5  ;;  %v517_v23 = vperm.slane %v497_v56, 3  ;;  %v521_v22 = vperm.slane %v497_v56, 7 }
 0x19c   :  { %v579_v1 = vsub.f32 %v1931_v33, %v515_v38  ;;  %v580_v4 = vsub.f32 %v1935_v46, %v516_v60  ;;  %v578_v5 = vsub.f32 %v1885_v16, %v514_v62  ;;  %v582_v25 = vsub.f32 %v1947_v53, %v518_v6  ;;  %v2136_v33 = vpop.permute.xlu2 %500 }
 0x19d   :  { %v583_v16 = vsub.f32 %v1951_v55, %v519_v54  ;;  %v581_v39 = vsub.f32 %v1929_v44, %v517_v23  ;;  %v522_v35 = vperm.slane %v2136_v33, 0  ;;  %v585_v38 = vsub.f32 %v1962_v61, %v521_v22 }
 0x19e   :  { %v620_v8 = vmul.f32 1.442695, %v579_v1  ;;  %v622_v10 = vmul.f32 1.442695, %v580_v4  ;;  %v618_v27 = vmul.f32 1.442695, %v578_v5 }
 0x19f   :  { %v626_v46 = vmul.f32 1.442695, %v582_v25  ;;  %v628_v53 = vmul.f32 1.442695, %v583_v16  ;;  %v624_v45 = vmul.f32 1.442695, %v581_v39  ;;  %v586_v44 = vsub.f32 %v1966_v63, %v522_v35 }
 0x1a0   :  { %1612 = vpow2.f32 %v620_v8  ;;  %v520_v60 = vperm.slane %v497_v56, 6  ;;  %v632_v1 = vmul.f32 1.442695, %v585_v38  ;;  %v524_v5 = vperm.slane %v2136_v33, 2 }
 0x1a1   :  { %1614 = vpow2.f32 %v622_v10  ;;  %v525_v56 = vperm.slane %v2136_v33, 3  ;;  %v634_v8 = vmul.f32 1.442695, %v586_v44  ;;  %v523_v10 = vperm.slane %v2136_v33, 1 }
 0x1a2   :  { %728 = vperm.xlu2 %1530, %v2128_v15   ;;  %1616 = vpow2.f32 %v618_v27  ;;  %v584_v4 = vsub.f32 %v1944_v51, %v520_v60  ;;  %v588_v63 = vsub.f32 %v1978_v11, %v524_v5  ;;  %v527_v11 = vperm.slane %v2136_v33, 5 }
 0x1a3   :  { %722 = vperm.xlu1 %1529, %v2131_v31   ;;  %1618 = vpow2.f32 %v626_v46  ;;  %v589_v23 = vsub.f32 %v1982_v13, %v525_v56  ;;  %v587_v16 = vsub.f32 %v1959_v59, %v523_v10  ;;  %v526_v13 = vperm.slane %v2136_v33, 4 }
 0x1a4   :  { %1620 = vpow2.f32 %v628_v53  ;;  %v630_v54 = vmul.f32 1.442695, %v584_v4  ;;  %v638_v39 = vmul.f32 1.442695, %v588_v63  ;;  %v591_v59 = vsub.f32 %v1993_v24, %v527_v11 }
 0x1a5   :  { %1622 = vpow2.f32 %v624_v45  ;;  %v640_v35 = vmul.f32 1.442695, %v589_v23  ;;  %v636_v45 = vmul.f32 1.442695, %v587_v16 }
 0x1a6   :  { %v2139_v19 = vpop.eup %1612  ;;  %1624 = vpow2.f32 %v632_v1  ;;  %v644_v56 = vmul.f32 1.442695, %v591_v59 }
 0x1a7   :  { %734 = vperm.xlu0 %1528, %v2139_v19   ;;  %v2144_v55 = vpop.eup %1614  ;;  %1626 = vpow2.f32 %v634_v8 }
 0x1a8   :  { %v2146_v62 = vpop.eup %1616  ;;  %1628 = vpow2.f32 %v630_v54 }
 0x1a9   :  { %v2155_v61 = vpop.eup %1618  ;;  %1630 = vpow2.f32 %v638_v39 }
 0x1aa   :  { %737 = vperm.xlu2 %1530, %v2144_v55   ;;  %v2162_v51 = vpop.eup %1620  ;;  %1632 = vpow2.f32 %v640_v35 }
 0x1ab   :  { %731 = vperm.xlu1 %1529, %v2146_v62   ;;  %v2153_v6 = vpop.permute.xlu2 %504  ;;  %v2164_v25 = vpop.eup %1622  ;;  %1634 = vpow2.f32 %v636_v45 }
 0x1ac   :  { %v530_v27 = vperm.slane %v2153_v6, 0  ;;  %v531_v46 = vperm.slane %v2153_v6, 1  ;;  %v2173_v53 = vpop.eup %1624  ;;  %v532_v44 = vperm.slane %v2153_v6, 2 }
 0x1ad   :  { %v1627_v1 = vpop.eup %1626 }
 0x1ae   :  { %v594_v22 = vsub.f32 %v2013_v26, %v530_v27  ;;  %v595_v38 = vsub.f32 %v2017_v40, %v531_v46  ;;  %v2180_v4 = vpop.eup %1628  ;;  %v590_v26 = vsub.f32 %v1975_v9, %v526_v13  ;;  %v596_v40 = vsub.f32 %v2011_v37, %v532_v44 }
 0x1af   :  { %743 = vperm.xlu0 %1528, %v2155_v61   ;;  %v1631_v8 = vpop.eup %1630  ;;  %v903_v54 = vpack.c.bf16 %v1627_v1, %v1627_v1  ;;  %v534_v9 = vperm.slane %v2153_v6, 4  ;;  %v533_v37 = vperm.slane %v2153_v6, 3 }
 0x1b0   :  { %v650_v60 = vmul.f32 1.442695, %v594_v22  ;;  %v652_v5 = vmul.f32 1.442695, %v595_v38  ;;  %v642_v24 = vmul.f32 1.442695, %v590_v26  ;;  %v1633_v10 = vpop.eup %1632 }
 0x1b1   :  { %v654_v63 = vmul.f32 1.442695, %v596_v40  ;;  %v1635_v27 = vpop.eup %1634  ;;  %v1114_v16 = vunpack.c.l.b16 %v903_v54  ;;  %v598_v22 = vsub.f32 %v2031_v52, %v534_v9  ;;  %v597_v13 = vsub.f32 %v2025_v48, %v533_v37 }
 0x1b2   :  { %746 = vperm.xlu2 %1530, %v2162_v51   ;;  %1636 = vpow2.f32 %v650_v60  ;;  %v535_v38 = vperm.slane %v2153_v6, 5  ;;  %v904_v44 = vpack.c.bf16 %v1635_v27, %v1635_v27  ;;  %v906_v9 = vpack.c.bf16 %v1633_v10, %v1633_v10 }
 0x1b3   :  { %740 = vperm.xlu1 %1529, %v2164_v25   ;;  %1638 = vpow2.f32 %v652_v5  ;;  %v1493_v35 = vunpack.i.l.s16 %v1114_v16  ;;  %v658_v26 = vmul.f32 1.442695, %v598_v22  ;;  %v528_v5 = vperm.slane %v2136_v33, 6 }
 0x1b4   :  { %1640 = vpow2.f32 %v644_v56  ;;  %v656_v52 = vmul.f32 1.442695, %v597_v13  ;;  %v599_v40 = vsub.f32 %v2029_v50, %v535_v38  ;;  %v1115_v54 = vunpack.c.l.b16 %v904_v44 }
 0x1b5   :  { %1642 = vpow2.f32 %v642_v24  ;;  %v905_v22 = vpack.c.bf16 %v1631_v8, %v1631_v8  ;;  %v1117_v50 = vunpack.c.l.b16 %v906_v9 }
 0x1b6   :  { %1644 = vpow2.f32 %v654_v63  ;;  %v592_v63 = vsub.f32 %v1999_v28, %v528_v5  ;;  %v660_v16 = vmul.f32 1.442695, %v599_v40  ;;  %v1494_v37 = vunpack.i.l.s16 %v1115_v54 }
 0x1b7   :  { %752 = vperm.xlu0 %1528, %v2173_v53   ;;  %1646 = vpow2.f32 %v658_v26 }
 0x1b8   :  { %v2185_v23 = vpop.eup %1636  ;;  %1648 = vpow2.f32 %v656_v52 }
 0x1b9   :  { %v2189_v46 = vpop.eup %1638  ;;  %v911_v39 = vpack.c.bf16 %v2185_v23, %v2185_v23  ;;  %1650 = vpow2.f32 %v660_v16 }
 0x1ba   :  { %755 = vperm.xlu2 %1530, %v1627_v1   ;;  %v2193_v11 = vpop.eup %1640  ;;  %v912_v45 = vpack.c.bf16 %v2189_v46, %v2189_v46 }
 0x1bb   :  { %749 = vperm.xlu1 %1529, %v2180_v4   ;;  %v1643_v59 = vpop.eup %1642  ;;  %v1205_v60 = vunpack.c.l.b16 %v911_v39 }
 0x1bc   :  { %v2201_v1 = vpop.eup %1644  ;;  %v1206_v56 = vunpack.c.l.b16 %v912_v45  ;;  %v536_v45 = vperm.slane %v2153_v6, 6  ;;  %v907_v44 = vpack.c.bf16 %v1643_v59, %v1643_v59 }
 0x1bd   :  { %v1502_v24 = vunpack.i.l.s16 %v1205_v60  ;;  %v913_v48 = vpack.c.bf16 %v2201_v1, %v2201_v1  ;;  %v2209_v13 = vpop.eup %1646  ;;  %v1116_v60 = vunpack.c.l.b16 %v905_v22 }
 0x1be   :  { %v2211_v28 = vpop.eup %1648  ;;  %v600_v26 = vsub.f32 %v2039_v58, %v536_v45  ;;  %v537_v45 = vperm.slane %v2153_v6, 7 }
 0x1bf   :  { %761 = vperm.xlu0 %1528, %v1631_v8   ;;  %v1207_v39 = vunpack.c.l.b16 %v913_v48  ;;  %v915_v8 = vpack.c.bf16 %v2209_v13, %v2209_v13  ;;  %v1495_v5 = vunpack.i.l.s16 %v1116_v60  ;;  %v914_v52 = vpack.c.bf16 %v2211_v28, %v2211_v28  ;;  %v2218_v40 = vpop.eup %1650 }
 0x1c0   :  { %v662_v54 = vmul.f32 1.442695, %v600_v26  ;;  %v916_v58 = vpack.c.bf16 %v2218_v40, %v2218_v40 }
 0x1c1   :  { %v1504_v38 = vunpack.i.l.s16 %v1207_v39 }
 0x1c2   :  { %764 = vperm.xlu2 %1530, %v1633_v10   ;;  %v1496_v10 = vunpack.i.l.s16 %v1117_v50  ;;  %v1210_v22 = vunpack.c.l.b16 %v916_v58 }
 0x1c3   :  { %758 = vperm.xlu1 %1529, %v1635_v27   ;;  %v1503_v27 = vunpack.i.l.s16 %v1206_v56  ;;  %v1118_v56 = vunpack.c.l.b16 %v907_v44 }
 0x1c7   :  { %770 = vperm.xlu0 %1528, %v2193_v11  }
 0x1ca   :  { %1139 = vperm.xlu2 %1530, %v1493_v35   ;;  %v646_v35 = vmul.f32 1.442695, %v592_v63  ;;  %v1497_v63 = vunpack.i.l.s16 %v1118_v56 }
 0x1cb   :  { %767 = vperm.xlu1 %1529, %v1643_v59   ;;  %v529_v59 = vperm.slane %v2136_v33, 7  ;;  %v908_v33 = vpack.c.bf16 %v2193_v11, %v2193_v11  ;;  %v601_v11 = vsub.f32 %v2044_v3, %v537_v45 }
 0x1cc   :  { %1652 = vpow2.f32 %v646_v35 }
 0x1cd   :  { %v593_v9 = vsub.f32 %v1990_v2, %v529_v59  ;;  %1654 = vpow2.f32 %v662_v54  ;;  %v1119_v60 = vunpack.c.l.b16 %v908_v33  ;;  %v887_v2 = vpack.c.bf16 %v2110_v49, %v2110_v49 }
 0x1ce   :  { %v664_v49 = vmul.f32 1.442695, %v601_v11 }
 0x1cf   :  { %1230 = vperm.xlu0 %1528, %v1502_v24   ;;  %v1209_v24 = vunpack.c.l.b16 %v915_v8  ;;  %v648_v35 = vmul.f32 1.442695, %v593_v9  ;;  %v888_v8 = vpack.c.bf16 %v2107_v47, %v2107_v47  ;;  %v1498_v26 = vunpack.i.l.s16 %v1119_v60 }
 0x1d0   :  { %v895_v9 = vpack.c.bf16 %v2146_v62, %v2146_v62 }
 0x1d1   :  { %v1506_v16 = vunpack.i.l.s16 %v1209_v24  ;;  %1656 = vpow2.f32 %v648_v35 }
 0x1d2   :  { %1233 = vperm.xlu2 %1530, %v1503_v27   ;;  %v2221_v48 = vpop.eup %1652  ;;  %v1208_v27 = vunpack.c.l.b16 %v914_v52  ;;  %v932_v52 = vunpack.c.l.b16 %v888_v8  ;;  %1658 = vpow2.f32 %v664_v49 }
 0x1d3   :  { %1142 = vperm.xlu1 %1529, %v1494_v37   ;;  %v909_v37 = vpack.c.bf16 %v2221_v48, %v2221_v48  ;;  %v2233_v44 = vpop.eup %1654 }
 0x1d4   :  { %v1505_v39 = vunpack.i.l.s16 %v1208_v27  ;;  %v917_v6 = vpack.c.bf16 %v2233_v44, %v2233_v44  ;;  %v1476_v47 = vunpack.i.l.s16 %v932_v52 }
 0x1d5   :  { %v1120_v50 = vunpack.c.l.b16 %v909_v37 }
 0x1d6   :  { %v1211_v54 = vunpack.c.l.b16 %v917_v6  ;;  %v890_v6 = vpack.c.bf16 %v2105_v17, %v2105_v17 }
 0x1d7   :  { %1236 = vperm.xlu0 %1528, %v1504_v38   ;;  %v1507_v38 = vunpack.i.l.s16 %v1210_v22  ;;  %v2240_v59 = vpop.eup %1656  ;;  %v1023_v22 = vunpack.c.l.b16 %v895_v9 }
 0x1d8   :  { %v910_v3 = vpack.c.bf16 %v2240_v59, %v2240_v59  ;;  %v1508_v27 = vunpack.i.l.s16 %v1211_v54  ;;  %v2252_v33 = vpop.eup %1658 }
 0x1d9   :  { %v1484_v45 = vunpack.i.l.s16 %v1023_v22  ;;  %v918_v62 = vpack.c.bf16 %v2252_v33, %v2252_v33 }
 0x1da   :  { %1148 = vperm.xlu2 %1530, %v1496_v10   ;;  %v1499_v10 = vunpack.i.l.s16 %v1120_v50  ;;  %v1121_v37 = vunpack.c.l.b16 %v910_v3  ;;  %v897_v50 = vpack.c.bf16 %v2144_v55, %v2144_v55  ;;  %v891_v55 = vpack.c.bf16 %v2118_v42, %v2118_v42 }
 0x1db   :  { %1145 = vperm.xlu1 %1529, %v1495_v5   ;;  %v931_v5 = vunpack.c.l.b16 %v887_v2  ;;  %v1212_v8 = vunpack.c.l.b16 %v918_v62 }
 0x1dc   :  { %v1500_v35 = vunpack.i.l.s16 %v1121_v37  ;;  %v1025_v2 = vunpack.c.l.b16 %v897_v50  ;;  %v935_v49 = vunpack.c.l.b16 %v891_v55  ;;  %v901_v50 = vpack.c.bf16 %v2180_v4, %v2180_v4 }
 0x1dd   :  { %v1475_v24 = vunpack.i.l.s16 %v931_v5  ;;  %v893_v4 = vpack.c.bf16 %v2116_v21, %v2116_v21 }
 0x1de   :  { %v1486_v11 = vunpack.i.l.s16 %v1025_v2  ;;  %v1479_v17 = vunpack.i.l.s16 %v935_v49  ;;  %v894_v2 = vpack.c.bf16 %v2128_v15, %v2128_v15 }
 0x1df   :  { %1151 = vperm.xlu0 %1528, %v1497_v63   ;;  %v896_v63 = vpack.c.bf16 %v2139_v19, %v2139_v19  ;;  %v889_v19 = vpack.c.bf16 %v2121_v57, %v2121_v57  ;;  %v898_v57 = vpack.c.bf16 %v2164_v25, %v2164_v25  ;;  %v892_v25 = vpack.c.bf16 %v2131_v31, %v2131_v31 }
 0x1e0   :  { %v937_v49 = vunpack.c.l.b16 %v893_v4 }
 0x1e1   :  { %v1024_v58 = vunpack.c.l.b16 %v896_v63  ;;  %v1026_v5 = vunpack.c.l.b16 %v898_v57  ;;  %v934_v63 = vunpack.c.l.b16 %v890_v6  ;;  %v936_v37 = vunpack.c.l.b16 %v892_v25 }
 0x1e2   :  { %1242 = vperm.xlu2 %1530, %v1506_v16  }
 0x1e3   :  { %1239 = vperm.xlu1 %1529, %v1505_v39   ;;  %v1485_v39 = vunpack.i.l.s16 %v1024_v58  ;;  %v1487_v54 = vunpack.i.l.s16 %v1026_v5  ;;  %v900_v58 = vpack.c.bf16 %v2162_v51, %v2162_v51  ;;  %v1478_v9 = vunpack.i.l.s16 %v934_v63 }
 0x1e4   :  { %v902_v63 = vpack.c.bf16 %v2173_v53, %v2173_v53 }
 0x1e7   :  { %1245 = vperm.xlu0 %1528, %v1507_v38   ;;  %v933_v38 = vunpack.c.l.b16 %v889_v19  ;;  %v1480_v19 = vunpack.i.l.s16 %v936_v37 }
 0x1ea   :  { %1157 = vperm.xlu2 %1530, %v1499_v10   ;;  %v1477_v10 = vunpack.i.l.s16 %v933_v38 }
 0x1eb   :  { %1154 = vperm.xlu1 %1529, %v1498_v26   ;;  %v1509_v26 = vunpack.i.l.s16 %v1212_v8 }
 0x1ec   :  { %v711_v56 = vpop.permute.xlu2 %710 }
 0x1ef   :  { %956 = vperm.xlu0 %1528, %v1475_v24  }
 0x1f2   :  { %959 = vperm.xlu2 %1530, %v1476_v47   ;;  %v803_v47 = vperm.slane %v711_v56, %v1891_v20  ;;  %v1028_v56 = vunpack.c.l.b16 %v900_v58 }
 0x1f3   :  { %1248 = vperm.xlu1 %1529, %v1508_v27  }
 0x1f4   :  { %v2248_v16 = vpop.permute.xlu2 %719  ;;  %v1489_v62 = vunpack.i.l.s16 %v1028_v56 }
 0x1f5   :  { %v806_v38 = vperm.slane %v2248_v16, %v1891_v20  ;;  %v938_v16 = vunpack.c.l.b16 %v894_v2 }
 0x1f7   :  { %1051 = vperm.xlu0 %1528, %v1485_v39   ;;  %v899_v39 = vpack.c.bf16 %v2155_v61, %v2155_v61 }
 0x1fa   :  { %1160 = vperm.xlu2 %1530, %v1500_v35   ;;  %v1027_v35 = vunpack.c.l.b16 %v899_v39 }
 0x1fb   :  { %1048 = vperm.xlu1 %1529, %v1484_v45  }
 0x1fc   :  { %v2258_v60 = vpop.permute.xlu2 %728  ;;  %v1488_v57 = vunpack.i.l.s16 %v1027_v35 }
 0x1ff   :  { %962 = vperm.xlu0 %1528, %v1477_v10  }
 0x202   :  { %1054 = vperm.xlu2 %1530, %v1486_v11   ;;  %v1029_v11 = vunpack.c.l.b16 %v901_v50 }
 0x203   :  { %1251 = vperm.xlu1 %1529, %v1509_v26   ;;  %v717_v3 = vpop.permute.xlu0 %716 }
 0x204   :  { %v2266_v52 = vpop.permute.xlu2 %737  ;;  %v805_v51 = vperm.slane %v717_v3, %v1891_v20  ;;  %v1490_v6 = vunpack.i.l.s16 %v1029_v11 }
 0x205   :  { %v708_v24 = vpop.permute.xlu1 %707 }
 0x206   :  { %v802_v42 = vperm.slane %v708_v24, %v1891_v20  ;;  %v1482_v24 = vunpack.i.l.s16 %v938_v16 }
 0x207   :  { %1057 = vperm.xlu0 %1528, %v1487_v54   ;;  %v1481_v54 = vunpack.i.l.s16 %v937_v49 }
 0x208   :  { %v834_v27 = vsel %vm422_vm1, %v803_v47, %v802_v42  ;;  %v1030_v42 = vunpack.c.l.b16 %v902_v63 }
 0x20a   :  { %968 = vperm.xlu2 %1530, %v1479_v17   ;;  %v812_v17 = vperm.slane %v2266_v52, %v1891_v20  ;;  %v1491_v39 = vunpack.i.l.s16 %v1030_v42 }
 0x20b   :  { %965 = vperm.xlu1 %1529, %v1478_v9   ;;  %v726_v10 = vpop.permute.xlu0 %725 }
 0x20c   :  { %v2277_v31 = vpop.permute.xlu2 %746  ;;  %v808_v9 = vperm.slane %v726_v10, %v1891_v20 }
 0x20d   :  { %v714_v22 = vpop.permute.xlu1 %713 }
 0x20e   :  { %v804_v45 = vperm.slane %v714_v22, %v1891_v20  ;;  %v809_v22 = vperm.slane %v2258_v60, %v1891_v20 }
 0x20f   :  { %971 = vperm.xlu0 %1528, %v1480_v19  }
 0x210   :  { %v835_v61 = vsel %vm424_vm2, %v804_v45, %v834_v27 }
 0x211   :  { %v836_v8 = vsel %vm426_vm3, %v805_v51, %v835_v61 }
 0x212   :  { %1063 = vperm.xlu2 %1530, %v1489_v62   ;;  %v837_v55 = vsel %vm428_vm4, %v806_v38, %v836_v8  ;;  %v815_v62 = vperm.slane %v2277_v31, %v1891_v20 }
 0x213   :  { %1060 = vperm.xlu1 %1529, %v1488_v57  }
 0x214   :  { %v756_v26 = vpop.permute.xlu2 %755 }
 0x215   :  { %v723_v5 = vpop.permute.xlu1 %722  ;;  %v818_v10 = vperm.slane %v756_v26, %v1891_v20 }
 0x216   :  { %v807_v21 = vperm.slane %v723_v5, %v1891_v20 }
 0x217   :  { %1066 = vperm.xlu0 %1528, %v1490_v6  }
 0x218   :  { %v838_v58 = vsel %vm430_vm5, %v807_v21, %v837_v55 }
 0x219   :  { %v735_v15 = vpop.permute.xlu0 %734  ;;  %v839_v52 = vsel %vm432_vm6, %v808_v9, %v838_v58 }
 0x21a   :  { %977 = vperm.xlu2 %1530, %v1482_v24   ;;  %v811_v3 = vperm.slane %v735_v15, %v1891_v20 }
 0x21b   :  { %974 = vperm.xlu1 %1529, %v1481_v54  }
 0x21c   :  { %v765_v25 = vpop.permute.xlu2 %764 }
 0x21d   :  { %v732_v47 = vpop.permute.xlu1 %731  ;;  %v821_v57 = vperm.slane %v765_v25, %v1891_v20 }
 0x21e   :  { %v810_v27 = vperm.slane %v732_v47, %v1891_v20 }
 0x21f   :  { %779 = vperm.xlu0 %1528, %v2185_v23   ;;  %v840_v23 = vsel %vm434_vm7, %v809_v22, %v839_v52 }
 0x220   :  { %v841_v53 = vsel %vm422_vm1, %v811_v3, %v810_v27  ;;  %v922_v3 = vld [vmem:[%s2509_s2 + $0xc] sm:$0xf] }
 0x221   :  { %v744_v37 = vpop.permute.xlu0 %743  ;;  %v842_v56 = vsel %vm424_vm2, %v812_v17, %v841_v53  ;;  %v1273_v17 = vsel %vm998_vm10, %v922_v3, 0 }
 0x222   :  { %782 = vperm.xlu2 %1530, %v2189_v46   ;;  %v814_v38 = vperm.slane %v744_v37, %v1891_v20  ;;  %1282 = vmatpush.bf16.msra.mxu3 %v1273_v17 }
 0x223   :  { %1069 = vperm.xlu1 %1529, %v1491_v39   ;;  %v866_v39 = vsel %vm461_vm8, %v840_v23, 0.0 }
 0x224   :  { %v1140_v19 = vpop.permute.xlu2 %1139 }
 0x225   :  { %v741_v35 = vpop.permute.xlu1 %740  ;;  %v1162_v58 = vperm.slane %v1140_v19, %v1891_v20 }
 0x226   :  { %v813_v45 = vperm.slane %v741_v35, %v1891_v20 }
 0x227   :  { %788 = vperm.xlu0 %1528, %v2211_v28  }
 0x228   :  { %v843_v51 = vsel %vm426_vm3, %v813_v45, %v842_v56 }
 0x229   :  { %v2310_v50 = vpop.permute.xlu0 %752  ;;  %v844_v61 = vsel %vm428_vm4, %v814_v38, %v843_v51 }
 0x22a   :  { %791 = vperm.xlu2 %1530, %v2209_v13  }
 0x22b   :  { %785 = vperm.xlu1 %1529, %v2201_v1   ;;  %v845_v1 = vsel %vm430_vm5, %v815_v62, %v844_v61 }
 0x22c   :  { %v2315_v60 = vpop.permute.xlu2 %1233 }
 0x22d   :  { %v750_v46 = vpop.permute.xlu1 %749 }
 0x22e   :  { %v816_v9 = vperm.slane %v750_v46, %v1891_v20  ;;  %v817_v46 = vperm.slane %v2310_v50, %v1891_v20 }
 0x22f   :  { %773 = vperm.xlu0 %1528, %v2221_v48  }
 0x230   :  { %v846_v38 = vsel %vm432_vm6, %v816_v9, %v845_v1 }
 0x231   :  { %v762_v28 = vpop.permute.xlu0 %761 }
 0x232   :  { %797 = vperm.xlu2 %1530, %v2233_v44   ;;  %v820_v48 = vperm.slane %v762_v28, %v1891_v20 }
 0x233   :  { %794 = vperm.xlu1 %1529, %v2218_v40  }
 0x234   :  { %v1149_v13 = vpop.permute.xlu2 %1148 }
 0x235   :  { %v759_v2 = vpop.permute.xlu1 %758  ;;  %v1165_v52 = vperm.slane %v1149_v13, %v1891_v20 }
 0x236   :  { %v819_v8 = vperm.slane %v759_v2, %v1891_v20  ;;  %v847_v2 = vsel %vm434_vm7, %v817_v46, %v846_v38 }
 0x237   :  { %800 = vperm.xlu0 %1528, %v2252_v33   ;;  %v921_v33 = vld [vmem:[%s2509_s2 + $0x8] sm:$0xf]  ;;  %v869_v1 = vsel %vm461_vm8, %v847_v2, 0.0 }
 0x238   :  { %v848_v31 = vsel %vm422_vm1, %v819_v8, %v818_v10  ;;  %v1182_v6 = vsel %vm998_vm10, %v921_v33, 0  ;;  %v919_v33 = vld [vmem:[%s2509_s2] sm:$0xf] }
 0x239   :  { %v849_v44 = vsel %vm424_vm2, %v820_v48, %v848_v31  ;;  %v771_v11 = vpop.permute.xlu0 %770  ;;  %1191 = vmatpush.bf16.msra.mxu2 %v1182_v6 }
 0x23a   :  { %v850_v40 = vsel %vm426_vm3, %v821_v57, %v849_v44  ;;  %v823_v24 = vperm.slane %v771_v11, %v1891_v20 }
 0x23b   :  { %776 = vperm.xlu1 %1529, %v2240_v59  }
 0x23c   :  { %v2336_v26 = vpop.permute.xlu2 %1242 }
 0x23d   :  { %v768_v4 = vpop.permute.xlu1 %767 }
 0x23e   :  { %v822_v55 = vperm.slane %v768_v4, %v1891_v20  ;;  %v1254_v4 = vperm.slane %v2315_v60, %v1891_v20  ;;  %v1257_v60 = vperm.slane %v2336_v26, %v1891_v20 }
 0x240   :  { %v851_v16 = vsel %vm428_vm4, %v822_v55, %v850_v40 }
 0x241   :  { %v1231_v5 = vpop.permute.xlu0 %1230  ;;  %v2345_v54 = vsel %vm430_vm5, %v823_v24, %v851_v16  ;;  %v1000_v24 = vsel %vm998_vm10, %v919_v33, 0 }
 0x242   :  { %v1253_v44 = vperm.slane %v1231_v5, %v1891_v20  ;;  %1009 = vmatpush.bf16.msra.mxu0 %v1000_v24 }
 0x244   :  { %v1158_v59 = vpop.permute.xlu2 %1157  ;;  %v1261_v16 = vsel %vm422_vm1, %v1254_v4, %v1253_v44 }
 0x245   :  { %v1143_v49 = vpop.permute.xlu1 %1142  ;;  %v1168_v23 = vperm.slane %v1158_v59, %v1891_v20 }
 0x246   :  { %v1163_v42 = vperm.slane %v1143_v49, %v1891_v20 }
 0x248   :  { %v1170_v37 = vsel %vm422_vm1, %v1163_v42, %v1162_v58 }
 0x249   :  { %v1237_v15 = vpop.permute.xlu0 %1236 }
 0x24a   :  { %v1255_v11 = vperm.slane %v1237_v15, %v1891_v20 }
 0x24c   :  { %v2347_v25 = vpop.permute.xlu2 %959  ;;  %v1262_v6 = vsel %vm424_vm2, %v1255_v11, %v1261_v16 }
 0x24d   :  { %v1146_v63 = vpop.permute.xlu1 %1145 }
 0x24e   :  { %v1164_v27 = vperm.slane %v1146_v63, %v1891_v20 }
 0x250   :  { %v1171_v56 = vsel %vm424_vm2, %v1164_v27, %v1170_v37  ;;  %v920_v27 = vld [vmem:[%s2509_s2 + $0x4] sm:$0xf] }
 0x251   :  { %v1152_v21 = vpop.permute.xlu0 %1151  ;;  %v1172_v51 = vsel %vm426_vm3, %v1165_v52, %v1171_v56  ;;  %v1091_v58 = vsel %vm998_vm10, %v920_v27, 0 }
 0x252   :  { %v1166_v22 = vperm.slane %v1152_v21, %v1891_v20  ;;  %1100 = vmatpush.bf16.msra.mxu1 %v1091_v58 }
 0x254   :  { %v1161_v35 = vpop.permute.xlu2 %1160  ;;  %v1173_v61 = vsel %vm428_vm4, %v1166_v22, %v1172_v51 }
 0x255   :  { %v1240_v47 = vpop.permute.xlu1 %1239  ;;  %v1169_v28 = vperm.slane %v1161_v35, %v1891_v20 }
 0x256   :  { %v1256_v55 = vperm.slane %v1240_v47, %v1891_v20 }
 0x258   :  { %v1263_v5 = vsel %vm426_vm3, %v1256_v55, %v1262_v6 }
 0x259   :  { %v1246_v53 = vpop.permute.xlu0 %1245  ;;  %v1264_v21 = vsel %vm428_vm4, %v1257_v60, %v1263_v5 }
 0x25a   :  { %v1258_v59 = vperm.slane %v1246_v53, %v1891_v20 }
 0x25b   :  { %867 = vadd.xlane.f32.xlu2 %v866_v39 }
 0x25c   :  { %v1055_v31 = vpop.permute.xlu2 %1054  ;;  %v1265_v42 = vsel %vm430_vm5, %v1258_v59, %v1264_v21 }
 0x25d   :  { %v1155_v45 = vpop.permute.xlu1 %1154 }
 0x25e   :  { %v1167_v19 = vperm.slane %v1155_v45, %v1891_v20  ;;  %v980_v45 = vperm.slane %v2347_v25, %v1891_v20 }
 0x260   :  { %v1174_v62 = vsel %vm430_vm5, %v1167_v19, %v1173_v61 }
 0x261   :  { %v957_v13 = vpop.permute.xlu0 %956  ;;  %v1175_v10 = vsel %vm432_vm6, %v1168_v23, %v1174_v62 }
 0x262   :  { %v1176_v8 = vsel %vm434_vm7, %v1169_v28, %v1175_v10  ;;  %v979_v22 = vperm.slane %v957_v13, %v1891_v20 }
 0x263   :  { %v1177_v48 = vpack.c.b16 %v1176_v8, %v1176_v8 }
 0x264   :  { %v969_v63 = vpop.permute.xlu2 %968  ;;  %v987_v38 = vsel %vm422_vm1, %v980_v45, %v979_v22 }
 0x265   :  { %870 = vadd.xlane.f32.xlu1 %v869_v1  ;;  %1501 = vmatmul.msk.bf16.vlgmr.msra.gmra.mxu2 %vm461_vm8, %v1177_v48  ;;  %v1249_v50 = vpop.permute.xlu1 %1248  ;;  %v983_v13 = vperm.slane %v969_v63, %v1891_v20 }
 0x266   :  { %v1259_v15 = vperm.slane %v1249_v50, %v1891_v20  ;;  %v1073_v50 = vperm.slane %v1055_v31, %v1891_v20 }
 0x268   :  { %v1266_v17 = vsel %vm432_vm6, %v1259_v15, %v1265_v42 }
 0x269   :  { %v1052_v57 = vpop.permute.xlu0 %1051 }
 0x26a   :  { %v1072_v2 = vperm.slane %v1052_v57, %v1891_v20 }
 0x26c   :  { %v1064_v39 = vpop.permute.xlu2 %1063 }
 0x26d   :  { %v1049_v40 = vpop.permute.xlu1 %1048  ;;  %v1076_v5 = vperm.slane %v1064_v39, %v1891_v20 }
 0x26e   :  { %v1071_v23 = vperm.slane %v1049_v40, %v1891_v20 }
 0x270   :  { %v1079_v25 = vsel %vm422_vm1, %v1072_v2, %v1071_v23 }
 0x271   :  { %v963_v49 = vpop.permute.xlu0 %962  ;;  %v1080_v57 = vsel %vm424_vm2, %v1073_v50, %v1079_v25 }
 0x272   :  { %v981_v35 = vperm.slane %v963_v49, %v1891_v20 }
 0x274   :  { %v978_v19 = vpop.permute.xlu2 %977  ;;  %v988_v61 = vsel %vm424_vm2, %v981_v35, %v987_v38 }
 0x275   :  { %v1252_v47 = vpop.permute.xlu1 %1251  ;;  %v986_v44 = vperm.slane %v978_v19, %v1891_v20 }
 0x276   :  { %v1260_v3 = vperm.slane %v1252_v47, %v1891_v20 }
 0x278   :  { %v1267_v26 = vsel %vm434_vm7, %v1260_v3, %v1266_v17 }
 0x279   :  { %v1268_v53 = vpack.c.b16 %v1267_v26, %v1267_v26  ;;  %v1058_v9 = vpop.permute.xlu0 %1057 }
 0x27a   :  { %v1074_v8 = vperm.slane %v1058_v9, %v1891_v20 }
 0x27b   :  { %1510 = vmatmul.msk.bf16.vlgmr.msra.gmra.mxu3 %vm461_vm8, %v1268_v53 }
 0x27c   :  { %v1081_v33 = vsel %vm426_vm3, %v1074_v8, %v1080_v57  ;;  %v783_v6 = vpop.permute.xlu2 %782  ;;  %v667_v57 = vld [vmem:[#allocation3 + $0x8] sm:$0xff] }
 0x27d   :  { %v966_v37 = vpop.permute.xlu1 %965  ;;  %v827_v58 = vperm.slane %v783_v6, %v1891_v20 }
 0x27e   :  { %v982_v51 = vperm.slane %v966_v37, %v1891_v20 }
 0x280   :  { %v989_v28 = vsel %vm426_vm3, %v982_v51, %v988_v61 }
 0x281   :  { %v972_v56 = vpop.permute.xlu0 %971  ;;  %v990_v48 = vsel %vm428_vm4, %v983_v13, %v989_v28 }
 0x282   :  { %v984_v62 = vperm.slane %v972_v56, %v1891_v20 }
 0x284   :  { %v991_v11 = vsel %vm430_vm5, %v984_v62, %v990_v48  ;;  %v792_v3 = vpop.permute.xlu2 %791 }
 0x285   :  { %v1061_v52 = vpop.permute.xlu1 %1060  ;;  %v830_v22 = vperm.slane %v792_v3, %v1891_v20 }
 0x286   :  { %v1075_v40 = vperm.slane %v1061_v52, %v1891_v20 }
 0x288   :  { %v1082_v24 = vsel %vm428_vm4, %v1075_v40, %v1081_v33 }
 0x289   :  { %v1067_v46 = vpop.permute.xlu0 %1066  ;;  %v1083_v60 = vsel %vm430_vm5, %v1076_v5, %v1082_v24  ;;  %v486_v24 = vmul.f32 1.442695, %v480_v34  ;;  %v1288_v34 = vld [vmem:[#allocation4] sm:$0xff] }
 0x28a   :  { %v1077_v31 = vperm.slane %v1067_v46, %v1891_v20 }
 0x28c   :  { %v1084_v63 = vsel %vm432_vm6, %v1077_v31, %v1083_v60  ;;  %v798_v35 = vpop.permute.xlu2 %797  ;;  %v669_v60 = vld [vmem:[#allocation3 + $0x18] sm:$0xff] }
 0x28d   :  { %v975_v10 = vpop.permute.xlu1 %974  ;;  %v832_v38 = vperm.slane %v798_v35, %v1891_v20 }
 0x28e   :  { %v985_v1 = vperm.slane %v975_v10, %v1891_v20 }
 0x290   :  { %v992_v4 = vsel %vm432_vm6, %v985_v1, %v991_v11  ;;  %v482_v1 = vmul.f32 1.442695, %v478_v14 }
 0x291   :  { %v780_v55 = vpop.permute.xlu0 %779  ;;  %v993_v16 = vsel %vm434_vm7, %v986_v44, %v992_v4  ;;  %v666_v44 = vld [vmem:[#allocation3] sm:$0xff] }
 0x292   :  { %v994_v49 = vpack.c.b16 %v993_v16, %v993_v16  ;;  %v826_v27 = vperm.slane %v780_v55, %v1891_v20  ;;  %1660 = vpow2.f32 %v482_v1 }
 0x294   :  { %1483 = vmatmul.msk.bf16.vlgmr.msra.gmra.mxu0 %vm461_vm8, %v994_v49  ;;  %v855_v53 = vsel %vm422_vm1, %v827_v58, %v826_v27  ;;  %v488_v49 = vmul.f32 1.442695, %v481_v43 }
 0x295   :  { %v1070_v59 = vpop.permute.xlu1 %1069 }
 0x296   :  { %v1078_v15 = vperm.slane %v1070_v59, %v1891_v20 }
 0x298   :  { %v1085_v21 = vsel %vm434_vm7, %v1078_v15, %v1084_v63  ;;  %v1661_v50 = vpop.eup %1660 }
 0x299   :  { %v1086_v47 = vpack.c.b16 %v1085_v21, %v1085_v21  ;;  %v789_v42 = vpop.permute.xlu0 %788  ;;  %v670_v11 = vmul.f32 %v1661_v50, %v666_v44 }
 0x29a   :  { %v829_v39 = vperm.slane %v789_v42, %v1891_v20  ;;  %v668_v42 = vld [vmem:[#allocation3 + $0x10] sm:$0xff] }
 0x29b   :  { %1492 = vmatmul.msk.bf16.vlgmr.msra.gmra.mxu1 %vm461_vm8, %v1086_v47 }
 0x29d   :  { %v786_v17 = vpop.permute.xlu1 %785 }
 0x29e   :  { %v828_v26 = vperm.slane %v786_v17, %v1891_v20 }
 0x2a0   :  { %v856_v9 = vsel %vm424_vm2, %v828_v26, %v855_v53  ;;  %v1522_v26 = vld [vmem:[%s2510_s4 + $0x8] sm:$0xff] }
 0x2a1   :  { %v774_v37 = vpop.permute.xlu0 %773  ;;  %v857_v56 = vsel %vm426_vm3, %v829_v39, %v856_v9  ;;  %1453 = vmatpush.bf16.msrb.mxu0 %v1522_v26  ;;  %v1521_v9 = vld [vmem:[%s2510_s4] sm:$0xff]  ;;  %1523 = vmatpush.bf16.msrb.mxu1 %v1522_v26 }
 0x2a2   :  { %v858_v51 = vsel %vm428_vm4, %v830_v22, %v857_v56  ;;  %v824_v61 = vperm.slane %v774_v37, %v1891_v20  ;;  %v1289_v37 = vld [vmem:[#allocation4 + $0x8] sm:$0xff] }
 0x2a4   :  { %v853_v25 = vsel %vm432_vm6, %v824_v61, %v2345_v54 }
 0x2a5   :  { %v795_v52 = vpop.permute.xlu1 %794  ;;  %1454 = vmatpush.bf16.msrb.mxu0 %v1521_v9  ;;  %1524 = vmatpush.bf16.msrb.mxu1 %v1521_v9 }
 0x2a6   :  { %v831_v45 = vperm.slane %v795_v52, %v1891_v20 }
 0x2a8   :  { %v859_v19 = vsel %vm430_vm5, %v831_v45, %v858_v51 }
 0x2a9   :  { %v801_v46 = vpop.permute.xlu0 %800  ;;  %v860_v28 = vsel %vm432_vm6, %v832_v38, %v859_v19 }
 0x2aa   :  { %v833_v23 = vperm.slane %v801_v46, %v1891_v20 }
 0x2ac   :  { %v861_v62 = vsel %vm434_vm7, %v833_v23, %v860_v28 }
 0x2ad   :  { %v777_v13 = vpop.permute.xlu1 %776  ;;  %v875_v2 = vsel %vm461_vm8, %v861_v62, 0.0 }
 0x2ae   :  { %v825_v10 = vperm.slane %v777_v13, %v1891_v20  ;;  %876 = vadd.xlane.f32.xlu2 %v875_v2  ;;  %v484_v20 = vmul.f32 1.442695, %v479_v29 }
 0x2b0   :  { %v854_v8 = vsel %vm434_vm7, %v825_v10, %v853_v25  ;;  %1662 = vpow2.f32 %v484_v20 }
 0x2b1   :  { %v872_v48 = vsel %vm461_vm8, %v854_v8, 0.0  ;;  %1664 = vpow2.f32 %v488_v49  ;;  %v1291_v49 = vld [vmem:[#allocation4 + $0x18] sm:$0xff] }
 0x2b2   :  { %873 = vadd.xlane.f32.xlu0 %v872_v48  ;;  %1666 = vpow2.f32 %v486_v24 }
 0x2b6   :  { %v1663_v4 = vpop.eup %1662 }
 0x2b7   :  { %v671_v55 = vmul.f32 %v1663_v4, %v667_v57  ;;  %v1665_v59 = vpop.eup %1664 }
 0x2b8   :  { %v673_v63 = vmul.f32 %v1665_v59, %v669_v60  ;;  %v1667_v21 = vpop.eup %1666 }
 0x2b9   :  { %v672_v36 = vmul.f32 %v1667_v21, %v668_v42 }
 0x2c6   :  { %1294 = vperm.xlu0 %1528, %v1661_v50  }
 0x2ce   :  { %v868_v54 = vpop.xlane.xlu2 %867 }
 0x2cf   :  { %v878_v40 = vadd.f32 %v868_v54, %v670_v11 }
 0x2d1   :  { %883 = vst.msk [vmem:[#allocation3] sm:$0xff] %vm28_vm9, %v878_v40 }
 0x2d8   :  { %v871_v16 = vpop.xlane.xlu1 %870  ;;  %v1335_v12 = vld [vmem:[#allocation3] sm:$0xff] }
 0x2d9   :  { %v879_v0 = vadd.f32 %v871_v16, %v671_v55  ;;  %1341 = vperm.xlu1 %1529, %v1335_v12   ;;  %v1290_v12 = vld [vmem:[#allocation4 + $0x10] sm:$0xff] }
 0x2db   :  { %884 = vst.msk [vmem:[#allocation3 + $0x8] sm:$0xff] %vm28_vm9, %v879_v0 }
 0x2e2   :  { %v1336_v14 = vld [vmem:[#allocation3 + $0x8] sm:$0xff] }
 0x2e3   :  { %1346 = vperm.xlu2 %1530, %v1336_v14  }
 0x2e8   :  { %v2465_v18 = vpop.f32.mrf.mxu2 }
 0x2eb   :  { %1299 = vperm.xlu2 %1530, %v1663_v4  }
 0x2f0   :  { %v1195_v7 = vpop.f32.mrf.mxu2 }
 0x2fe   :  { %v2467_v29 = vpop.f32.mrf.mxu3 }
 0x306   :  { %v1286_v33 = vpop.f32.mrf.mxu3 }
 0x311   :  { %v1011_v6 = vpop.f32.mrf.mxu0 }
 0x318   :  { %v1102_v31 = vpop.f32.mrf.mxu1 }
 0x319   :  { %v1013_v5 = vpop.f32.mrf.mxu0 }
 0x320   :  { %v1104_v15 = vpop.f32.mrf.mxu1 }
 0x321   :  { %v877_v47 = vpop.xlane.xlu2 %876 }
 0x322   :  { %v881_v3 = vadd.f32 %v877_v47, %v673_v63 }
 0x324   :  { %886 = vst.msk [vmem:[#allocation3 + $0x18] sm:$0xff] %vm28_vm9, %v881_v3 }
 0x325   :  { %v874_v41 = vpop.xlane.xlu0 %873 }
 0x326   :  { %v880_v43 = vadd.f32 %v874_v41, %v672_v36 }
 0x328   :  { %885 = vst.msk [vmem:[#allocation3 + $0x10] sm:$0xff] %vm28_vm9, %v880_v43 }
 0x32b   :  { %v1338_v30 = vld [vmem:[#allocation3 + $0x18] sm:$0xff] }
 0x32c   :  { %1356 = vperm.xlu1 %1529, %v1338_v30  }
 0x32f   :  { %v1337_v32 = vld [vmem:[#allocation3 + $0x10] sm:$0xff] }
 0x330   :  { %1351 = vperm.xlu0 %1528, %v1337_v32  }
 0x334   :  { %1304 = vperm.xlu1 %1529, %v1667_v21  }
 0x338   :  { %1309 = vperm.xlu0 %1528, %v1665_v59   ;;  %v1295_v27 = vpop.permute.xlu0 %1294 }
 0x339   :  { %v1312_v17 = vmul.f32 %v1295_v27, %v1288_v34 }
 0x33b   :  { %v1316_v58 = vadd.f32 %v1312_v17, %v1011_v6 }
 0x33d   :  { %1320 = vst.msk [vmem:[#allocation4] sm:$0xff] %vm37_vm0, %v1316_v58  ;;  %v1347_v53 = vpop.permute.xlu2 %1346 }
 0x33e   :  { %1668 = vrcp.f32 %v1347_v53  ;;  %vm1379_vm12 = vweird.f32 %v1347_v53  ;;  %v1385_v28 = vand.u32 2147483648, %v1347_v53  ;;  %v1383_v13 = vand.u32 2147483647, %v1347_v53 }
 0x340   :  { %v1386_v48 = vor.u32 1.1754944e-38, %v1385_v28  ;;  %vm1384_vm2 = vcmp.eq.f32.partialorder %v1383_v13, 8.507059e+37 }
 0x344   :  { %v1669_v56 = vpop.eup %1668  ;;  %v1331_v44 = vld [vmem:[#allocation4] sm:$0xff] }
 0x345   :  { %v1300_v39 = vpop.permute.xlu2 %1299  ;;  %v1375_v35 = vmul.f32 %v1669_v56, %v1347_v53  ;;  %vm1380_vm11 = vweird.f32 %v1669_v56 }
 0x346   :  { %v1313_v22 = vmul.f32 %v1300_v39, %v1289_v37  ;;  %vm1381_vm14 = vmor %vm1379_vm12, %vm1380_vm11  ;;  %v1531_v39 = vld [vmem:[%s2511_s5] ss:$0 sm:$0xff]  ;;  %vm1466_vm12 = vcmask 785408  }
 0x347   :  { %v1376_v51 = vsub.f32 1.0, %v1375_v35 }
 0x348   :  { %v1317_v52 = vadd.f32 %v1313_v22, %v1102_v31 }
 0x349   :  { %v1377_v19 = vmul.f32 %v1669_v56, %v1376_v51 }
 0x34a   :  { %1321 = vst.msk [vmem:[#allocation4 + $0x8] sm:$0xff] %vm37_vm0, %v1317_v52 }
 0x34b   :  { %v1342_v45 = vpop.permute.xlu1 %1341  ;;  %v1378_v23 = vadd.f32 %v1669_v56, %v1377_v19 }
 0x34c   :  { %1670 = vrcp.f32 %v1342_v45  ;;  %v1370_v62 = vand.u32 2147483648, %v1342_v45  ;;  %v1368_v10 = vand.u32 2147483647, %v1342_v45  ;;  %vm1364_vm15 = vweird.f32 %v1342_v45 }
 0x34d   :  { %v1382_v25 = vsel %vm1381_vm14, %v1669_v56, %v1378_v23 }
 0x34e   :  { %v1371_v1 = vor.u32 1.1754944e-38, %v1370_v62  ;;  %vm1369_vm3 = vcmp.eq.f32.partialorder %v1368_v10, 8.507059e+37  ;;  %v1387_v54 = vsel %vm1384_vm2, %v1386_v48, %v1382_v25 }
 0x351   :  { %v1332_v50 = vld [vmem:[#allocation4 + $0x8] sm:$0xff] }
 0x352   :  { %v1671_v38 = vpop.eup %1670  ;;  %v1388_v4 = vmul.f32 %v1387_v54, %v1332_v50 }
 0x353   :  { %v1360_v46 = vmul.f32 %v1671_v38, %v1342_v45  ;;  %vm1365_vm13 = vweird.f32 %v1671_v38 }
 0x354   :  { %vm1366_vm1 = vmor %vm1364_vm15, %vm1365_vm13 }
 0x355   :  { %v1361_v61 = vsub.f32 1.0, %v1360_v46 }
 0x357   :  { %v1362_v2 = vmul.f32 %v1671_v38, %v1361_v61 }
 0x359   :  { %v1363_v8 = vadd.f32 %v1671_v38, %v1362_v2 }
 0x35b   :  { %v1367_v20 = vsel %vm1366_vm1, %v1671_v38, %v1363_v8 }
 0x35c   :  { %v1372_v11 = vsel %vm1369_vm3, %v1371_v1, %v1367_v20 }
 0x35d   :  { %v1373_v40 = vmul.f32 %v1372_v11, %v1331_v44 }
 0x35f   :  { %v1419_v57 = vpack.c.bf16 %v1388_v4, %v1373_v40 }
 0x361   :  { %1519 = vmatmul.msk.bf16.vlgmr.msrb.gmra.mxu0 %vm37_vm0, %v1419_v57 }
 0x39e   :  { %v1357_v55 = vpop.permute.xlu1 %1356 }
 0x39f   :  { %1672 = vrcp.f32 %v1357_v55  ;;  %v1415_v41 = vand.u32 2147483648, %v1357_v55  ;;  %vm1409_vm7 = vweird.f32 %v1357_v55 }
 0x3a2   :  { %v1352_v16 = vpop.permute.xlu0 %1351 }
 0x3a3   :  { %1674 = vrcp.f32 %v1352_v16  ;;  %v1400_v42 = vand.u32 2147483648, %v1352_v16  ;;  %v1398_v36 = vand.u32 2147483647, %v1352_v16  ;;  %vm1394_vm6 = vweird.f32 %v1352_v16 }
 0x3a5   :  { %v1673_v0 = vpop.eup %1672  ;;  %v1401_v32 = vor.u32 1.1754944e-38, %v1400_v42  ;;  %vm1399_vm10 = vcmp.eq.f32.partialorder %v1398_v36, 8.507059e+37 }
 0x3a6   :  { %v1405_v14 = vmul.f32 %v1673_v0, %v1357_v55  ;;  %v1305_v7 = vpop.permute.xlu1 %1304  ;;  %vm1410_vm5 = vweird.f32 %v1673_v0 }
 0x3a7   :  { %v1314_v33 = vmul.f32 %v1305_v7, %v1290_v12  ;;  %vm1411_vm9 = vmor %vm1409_vm7, %vm1410_vm5 }
 0x3a8   :  { %v1406_v6 = vsub.f32 1.0, %v1405_v14 }
 0x3a9   :  { %v1675_v24 = vpop.eup %1674  ;;  %v1318_v31 = vadd.f32 %v1314_v33, %v2465_v18  ;;  %v1413_v18 = vand.u32 2147483647, %v1357_v55 }
 0x3aa   :  { %v1390_v5 = vmul.f32 %v1675_v24, %v1352_v16  ;;  %v1310_v59 = vpop.permute.xlu0 %1309  ;;  %v1407_v60 = vmul.f32 %v1673_v0, %v1406_v6  ;;  %vm1395_vm4 = vweird.f32 %v1675_v24 }
 0x3ab   :  { %1322 = vst.msk [vmem:[#allocation4 + $0x10] sm:$0xff] %vm37_vm0, %v1318_v31  ;;  %v1315_v15 = vmul.f32 %v1310_v59, %v1291_v49  ;;  %vm1396_vm8 = vmor %vm1394_vm6, %vm1395_vm4  ;;  %vm1414_vm11 = vcmp.eq.f32.partialorder %v1413_v18, 8.507059e+37 }
 0x3ac   :  { %v1391_v63 = vsub.f32 1.0, %v1390_v5  ;;  %v1408_v3 = vadd.f32 %v1673_v0, %v1407_v60 }
 0x3ad   :  { %v1319_v21 = vadd.f32 %v1315_v15, %v2467_v29  ;;  %v1416_v29 = vor.u32 1.1754944e-38, %v1415_v41 }
 0x3ae   :  { %v1392_v47 = vmul.f32 %v1675_v24, %v1391_v63  ;;  %v1412_v34 = vsel %vm1411_vm9, %v1673_v0, %v1408_v3 }
 0x3af   :  { %1323 = vst.msk [vmem:[#allocation4 + $0x18] sm:$0xff] %vm37_vm0, %v1319_v21  ;;  %v1417_v26 = vsel %vm1414_vm11, %v1416_v29, %v1412_v34 }
 0x3b0   :  { %v1393_v43 = vadd.f32 %v1675_v24, %v1392_v47 }
 0x3b2   :  { %v1397_v30 = vsel %vm1396_vm8, %v1675_v24, %v1393_v43  ;;  %v1333_v27 = vld [vmem:[#allocation4 + $0x10] sm:$0xff] }
 0x3b3   :  { %v1402_v17 = vsel %vm1399_vm10, %v1401_v32, %v1397_v30 }
 0x3b4   :  { %v1403_v53 = vmul.f32 %v1402_v17, %v1333_v27 }
 0x3b6   :  { %v1334_v58 = vld [vmem:[#allocation4 + $0x18] sm:$0xff] }
 0x3b7   :  { %v1418_v9 = vmul.f32 %v1417_v26, %v1334_v58 }
 0x3b9   :  { %v1420_v37 = vpack.c.bf16 %v1418_v9, %v1403_v53 }
 0x3bb   :  { %1520 = vmatmul.msk.bf16.vlgmr.msrb.gmra.mxu1 %vm37_vm0, %v1420_v37 }
 0x3de   :  { %v1456_v56 = vpop.f32.mrf.mxu0 }
 0x3df   :  { %v1457_v22 = vadd.f32 %v1531_v39, %v1456_v56 }
 0x3e1   :  { %1467 = vst.msk [vmem:[%s2512_s6] sm:$0xff] %vm1466_vm12, %v1457_v22 }
 0x3e6   :  { %v1458_v52 = vpop.f32.mrf.mxu0 }
 0x3e7   :  { %v1459_v35 = vadd.f32 %v1531_v39, %v1458_v52 }
 0x3e9   :  { %1468 = vst.msk [vmem:[%s2512_s6 + $0x8] sm:$0xff] %vm1466_vm12, %v1459_v35 }
 0x438   :  { %v1461_v45 = vpop.f32.mrf.mxu1 }
 0x439   :  { %v1462_v51 = vadd.f32 %v1531_v39, %v1461_v45 }
 0x43b   :  { %1469 = vst.msk [vmem:[%s2512_s6 + $0x10] sm:$0xff] %vm1466_vm12, %v1462_v51 }
 0x440   :  { %v1463_v19 = vpop.f32.mrf.mxu1 }
 0x441   :  { %v1464_v38 = vadd.f32 %v1531_v39, %v1463_v19 }
 0x443   :  { %1470 = vst.msk [vmem:[%s2512_s6 + $0x18] sm:$0xff] %vm1466_vm12, %v1464_v38 }

</bundles_post_ra>
